<compile_context>
chip_gen: v5e
topology: v5e:2x2
jax: 0.10.0
libtpu: 0.0.40
codegen_flags: <defaults>
</compile_context>

<pallas_src>
import numpy as np
import jax
import jax.numpy as jnp
from jax.experimental import pallas as pl
from jax.experimental.pallas import tpu as pltpu


# -----------------------------------------------------------------------------
# Kernel 1: AvgPool2d(spatial) + flatten + init_h / init_c linears (one launch)
# -----------------------------------------------------------------------------
def _init_state_kernel(feat_ref, wh_ref, bh_ref, wc_ref, bc_ref, h0_ref, c0_ref):
    # feat_ref: (B, C, Hf*Wf) -> global spatial mean == AvgPool2d(7) + flatten
    img = jnp.mean(feat_ref[...], axis=-1)                     # (B, C)
    h0_ref[...] = (jnp.dot(img, wh_ref[...], preferred_element_type=jnp.float32)
                   + bh_ref[...])
    c0_ref[...] = (jnp.dot(img, wc_ref[...], preferred_element_type=jnp.float32)
                   + bc_ref[...])


def image_init_state(params, feat_nchw):
    B, C, Hf, Wf = feat_nchw.shape
    Hd = params["w_init_h"].shape[0]
    feat = feat_nchw.reshape(B, C, Hf * Wf)
    w_h_t = params["w_init_h"].T                               # (C, H)
    b_h = params["b_init_h"].reshape(1, Hd)
    w_c_t = params["w_init_c"].T                               # (C, H)
    b_c = params["b_init_c"].reshape(1, Hd)
    h0, c0 = pl.pallas_call(
        _init_state_kernel,
        out_shape=(jax.ShapeDtypeStruct((B, Hd), jnp.float32),
                   jax.ShapeDtypeStruct((B, Hd), jnp.float32)),
    )(feat, w_h_t, b_h, w_c_t, b_c)
    return h0, c0


# -----------------------------------------------------------------------------
# Kernel 2: LSTM recurrence (hidden states only; fused gate matmul; f32 state)
# -----------------------------------------------------------------------------
def _lstm_recurrence_kernel(h0_ref, c0_ref, emb_ref, wg_ref, bg_ref,
                            hout_ref, h_sc, c_sc):
    t = pl.program_id(0)
    Hd = h_sc.shape[1]

    @pl.when(t == 0)
    def _():
        h_sc[...] = h0_ref[...]
        c_sc[...] = c0_ref[...]

    x = emb_ref[...]                    # (B, E)  -- time dim squeezed by BlockSpec
    h = h_sc[...]
    c = c_sc[...]

    # Single fused gate matmul: [x | h] @ [W_ih^T ; W_hh^T]  (PyTorch gate order i,f,g,o)
    xh = jnp.concatenate([x, h], axis=-1)                       # (B, E+H)
    gates = (jnp.dot(xh, wg_ref[...], preferred_element_type=jnp.float32)
             + bg_ref[...])

    i_g = jax.nn.sigmoid(gates[:, 0 * Hd:1 * Hd])
    f_g = jax.nn.sigmoid(gates[:, 1 * Hd:2 * Hd])
    g_g = jnp.tanh(gates[:, 2 * Hd:3 * Hd])
    o_g = jax.nn.sigmoid(gates[:, 3 * Hd:4 * Hd])

    c_new = f_g * c + i_g * g_g
    h_new = o_g * jnp.tanh(c_new)
    c_sc[...] = c_new
    h_sc[...] = h_new

    # Emit hidden state (bf16 writeback; f32 state stays in scratch).
    hout_ref[...] = h_new.astype(hout_ref.dtype)


# -----------------------------------------------------------------------------
# Kernel 3: vocab projection fc, tiled parallel matmul (dropout == identity)
# -----------------------------------------------------------------------------
def _fc_kernel(h_ref, w_ref, b_ref, out_ref):
    out_ref[...] = (jnp.dot(h_ref[...], w_ref[...], preferred_element_type=jnp.float32)
                    + b_ref[...]).astype(out_ref.dtype)


def _pick_tile(dim, pref, align):
    """Largest tile <= pref that divides dim and is a multiple of align."""
    if dim <= pref or dim % align != 0:
        return dim
    t = (pref // align) * align
    while dim % t != 0:
        t -= align
    return t


def lstm_decoder(params, h0, c0, cap, cap_len):
    B, Hd = h0.shape
    E = params["embed"].shape[1]
    V = params["w_fc"].shape[0]
    T = int(max(cap_len))

    # Embedding lookup (gather) stays in plain XLA glue; no transpose needed.
    emb = params["embed"][cap[:, :T]]                           # (B, T, E)

    # Fused gate weight: [W_ih^T ; W_hh^T] -> (E+H, 4H), fused bias.
    w_gates = jnp.concatenate([params["w_ih"].T, params["w_hh"].T], axis=0)
    b_gates = (params["b_ih"] + params["b_hh"]).reshape(1, 4 * Hd)

    # ---- recurrence: grid=(T,), sequential; emits hidden states (B, T, H) bf16
    hidden = pl.pallas_call(
        _lstm_recurrence_kernel,
        out_shape=jax.ShapeDtypeStruct((B, T, Hd), jnp.bfloat16),
        grid_spec=pltpu.PrefetchScalarGridSpec(
            num_scalar_prefetch=0,
            grid=(T,),
            in_specs=[
                pl.BlockSpec((B, Hd), lambda t: (0, 0)),                    # h0
                pl.BlockSpec((B, Hd), lambda t: (0, 0)),                    # c0
                pl.BlockSpec((B, pl.Squeezed(), E), lambda t: (0, t, 0)),   # emb[:, t, :]
                pl.BlockSpec((E + Hd, 4 * Hd), lambda t: (0, 0)),           # fused gate W
                pl.BlockSpec((1, 4 * Hd), lambda t: (0, 0)),                # fused gate b
            ],
            out_specs=pl.BlockSpec((B, pl.Squeezed(), Hd), lambda t: (0, t, 0)),
            scratch_shapes=[pltpu.VMEM((B, Hd), jnp.float32),               # h state
                            pltpu.VMEM((B, Hd), jnp.float32)],              # c state
        ),
        compiler_params=pltpu.CompilerParams(
            dimension_semantics=("arbitrary",),
            vmem_limit_bytes=64 * 1024 * 1024),
    )(h0, c0, emb, w_gates, b_gates)

    # ---- fc projection: (B*T, H) @ (H, V), fully parallel, bf16 operands,
    #      f32 accumulation.  (B*T, V) reshapes straight to (B, T, V): no transpose.
    h_flat = hidden.reshape(B * T, Hd)                          # contiguous, free
    w_fc_t = params["w_fc"].T.astype(jnp.bfloat16)              # (H, V)
    b_fc = params["b_fc"].reshape(1, V)

    BT = B * T
    tm = _pick_tile(BT, 256, 8)
    tn = _pick_tile(V, 512, 128)

    logits = pl.pallas_call(
        _fc_kernel,
        out_shape=jax.ShapeDtypeStruct((BT, V), jnp.float32),
        grid_spec=pltpu.PrefetchScalarGridSpec(
            num_scalar_prefetch=0,
            grid=(BT // tm, V // tn),
            in_specs=[
                pl.BlockSpec((tm, Hd), lambda i, j: (i, 0)),    # hidden tile (bf16)
                pl.BlockSpec((Hd, tn), lambda i, j: (0, j)),    # W_fc^T tile (bf16)
                pl.BlockSpec((1, tn), lambda i, j: (0, j)),     # b_fc tile
            ],
            out_specs=pl.BlockSpec((tm, tn), lambda i, j: (i, j)),
        ),
        compiler_params=pltpu.CompilerParams(
            dimension_semantics=("parallel", "parallel"),
            vmem_limit_bytes=64 * 1024 * 1024),
    )(h_flat, w_fc_t, b_fc)

    return logits.reshape(B, T, V)                              # PyTorch (B, max_len, V)


def nic_forward(params, image_feature, cap, cap_len):
    image = image_feature["image"]                 # post-CNN feature map (B, C, Hf, Wf)
    h0, c0 = image_init_state(params, image)       # AvgPool + init_h/init_c fused
    return lstm_decoder(params, h0, c0, cap, cap_len)


# -----------------------------------------------------------------------------
# Deterministic parameter construction (weight_norm linears materialized)
# -----------------------------------------------------------------------------
def _weight_norm_linear(key, in_dim, out_dim, zero_bias=False, uniform=None):
    kv, kg, kb = jax.random.split(key, 3)
    if uniform is not None:
        v = jax.random.uniform(kv, (out_dim, in_dim), jnp.float32, -uniform, uniform)
    else:
        v = jax.random.normal(kv, (out_dim, in_dim), jnp.float32) * 0.1
    g = jax.random.uniform(kg, (out_dim,), jnp.float32, 0.5, 1.5)
    w = g[:, None] * v / (jnp.linalg.norm(v, axis=1, keepdims=True) + 1e-12)
    if zero_bias:
        b = jnp.zeros((out_dim,), jnp.float32)
    else:
        b = jax.random.normal(kb, (out_dim,), jnp.float32) * 0.05
    return w, b


def make_params(key, vocab_size, image_dim, embed_dim, hidden_dim):
    keys = jax.random.split(key, 8)
    embed = jax.random.uniform(keys[0], (vocab_size, embed_dim), jnp.float32, -0.1, 0.1)
    w_ih = jax.random.normal(keys[1], (4 * hidden_dim, embed_dim), jnp.float32) * 0.1
    w_hh = jax.random.normal(keys[2], (4 * hidden_dim, hidden_dim), jnp.float32) * 0.1
    b_ih = jax.random.normal(keys[3], (4 * hidden_dim,), jnp.float32) * 0.05
    b_hh = jax.random.normal(keys[4], (4 * hidden_dim,), jnp.float32) * 0.05
    w_init_h, b_init_h = _weight_norm_linear(keys[5], image_dim, hidden_dim)
    w_init_c, b_init_c = _weight_norm_linear(keys[6], image_dim, hidden_dim)
    w_fc, b_fc = _weight_norm_linear(keys[7], hidden_dim, vocab_size,
                                     zero_bias=True, uniform=0.1)
    return dict(embed=embed, w_ih=w_ih, w_hh=w_hh, b_ih=b_ih, b_hh=b_hh,
                w_init_h=w_init_h, b_init_h=b_init_h,
                w_init_c=w_init_c, b_init_c=b_init_c,
                w_fc=w_fc, b_fc=b_fc)


# -----------------------------------------------------------------------------
# Pure-JAX f32 reference for correctness check
# -----------------------------------------------------------------------------
def reference_forward(params, feat_nchw, cap, cap_len):
    B, C, Hf, Wf = feat_nchw.shape
    img_feat = jnp.mean(feat_nchw.reshape(B, C, -1), axis=-1)
    h = img_feat @ params["w_init_h"].T + params["b_init_h"]
    c = img_feat @ params["w_init_c"].T + params["b_init_c"]
    Hd = h.shape[1]
    emb = params["embed"][cap]
    T = int(max(cap_len))
    logits = []
    for t in range(T):
        x = emb[:, t, :]
        gates = (x @ params["w_ih"].T + params["b_ih"]
                 + h @ params["w_hh"].T + params["b_hh"])
        i_g = jax.nn.sigmoid(gates[:, :Hd])
        f_g = jax.nn.sigmoid(gates[:, Hd:2 * Hd])
        g_g = jnp.tanh(gates[:, 2 * Hd:3 * Hd])
        o_g = jax.nn.sigmoid(gates[:, 3 * Hd:])
        c = f_g * c + i_g * g_g
        h = o_g * jnp.tanh(c)
        logits.append(h @ params["w_fc"].T + params["b_fc"])
    return jnp.stack(logits, axis=1)


if __name__ == "__main__":
    key = jax.random.PRNGKey(0)
    # Small but hardware-friendly shapes: B multiple of 8 (sublanes),
    # E / H / V multiples of 128 (lane-aligned gate slices, lane-dense stores).
    B, image_dim, Hf, Wf = 8, 256, 7, 7          # (B, C, 7, 7) like ResNet's last map
    embed_dim, hidden_dim, vocab_size = 128, 128, 512
    T = 8

    k_feat, k_cap, k_par = jax.random.split(key, 3)
    feat = jax.random.normal(k_feat, (B, image_dim, Hf, Wf), jnp.float32)
    cap = jax.random.randint(k_cap, (B, T), 0, vocab_size, jnp.int32)
    cap_len = [T] * (B - 1) + [T - 3]

    params = make_params(k_par, vocab_size, image_dim, embed_dim, hidden_dim)

    logit = nic_forward(params, {"image": feat}, cap, cap_len)
    logit = jax.block_until_ready(logit)

    ref = reference_forward(params, feat, cap, cap_len)
    # fc projection uses bf16 operands with f32 accumulation -> loosened tolerance.
    np.testing.assert_allclose(np.asarray(logit), np.asarray(ref),
                               rtol=2e-2, atol=2e-2)

    assert logit.shape == (B, int(max(cap_len)), vocab_size)
    print("KERNEL_OK")
</pallas_src>

<mosaic_0001>
module attributes {stable_mosaic.version = 11 : i64} {
  func.func @_init_state_kernel(%arg0: memref<8x256x49xf32, #tpu.memory_space<vmem>>, %arg1: memref<256x128xf32, #tpu.memory_space<vmem>>, %arg2: memref<1x128xf32, #tpu.memory_space<vmem>>, %arg3: memref<256x128xf32, #tpu.memory_space<vmem>>, %arg4: memref<1x128xf32, #tpu.memory_space<vmem>>, %arg5: memref<8x128xf32, #tpu.memory_space<vmem>>, %arg6: memref<8x128xf32, #tpu.memory_space<vmem>>) attributes {dimension_semantics = [], scalar_prefetch = 0 : i64, scratch_operands = 0 : i64, tpu.core_type = #tpu.core_type<tc>} {
    %c0 = arith.constant 0 : index
    %c0_0 = arith.constant 0 : index
    %c0_1 = arith.constant 0 : index
    %0 = vector.load %arg0[%c0, %c0_0, %c0_1] : memref<8x256x49xf32, #tpu.memory_space<vmem>>, vector<8x256x49xf32>
    %cst = arith.constant dense<0.000000e+00> : vector<8x256xf32>
    %1 = vector.multi_reduction <add>, %0, %cst [2] : vector<8x256x49xf32> to vector<8x256xf32>
    %cst_2 = arith.constant 4.900000e+01 : f32
    %2 = vector.broadcast %cst_2 : f32 to vector<8x256xf32>
    %3 = arith.divf %1, %2 : vector<8x256xf32>
    %c0_3 = arith.constant 0 : index
    %c0_4 = arith.constant 0 : index
    %4 = vector.load %arg1[%c0_3, %c0_4] : memref<256x128xf32, #tpu.memory_space<vmem>>, vector<256x128xf32>
    %cst_5 = arith.constant dense<0.000000e+00> : vector<8x128xf32>
    %5 = tpu.matmul %3, %4, %cst_5 {dimension_numbers = #tpu.dot_dimension_numbers<[1], [0], [0], [1], [0, 0, 1, 1], [], []>} : vector<8x256xf32>, vector<256x128xf32>, vector<8x128xf32> -> vector<8x128xf32>
    %c0_6 = arith.constant 0 : index
    %c0_7 = arith.constant 0 : index
    %6 = vector.load %arg2[%c0_6, %c0_7] : memref<1x128xf32, #tpu.memory_space<vmem>>, vector<1x128xf32>
    %7 = vector.broadcast %6 : vector<1x128xf32> to vector<8x128xf32>
    %8 = arith.addf %5, %7 : vector<8x128xf32>
    %c0_8 = arith.constant 0 : index
    %c0_9 = arith.constant 0 : index
    %9 = vector.load %arg5[%c0_8, %c0_9] : memref<8x128xf32, #tpu.memory_space<vmem>>, vector<8x128xf32>
    tpu.vector_store %arg5[%c0_8, %c0_9], %8 {strides = array<i32>} : memref<8x128xf32, #tpu.memory_space<vmem>>, vector<8x128xf32>,
    %c0_10 = arith.constant 0 : index
    %c0_11 = arith.constant 0 : index
    %10 = vector.load %arg3[%c0_10, %c0_11] : memref<256x128xf32, #tpu.memory_space<vmem>>, vector<256x128xf32>
    %cst_12 = arith.constant dense<0.000000e+00> : vector<8x128xf32>
    %11 = tpu.matmul %3, %10, %cst_12 {dimension_numbers = #tpu.dot_dimension_numbers<[1], [0], [0], [1], [0, 0, 1, 1], [], []>} : vector<8x256xf32>, vector<256x128xf32>, vector<8x128xf32> -> vector<8x128xf32>
    %c0_13 = arith.constant 0 : index
    %c0_14 = arith.constant 0 : index
    %12 = vector.load %arg4[%c0_13, %c0_14] : memref<1x128xf32, #tpu.memory_space<vmem>>, vector<1x128xf32>
    %13 = vector.broadcast %12 : vector<1x128xf32> to vector<8x128xf32>
    %14 = arith.addf %11, %13 : vector<8x128xf32>
    %c0_15 = arith.constant 0 : index
    %c0_16 = arith.constant 0 : index
    %15 = vector.load %arg6[%c0_15, %c0_16] : memref<8x128xf32, #tpu.memory_space<vmem>>, vector<8x128xf32>
    tpu.vector_store %arg6[%c0_15, %c0_16], %14 {strides = array<i32>} : memref<8x128xf32, #tpu.memory_space<vmem>>, vector<8x128xf32>,
    return
  }
}

</mosaic_0001>

<bundles_post_ra>
// kernel: tpu_custom_call.1
= control target key start
LH: loop header
LB: loop body
LE: loop exit
PB: predicated region body
PF: predicated region fallthrough
CT: control target
= control target key end

     0   :  { %12 = vsyncpa [#allocation3], 0  ;;  %vm280_vm0 = vcmask 400384   ;;  %s4880_s0 = inlined_call_operand.vmem [shape: f32[8,256,49], index: 0, kind: input, shape index: {}]   ;;  %s4881_s1 = inlined_call_operand.vmem [shape: f32[256,128], index: 1, kind: input, shape index: {}]   ;;  %s4882_s2 = inlined_call_operand.vmem [shape: f32[1,128], index: 2, kind: input, shape index: {}]   ;;  %s4883_s3 = inlined_call_operand.vmem [shape: f32[256,128], index: 3, kind: input, shape index: {}]   ;;  %s4884_s4 = inlined_call_operand.vmem [shape: f32[1,128], index: 4, kind: input, shape index: {}]   ;;  %s4885_s5 = inlined_call_operand.hbm [shape: f32[8,128], index: 5, kind: output, shape index: {0}]   ;;  %s4886_s6 = inlined_call_operand.hbm [shape: f32[8,128], index: 6, kind: output, shape index: {1}]  }
   0x1   :  { %v28_v0 = vld [vmem:[%s4880_s0 + $0x20] sm:$0xff]  ;;  %v26_v1 = vld [vmem:[%s4880_s0 + $0x10] sm:$0xff]  ;;  %v29_v6 = vld [vmem:[%s4880_s0 + $0x28] sm:$0xff] }
   0x2   :  { %v24_v2 = vld [vmem:[%s4880_s0] sm:$0xff]  ;;  %v293_v3 = vsel %vm280_vm0, %v28_v0, 0.0  ;;  %v287_v4 = vsel %vm280_vm0, %v26_v1, 0.0  ;;  %v27_v7 = vld [vmem:[%s4880_s0 + $0x18] sm:$0xff]  ;;  %v25_v8 = vld [vmem:[%s4880_s0 + $0x8] sm:$0xff] }
   0x3   :  { %v281_v5 = vsel %vm280_vm0, %v24_v2, 0.0  ;;  %294 = vadd.xlane.f32.xlu2 %v293_v3  ;;  %288 = vadd.xlane.f32.xlu1 %v287_v4 }
   0x4   :  { %282 = vadd.xlane.f32.xlu0 %v281_v5 }
   0x5   :  { %13 = vsyncpa [#allocation5], 0  ;;  %v296_v9 = vsel %vm280_vm0, %v29_v6, 0.0  ;;  %v290_v10 = vsel %vm280_vm0, %v27_v7, 0.0  ;;  %v284_v11 = vsel %vm280_vm0, %v25_v8, 0.0  ;;  %v32_v12 = vld [vmem:[%s4880_s0 + $0x40] sm:$0xff] }
   0x6   :  { %v31_v13 = vld [vmem:[%s4880_s0 + $0x38] sm:$0xff]  ;;  %v30_v14 = vld [vmem:[%s4880_s0 + $0x30] sm:$0xff]  ;;  %v305_v15 = vsel %vm280_vm0, %v32_v12, 0.0  ;;  %v33_v20 = vld [vmem:[%s4880_s0 + $0x48] sm:$0xff]  ;;  %vm1609_vm2 = vcmask 130112   ;;  %vm1613_vm3 = vcmask 195712  }
   0x7   :  { %v302_v16 = vsel %vm280_vm0, %v31_v13, 0.0  ;;  %v299_v17 = vsel %vm280_vm0, %v30_v14, 0.0  ;;  %v35_v18 = vld [vmem:[%s4880_s0 + $0x58] sm:$0xff]  ;;  %v34_v19 = vld [vmem:[%s4880_s0 + $0x50] sm:$0xff]  ;;  %v308_v23 = vsel %vm280_vm0, %v33_v20, 0.0  ;;  %v37_v25 = vld [vmem:[%s4880_s0 + $0x68] sm:$0xff] }
   0x8   :  { %v314_v21 = vsel %vm280_vm0, %v35_v18, 0.0  ;;  %v311_v22 = vsel %vm280_vm0, %v34_v19, 0.0  ;;  %v38_v24 = vld [vmem:[%s4880_s0 + $0x70] sm:$0xff]  ;;  %v36_v26 = vld [vmem:[%s4880_s0 + $0x60] sm:$0xff]  ;;  %v320_v28 = vsel %vm280_vm0, %v37_v25, 0.0  ;;  %v41_v30 = vld [vmem:[%s4880_s0 + $0x88] sm:$0xff] }
   0x9   :  { %v323_v27 = vsel %vm280_vm0, %v38_v24, 0.0  ;;  %v317_v29 = vsel %vm280_vm0, %v36_v26, 0.0  ;;  %v40_v31 = vld [vmem:[%s4880_s0 + $0x80] sm:$0xff]  ;;  %v39_v32 = vld [vmem:[%s4880_s0 + $0x78] sm:$0xff]  ;;  %v332_v33 = vsel %vm280_vm0, %v41_v30, 0.0  ;;  %v42_v38 = vld [vmem:[%s4880_s0 + $0x90] sm:$0xff] }
   0xa   :  { %v329_v34 = vsel %vm280_vm0, %v40_v31, 0.0  ;;  %v326_v35 = vsel %vm280_vm0, %v39_v32, 0.0  ;;  %v44_v36 = vld [vmem:[%s4880_s0 + $0xa0] sm:$0xff]  ;;  %v43_v37 = vld [vmem:[%s4880_s0 + $0x98] sm:$0xff]  ;;  %v335_v41 = vsel %vm280_vm0, %v42_v38, 0.0  ;;  %v46_v43 = vld [vmem:[%s4880_s0 + $0xb0] sm:$0xff] }
   0xb   :  { %297 = vadd.xlane.f32.xlu2 %v296_v9  ;;  %291 = vadd.xlane.f32.xlu1 %v290_v10  ;;  %v341_v39 = vsel %vm280_vm0, %v44_v36, 0.0  ;;  %v338_v40 = vsel %vm280_vm0, %v43_v37, 0.0  ;;  %v47_v42 = vld [vmem:[%s4880_s0 + $0xb8] sm:$0xff]  ;;  %v45_v44 = vld [vmem:[%s4880_s0 + $0xa8] sm:$0xff]  ;;  %v347_v46 = vsel %vm280_vm0, %v46_v43, 0.0  ;;  %v50_v48 = vld [vmem:[%s4880_s0 + $0xd0] sm:$0xff] }
   0xc   :  { %285 = vadd.xlane.f32.xlu0 %v284_v11  ;;  %v350_v45 = vsel %vm280_vm0, %v47_v42, 0.0  ;;  %v344_v47 = vsel %vm280_vm0, %v45_v44, 0.0  ;;  %v49_v49 = vld [vmem:[%s4880_s0 + $0xc8] sm:$0xff]  ;;  %v48_v50 = vld [vmem:[%s4880_s0 + $0xc0] sm:$0xff]  ;;  %v359_v51 = vsel %vm280_vm0, %v50_v48, 0.0  ;;  %v51_v56 = vld [vmem:[%s4880_s0 + $0xd8] sm:$0xff] }
   0xd   :  { %v356_v52 = vsel %vm280_vm0, %v49_v49, 0.0  ;;  %v353_v53 = vsel %vm280_vm0, %v48_v50, 0.0  ;;  %v53_v54 = vld [vmem:[%s4880_s0 + $0xe8] sm:$0xff]  ;;  %v52_v55 = vld [vmem:[%s4880_s0 + $0xe0] sm:$0xff]  ;;  %v362_v59 = vsel %vm280_vm0, %v51_v56, 0.0  ;;  %v55_v61 = vld [vmem:[%s4880_s0 + $0xf8] sm:$0xff] }
   0xe   :  { %v368_v57 = vsel %vm280_vm0, %v53_v54, 0.0  ;;  %v365_v58 = vsel %vm280_vm0, %v52_v55, 0.0  ;;  %v56_v60 = vld [vmem:[%s4880_s0 + $0x100] sm:$0xff]  ;;  %v54_v62 = vld [vmem:[%s4880_s0 + $0xf0] sm:$0xff]  ;;  %v374_v0 = vsel %vm280_vm0, %v55_v61, 0.0  ;;  %v59_v2 = vld [vmem:[%s4880_s0 + $0x118] sm:$0xff] }
   0xf   :  { %v377_v63 = vsel %vm280_vm0, %v56_v60, 0.0  ;;  %v371_v1 = vsel %vm280_vm0, %v54_v62, 0.0  ;;  %v58_v3 = vld [vmem:[%s4880_s0 + $0x110] sm:$0xff]  ;;  %v57_v4 = vld [vmem:[%s4880_s0 + $0x108] sm:$0xff]  ;;  %v386_v5 = vsel %vm280_vm0, %v59_v2, 0.0  ;;  %v60_v10 = vld [vmem:[%s4880_s0 + $0x120] sm:$0xff] }
  0x10   :  { %v383_v6 = vsel %vm280_vm0, %v58_v3, 0.0  ;;  %v380_v7 = vsel %vm280_vm0, %v57_v4, 0.0  ;;  %v62_v8 = vld [vmem:[%s4880_s0 + $0x130] sm:$0xff]  ;;  %v61_v9 = vld [vmem:[%s4880_s0 + $0x128] sm:$0xff]  ;;  %v389_v13 = vsel %vm280_vm0, %v60_v10, 0.0  ;;  %v68_v20 = vld [vmem:[%s4880_s0 + $0x160] sm:$0xff] }
  0x11   :  { %v395_v11 = vsel %vm280_vm0, %v62_v8, 0.0  ;;  %v392_v12 = vsel %vm280_vm0, %v61_v9, 0.0  ;;  %v65_v14 = vld [vmem:[%s4880_s0 + $0x148] sm:$0xff]  ;;  %v71_v26 = vld [vmem:[%s4880_s0 + $0x178] sm:$0xff]  ;;  %vm1617_vm4 = vcmask 261312   ;;  %vm4893_vm5 = vcmask 326912  }
  0x12   :  { %v69_v30 = vld [vmem:[%s4880_s0 + $0x168] sm:$0xff]  ;;  %v422_v32 = vsel %vm280_vm0, %v71_v26, 0.0  ;;  %v75_v48 = vld [vmem:[%s4880_s0 + $0x198] sm:$0xff]  ;;  %vm4892_vm6 = vcmask 392512   ;;  %vm4890_vm7 = vcmask 458112   ;;  %vm4887_vm8 = vcmask 523712  }
  0x13   :  { %306 = vadd.xlane.f32.xlu2 %v305_v15  ;;  %303 = vadd.xlane.f32.xlu1 %v302_v16  ;;  %v64_v15 = vld [vmem:[%s4880_s0 + $0x140] sm:$0xff]  ;;  %v63_v16 = vld [vmem:[%s4880_s0 + $0x138] sm:$0xff]  ;;  %v73_v36 = vld [vmem:[%s4880_s0 + $0x188] sm:$0xff]  ;;  %vm1637_vm9 = vcmask 589312   ;;  %vm1641_vm10 = vcmask 654912   ;;  %vm1645_vm11 = vcmask 720512  }
  0x14   :  { %300 = vadd.xlane.f32.xlu0 %v299_v17  ;;  %v404_v17 = vsel %vm280_vm0, %v65_v14, 0.0  ;;  %v401_v18 = vsel %vm280_vm0, %v64_v15, 0.0  ;;  %v398_v19 = vsel %vm280_vm0, %v63_v16, 0.0  ;;  %v428_v42 = vsel %vm280_vm0, %v73_v36, 0.0  ;;  %v77_v44 = vld [vmem:[%s4880_s0 + $0x1a8] sm:$0xff]  ;;  %v79_v54 = vld [vmem:[%s4880_s0 + $0x1b8] sm:$0xff] }
  0x15   :  { %v440_v50 = vsel %vm280_vm0, %v77_v44, 0.0  ;;  %v446_v60 = vsel %vm280_vm0, %v79_v54, 0.0  ;;  %v83_v62 = vld [vmem:[%s4880_s0 + $0x1d8] sm:$0xff]  ;;  %v81_v2 = vld [vmem:[%s4880_s0 + $0x1c8] sm:$0xff]  ;;  %vm4889_vm12 = vcmask 786112   ;;  %vm4888_vm13 = vcmask 851712  }
  0x16   :  { %v458_v4 = vsel %vm280_vm0, %v83_v62, 0.0  ;;  %v85_v8 = vld [vmem:[%s4880_s0 + $0x1e8] sm:$0xff]  ;;  %v91_v26 = vld [vmem:[%s4880_s0 + $0x218] sm:$0xff]  ;;  %vm1657_vm14 = vcmask 917312   ;;  %vm1661_vm15 = vcmask 982912   ;;  %s2365_s7 = smov [#allocation2]  }
  0x17   :  { %v464_v14 = vsel %vm280_vm0, %v85_v8, 0.0  ;;  %v89_v16 = vld [vmem:[%s4880_s0 + $0x208] sm:$0xff]  ;;  %s2278_s8 = sshll.u32 %s2365_s7, 4  ;;  %s2280_s11 = sshll.u32 %s4885_s5, 4  ;;  %s2279_s8 = int_to_ptr.vmem [resolvable:$true] %s2278_s8  ;;  %s2281_s11 = int_to_ptr.hbm [resolvable:$true] %s2280_s11 }
  0x18   :  { %v93_v44 = vld [vmem:[%s4880_s0 + $0x228] sm:$0xff]  ;;  %s2366_s14 = smov [#allocation4]   ;;  %s2291_s17 = sshll.u32 %s4886_s6, 4  ;;  %s2292_s17 = int_to_ptr.hbm [resolvable:$true] %s2291_s17 }
  0x1b   :  { %315 = vadd.xlane.f32.xlu2 %v314_v21  ;;  %312 = vadd.xlane.f32.xlu1 %v311_v22  ;;  %v67_v21 = vld [vmem:[%s4880_s0 + $0x158] sm:$0xff]  ;;  %v66_v22 = vld [vmem:[%s4880_s0 + $0x150] sm:$0xff] }
  0x1c   :  { %309 = vadd.xlane.f32.xlu0 %v308_v23  ;;  %v413_v23 = vsel %vm280_vm0, %v68_v20, 0.0  ;;  %v410_v24 = vsel %vm280_vm0, %v67_v21, 0.0  ;;  %v407_v25 = vsel %vm280_vm0, %v66_v22, 0.0  ;;  %v87_v20 = vld [vmem:[%s4880_s0 + $0x1f8] sm:$0xff]  ;;  %v476_v22 = vsel %vm280_vm0, %v89_v16, 0.0 }
  0x1d   :  { %v103_v16 = vld [vmem:[%s4880_s0 + $0x278] sm:$0xff] }
  0x23   :  { %324 = vadd.xlane.f32.xlu2 %v323_v27  ;;  %321 = vadd.xlane.f32.xlu1 %v320_v28  ;;  %v70_v27 = vld [vmem:[%s4880_s0 + $0x170] sm:$0xff] }
  0x24   :  { %318 = vadd.xlane.f32.xlu0 %v317_v29 }
  0x2b   :  { %333 = vadd.xlane.f32.xlu2 %v332_v33  ;;  %330 = vadd.xlane.f32.xlu1 %v329_v34  ;;  %v419_v33 = vsel %vm280_vm0, %v70_v27, 0.0  ;;  %v416_v34 = vsel %vm280_vm0, %v69_v30, 0.0 }
  0x2c   :  { %327 = vadd.xlane.f32.xlu0 %v326_v35  ;;  %v74_v35 = vld [vmem:[%s4880_s0 + $0x190] sm:$0xff] }
  0x33   :  { %342 = vadd.xlane.f32.xlu2 %v341_v39  ;;  %339 = vadd.xlane.f32.xlu1 %v338_v40  ;;  %v72_v39 = vld [vmem:[%s4880_s0 + $0x180] sm:$0xff] }
  0x34   :  { %336 = vadd.xlane.f32.xlu0 %v335_v41  ;;  %v431_v41 = vsel %vm280_vm0, %v74_v35, 0.0  ;;  %v425_v43 = vsel %vm280_vm0, %v72_v39, 0.0  ;;  %v482_v35 = vsel %vm280_vm0, %v91_v26, 0.0  ;;  %v95_v39 = vld [vmem:[%s4880_s0 + $0x238] sm:$0xff] }
  0x3b   :  { %351 = vadd.xlane.f32.xlu2 %v350_v45  ;;  %348 = vadd.xlane.f32.xlu1 %v347_v46  ;;  %v76_v45 = vld [vmem:[%s4880_s0 + $0x1a0] sm:$0xff] }
  0x3c   :  { %345 = vadd.xlane.f32.xlu0 %v344_v47 }
  0x43   :  { %360 = vadd.xlane.f32.xlu2 %v359_v51  ;;  %357 = vadd.xlane.f32.xlu1 %v356_v52  ;;  %v437_v51 = vsel %vm280_vm0, %v76_v45, 0.0  ;;  %v434_v52 = vsel %vm280_vm0, %v75_v48, 0.0  ;;  %v494_v48 = vsel %vm280_vm0, %v95_v39, 0.0  ;;  %v105_v39 = vld [vmem:[%s4880_s0 + $0x288] sm:$0xff] }
  0x44   :  { %354 = vadd.xlane.f32.xlu0 %v353_v53  ;;  %v80_v53 = vld [vmem:[%s4880_s0 + $0x1c0] sm:$0xff] }
  0x4b   :  { %369 = vadd.xlane.f32.xlu2 %v368_v57  ;;  %366 = vadd.xlane.f32.xlu1 %v365_v58  ;;  %v78_v57 = vld [vmem:[%s4880_s0 + $0x1b0] sm:$0xff] }
  0x4c   :  { %363 = vadd.xlane.f32.xlu0 %v362_v59  ;;  %v449_v59 = vsel %vm280_vm0, %v80_v53, 0.0  ;;  %v443_v61 = vsel %vm280_vm0, %v78_v57, 0.0  ;;  %v97_v53 = vld [vmem:[%s4880_s0 + $0x248] sm:$0xff] }
  0x4d   :  { %v500_v62 = vsel %vm280_vm0, %v97_v53, 0.0 }
  0x53   :  { %378 = vadd.xlane.f32.xlu2 %v377_v63  ;;  %375 = vadd.xlane.f32.xlu1 %v374_v0  ;;  %v82_v63 = vld [vmem:[%s4880_s0 + $0x1d0] sm:$0xff] }
  0x54   :  { %372 = vadd.xlane.f32.xlu0 %v371_v1 }
  0x5b   :  { %387 = vadd.xlane.f32.xlu2 %v386_v5  ;;  %384 = vadd.xlane.f32.xlu1 %v383_v6  ;;  %v455_v5 = vsel %vm280_vm0, %v82_v63, 0.0  ;;  %v452_v6 = vsel %vm280_vm0, %v81_v2, 0.0  ;;  %v101_v2 = vld [vmem:[%s4880_s0 + $0x268] sm:$0xff] }
  0x5c   :  { %381 = vadd.xlane.f32.xlu0 %v380_v7  ;;  %v86_v7 = vld [vmem:[%s4880_s0 + $0x1f0] sm:$0xff] }
  0x63   :  { %396 = vadd.xlane.f32.xlu2 %v395_v11  ;;  %393 = vadd.xlane.f32.xlu1 %v392_v12  ;;  %v84_v11 = vld [vmem:[%s4880_s0 + $0x1e0] sm:$0xff] }
  0x64   :  { %390 = vadd.xlane.f32.xlu0 %v389_v13  ;;  %v467_v13 = vsel %vm280_vm0, %v86_v7, 0.0  ;;  %v461_v15 = vsel %vm280_vm0, %v84_v11, 0.0  ;;  %v99_v7 = vld [vmem:[%s4880_s0 + $0x258] sm:$0xff]  ;;  %v512_v11 = vsel %vm280_vm0, %v101_v2, 0.0 }
  0x6b   :  { %405 = vadd.xlane.f32.xlu2 %v404_v17  ;;  %402 = vadd.xlane.f32.xlu1 %v401_v18  ;;  %v88_v17 = vld [vmem:[%s4880_s0 + $0x200] sm:$0xff] }
  0x6c   :  { %399 = vadd.xlane.f32.xlu0 %v398_v19 }
  0x73   :  { %414 = vadd.xlane.f32.xlu2 %v413_v23  ;;  %411 = vadd.xlane.f32.xlu1 %v410_v24  ;;  %v473_v23 = vsel %vm280_vm0, %v88_v17, 0.0  ;;  %v470_v24 = vsel %vm280_vm0, %v87_v20, 0.0 }
  0x74   :  { %408 = vadd.xlane.f32.xlu0 %v407_v25  ;;  %v92_v25 = vld [vmem:[%s4880_s0 + $0x220] sm:$0xff] }
  0x76   :  { %v2588_v28 = vpop.xlane.xlu2 %294  ;;  %v2590_v29 = vpop.xlane.xlu1 %288 }
  0x77   :  { %v2595_v31 = vpop.xlane.xlu0 %282 }
  0x7b   :  { %423 = vadd.xlane.f32.xlu2 %v422_v32  ;;  %420 = vadd.xlane.f32.xlu1 %v419_v33  ;;  %v90_v32 = vld [vmem:[%s4880_s0 + $0x210] sm:$0xff] }
  0x7c   :  { %417 = vadd.xlane.f32.xlu0 %v416_v34  ;;  %v485_v34 = vsel %vm280_vm0, %v92_v25, 0.0  ;;  %v479_v36 = vsel %vm280_vm0, %v90_v32, 0.0  ;;  %v518_v25 = vsel %vm280_vm0, %v103_v16, 0.0  ;;  %v107_v32 = vld [vmem:[%s4880_s0 + $0x298] sm:$0xff] }
  0x7e   :  { %v2606_v37 = vpop.xlane.xlu2 %297  ;;  %v2608_v38 = vpop.xlane.xlu1 %291 }
  0x7f   :  { %v2613_v40 = vpop.xlane.xlu0 %285 }
  0x83   :  { %432 = vadd.xlane.f32.xlu2 %v431_v41  ;;  %429 = vadd.xlane.f32.xlu1 %v428_v42  ;;  %v94_v41 = vld [vmem:[%s4880_s0 + $0x230] sm:$0xff] }
  0x84   :  { %426 = vadd.xlane.f32.xlu0 %v425_v43 }
  0x86   :  { %v2624_v46 = vpop.xlane.xlu2 %306  ;;  %v2626_v47 = vpop.xlane.xlu1 %303 }
  0x87   :  { %v2631_v49 = vpop.xlane.xlu0 %300 }
  0x8b   :  { %441 = vadd.xlane.f32.xlu2 %v440_v50  ;;  %438 = vadd.xlane.f32.xlu1 %v437_v51  ;;  %v491_v50 = vsel %vm280_vm0, %v94_v41, 0.0  ;;  %v488_v51 = vsel %vm280_vm0, %v93_v44, 0.0  ;;  %v530_v44 = vsel %vm280_vm0, %v107_v32, 0.0  ;;  %v115_v32 = vld [vmem:[%s4880_s0 + $0x2d8] sm:$0xff] }
  0x8c   :  { %435 = vadd.xlane.f32.xlu0 %v434_v52  ;;  %v98_v52 = vld [vmem:[%s4880_s0 + $0x250] sm:$0xff] }
  0x8e   :  { %v2642_v55 = vpop.xlane.xlu2 %315  ;;  %v2644_v56 = vpop.xlane.xlu1 %312 }
  0x8f   :  { %v2649_v58 = vpop.xlane.xlu0 %309 }
  0x93   :  { %450 = vadd.xlane.f32.xlu2 %v449_v59  ;;  %447 = vadd.xlane.f32.xlu1 %v446_v60  ;;  %v96_v59 = vld [vmem:[%s4880_s0 + $0x240] sm:$0xff] }
  0x94   :  { %444 = vadd.xlane.f32.xlu0 %v443_v61  ;;  %v503_v61 = vsel %vm280_vm0, %v98_v52, 0.0  ;;  %v497_v63 = vsel %vm280_vm0, %v96_v59, 0.0  ;;  %v109_v52 = vld [vmem:[%s4880_s0 + $0x2a8] sm:$0xff] }
  0x95   :  { %v536_v2 = vsel %vm280_vm0, %v109_v52, 0.0 }
  0x96   :  { %v2660_v0 = vpop.xlane.xlu2 %324  ;;  %v2662_v1 = vpop.xlane.xlu1 %321 }
  0x97   :  { %v2667_v3 = vpop.xlane.xlu0 %318 }
  0x9b   :  { %459 = vadd.xlane.f32.xlu2 %v458_v4  ;;  %456 = vadd.xlane.f32.xlu1 %v455_v5  ;;  %v100_v4 = vld [vmem:[%s4880_s0 + $0x260] sm:$0xff] }
  0x9c   :  { %453 = vadd.xlane.f32.xlu0 %v452_v6 }
  0x9e   :  { %v2678_v9 = vpop.xlane.xlu2 %333  ;;  %v2680_v10 = vpop.xlane.xlu1 %330 }
  0x9f   :  { %v2685_v12 = vpop.xlane.xlu0 %327 }
  0xa3   :  { %468 = vadd.xlane.f32.xlu2 %v467_v13  ;;  %465 = vadd.xlane.f32.xlu1 %v464_v14  ;;  %v509_v13 = vsel %vm280_vm0, %v100_v4, 0.0  ;;  %v506_v14 = vsel %vm280_vm0, %v99_v7, 0.0  ;;  %v113_v7 = vld [vmem:[%s4880_s0 + $0x2c8] sm:$0xff] }
  0xa4   :  { %462 = vadd.xlane.f32.xlu0 %v461_v15  ;;  %v104_v15 = vld [vmem:[%s4880_s0 + $0x280] sm:$0xff] }
  0xa6   :  { %v2696_v18 = vpop.xlane.xlu2 %342  ;;  %v2698_v19 = vpop.xlane.xlu1 %339 }
  0xa7   :  { %v2703_v21 = vpop.xlane.xlu0 %336 }
  0xab   :  { %477 = vadd.xlane.f32.xlu2 %v476_v22  ;;  %474 = vadd.xlane.f32.xlu1 %v473_v23  ;;  %v102_v22 = vld [vmem:[%s4880_s0 + $0x270] sm:$0xff] }
  0xac   :  { %471 = vadd.xlane.f32.xlu0 %v470_v24  ;;  %v521_v24 = vsel %vm280_vm0, %v104_v15, 0.0  ;;  %v515_v26 = vsel %vm280_vm0, %v102_v22, 0.0  ;;  %v111_v15 = vld [vmem:[%s4880_s0 + $0x2b8] sm:$0xff]  ;;  %v548_v22 = vsel %vm280_vm0, %v113_v7, 0.0  ;;  %v117_v7 = vld [vmem:[%s4880_s0 + $0x2e8] sm:$0xff] }
  0xae   :  { %v2714_v27 = vpop.xlane.xlu2 %351  ;;  %v2716_v30 = vpop.xlane.xlu1 %348 }
  0xaf   :  { %4894 = vst [vmem:[#allocation8_spill] sm:$0xff] %v2714_v27  ;;  %v2721_v33 = vpop.xlane.xlu0 %345 }
  0xb0   :  { %4895 = vst [vmem:[#allocation9_spill] sm:$0xff] %v2716_v30 }
  0xb3   :  { %486 = vadd.xlane.f32.xlu2 %v485_v34  ;;  %483 = vadd.xlane.f32.xlu1 %v482_v35  ;;  %v106_v34 = vld [vmem:[%s4880_s0 + $0x290] sm:$0xff] }
  0xb4   :  { %480 = vadd.xlane.f32.xlu0 %v479_v36 }
  0xb6   :  { %v2732_v42 = vpop.xlane.xlu2 %360  ;;  %v2734_v43 = vpop.xlane.xlu1 %357 }
  0xb7   :  { %4896 = vst [vmem:[#allocation10_spill] sm:$0xff] %v2732_v42  ;;  %v2739_v45 = vpop.xlane.xlu0 %354 }
  0xb8   :  { %4897 = vst [vmem:[#allocation11_spill] sm:$0xff] %v2734_v43 }
  0xb9   :  { %4898 = vst [vmem:[#allocation12_spill] sm:$0xff] %v2739_v45 }
  0xbb   :  { %495 = vadd.xlane.f32.xlu2 %v494_v48  ;;  %492 = vadd.xlane.f32.xlu1 %v491_v50  ;;  %v527_v48 = vsel %vm280_vm0, %v106_v34, 0.0  ;;  %v524_v50 = vsel %vm280_vm0, %v105_v39, 0.0 }
  0xbc   :  { %489 = vadd.xlane.f32.xlu0 %v488_v51  ;;  %v110_v51 = vld [vmem:[%s4880_s0 + $0x2b0] sm:$0xff] }
  0xbe   :  { %v2750_v54 = vpop.xlane.xlu2 %369  ;;  %v2752_v57 = vpop.xlane.xlu1 %366 }
  0xbf   :  { %4899 = vst [vmem:[#allocation13_spill] sm:$0xff] %v2750_v54  ;;  %v2757_v60 = vpop.xlane.xlu0 %363 }
  0xc0   :  { %4900 = vst [vmem:[#allocation14_spill] sm:$0xff] %v2752_v57 }
  0xc1   :  { %4901 = vst [vmem:[#allocation15_spill] sm:$0xff] %v2757_v60 }
  0xc3   :  { %504 = vadd.xlane.f32.xlu2 %v503_v61  ;;  %501 = vadd.xlane.f32.xlu1 %v500_v62  ;;  %v108_v61 = vld [vmem:[%s4880_s0 + $0x2a0] sm:$0xff] }
  0xc4   :  { %498 = vadd.xlane.f32.xlu0 %v497_v63  ;;  %v539_v63 = vsel %vm280_vm0, %v110_v51, 0.0  ;;  %v533_v4 = vsel %vm280_vm0, %v108_v61, 0.0  ;;  %v554_v51 = vsel %vm280_vm0, %v115_v32, 0.0  ;;  %v119_v61 = vld [vmem:[%s4880_s0 + $0x2f8] sm:$0xff] }
  0xc6   :  { %v2768_v5 = vpop.xlane.xlu2 %378  ;;  %v2770_v6 = vpop.xlane.xlu1 %375 }
  0xc7   :  { %4902 = vst [vmem:[#allocation16_spill] sm:$0xff] %v2770_v6  ;;  %v2775_v8 = vpop.xlane.xlu0 %372  ;;  %v127_v6 = vld [vmem:[%s4880_s0 + $0x338] sm:$0xff] }
  0xc8   :  { %4903 = vst [vmem:[#allocation17_spill] sm:$0xff] %v2775_v8 }
  0xcb   :  { %513 = vadd.xlane.f32.xlu2 %v512_v11  ;;  %510 = vadd.xlane.f32.xlu1 %v509_v13  ;;  %v112_v11 = vld [vmem:[%s4880_s0 + $0x2c0] sm:$0xff] }
  0xcc   :  { %507 = vadd.xlane.f32.xlu0 %v506_v14 }
  0xce   :  { %v2786_v17 = vpop.xlane.xlu2 %387  ;;  %v2788_v20 = vpop.xlane.xlu1 %384 }
  0xcf   :  { %v2793_v23 = vpop.xlane.xlu0 %381 }
  0xd3   :  { %522 = vadd.xlane.f32.xlu2 %v521_v24  ;;  %519 = vadd.xlane.f32.xlu1 %v518_v25  ;;  %v545_v24 = vsel %vm280_vm0, %v112_v11, 0.0  ;;  %v542_v25 = vsel %vm280_vm0, %v111_v15, 0.0  ;;  %v566_v15 = vsel %vm280_vm0, %v119_v61, 0.0 }
  0xd4   :  { %516 = vadd.xlane.f32.xlu0 %v515_v26  ;;  %v116_v26 = vld [vmem:[%s4880_s0 + $0x2e0] sm:$0xff] }
  0xd6   :  { %v2804_v35 = vpop.xlane.xlu2 %396  ;;  %v2806_v36 = vpop.xlane.xlu1 %393 }
  0xd7   :  { %v2811_v41 = vpop.xlane.xlu0 %390 }
  0xdb   :  { %531 = vadd.xlane.f32.xlu2 %v530_v44  ;;  %528 = vadd.xlane.f32.xlu1 %v527_v48  ;;  %v114_v44 = vld [vmem:[%s4880_s0 + $0x2d0] sm:$0xff] }
  0xdc   :  { %525 = vadd.xlane.f32.xlu0 %v524_v50  ;;  %v557_v50 = vsel %vm280_vm0, %v116_v26, 0.0  ;;  %v551_v52 = vsel %vm280_vm0, %v114_v44, 0.0  ;;  %v121_v26 = vld [vmem:[%s4880_s0 + $0x308] sm:$0xff] }
  0xdd   :  { %v572_v61 = vsel %vm280_vm0, %v121_v26, 0.0 }
  0xde   :  { %v2822_v53 = vpop.xlane.xlu2 %405  ;;  %v2824_v59 = vpop.xlane.xlu1 %402 }
  0xdf   :  { %4904 = vst [vmem:[#allocation18_spill] sm:$0xff] %v2822_v53  ;;  %v2829_v62 = vpop.xlane.xlu0 %399 }
  0xe0   :  { %4905 = vst [vmem:[#allocation19_spill] sm:$0xff] %v2824_v59 }
  0xe1   :  { %4906 = vst [vmem:[#allocation20_spill] sm:$0xff] %v2829_v62 }
  0xe3   :  { %540 = vadd.xlane.f32.xlu2 %v539_v63  ;;  %537 = vadd.xlane.f32.xlu1 %v536_v2  ;;  %v118_v63 = vld [vmem:[%s4880_s0 + $0x2f0] sm:$0xff] }
  0xe4   :  { %534 = vadd.xlane.f32.xlu0 %v533_v4 }
  0xe6   :  { %v2840_v13 = vpop.xlane.xlu2 %414  ;;  %v2842_v14 = vpop.xlane.xlu1 %411 }
  0xe7   :  { %4907 = vst [vmem:[#allocation21_spill] sm:$0xff] %v2840_v13  ;;  %v2847_v16 = vpop.xlane.xlu0 %408 }
  0xe8   :  { %4908 = vst [vmem:[#allocation22_spill] sm:$0xff] %v2842_v14 }
  0xe9   :  { %4909 = vst [vmem:[#allocation23_spill] sm:$0xff] %v2847_v16 }
  0xeb   :  { %549 = vadd.xlane.f32.xlu2 %v548_v22  ;;  %546 = vadd.xlane.f32.xlu1 %v545_v24  ;;  %v563_v22 = vsel %vm280_vm0, %v118_v63, 0.0  ;;  %v560_v24 = vsel %vm280_vm0, %v117_v7, 0.0  ;;  %v125_v7 = vld [vmem:[%s4880_s0 + $0x328] sm:$0xff] }
  0xec   :  { %543 = vadd.xlane.f32.xlu0 %v542_v25  ;;  %v122_v25 = vld [vmem:[%s4880_s0 + $0x310] sm:$0xff] }
  0xee   :  { %v2858_v34 = vpop.xlane.xlu2 %423  ;;  %v2860_v39 = vpop.xlane.xlu1 %420 }
  0xef   :  { %4910 = vst [vmem:[#allocation24_spill] sm:$0xff] %v2858_v34  ;;  %v2865_v48 = vpop.xlane.xlu0 %417 }
  0xf0   :  { %4911 = vst [vmem:[#allocation25_spill] sm:$0xff] %v2860_v39 }
  0xf1   :  { %4912 = vst [vmem:[#allocation26_spill] sm:$0xff] %v2865_v48 }
  0xf3   :  { %558 = vadd.xlane.f32.xlu2 %v557_v50  ;;  %555 = vadd.xlane.f32.xlu1 %v554_v51  ;;  %v120_v50 = vld [vmem:[%s4880_s0 + $0x300] sm:$0xff] }
  0xf4   :  { %552 = vadd.xlane.f32.xlu0 %v551_v52  ;;  %v575_v52 = vsel %vm280_vm0, %v122_v25, 0.0  ;;  %v569_v63 = vsel %vm280_vm0, %v120_v50, 0.0  ;;  %v123_v25 = vld [vmem:[%s4880_s0 + $0x318] sm:$0xff]  ;;  %v584_v50 = vsel %vm280_vm0, %v125_v7, 0.0  ;;  %v126_v7 = vld [vmem:[%s4880_s0 + $0x330] sm:$0xff] }
  0xf6   :  { %v2876_v2 = vpop.xlane.xlu2 %432  ;;  %v2878_v4 = vpop.xlane.xlu1 %429 }
  0xf7   :  { %4913 = vst [vmem:[#allocation27_spill] sm:$0xff] %v2876_v2  ;;  %v2883_v11 = vpop.xlane.xlu0 %426  ;;  %v145_v2 = vld [vmem:[%s4880_s0 + $0x3c8] sm:$0xff] }
  0xf8   :  { %4914 = vst [vmem:[#allocation28_spill] sm:$0xff] %v2878_v4 }
  0xf9   :  { %4915 = vst [vmem:[#allocation29_spill] sm:$0xff] %v2883_v11 }
  0xfb   :  { %567 = vadd.xlane.f32.xlu2 %v566_v15  ;;  %564 = vadd.xlane.f32.xlu1 %v563_v22  ;;  %v124_v15 = vld [vmem:[%s4880_s0 + $0x320] sm:$0xff] }
  0xfc   :  { %561 = vadd.xlane.f32.xlu0 %v560_v24 }
  0xfe   :  { %v2894_v32 = vpop.xlane.xlu2 %441  ;;  %v2896_v44 = vpop.xlane.xlu1 %438 }
  0xff   :  { %4916 = vst [vmem:[#allocation30_spill] sm:$0xff] %v2894_v32  ;;  %v2901_v51 = vpop.xlane.xlu0 %435 }
 0x100   :  { %4917 = vst [vmem:[#allocation31_spill] sm:$0xff] %v2896_v44  ;;  %v142_v44 = vld [vmem:[%s4880_s0 + $0x3b0] sm:$0xff] }
 0x101   :  { %4918 = vst [vmem:[#allocation32_spill] sm:$0xff] %v2901_v51 }
 0x103   :  { %576 = vadd.xlane.f32.xlu2 %v575_v52  ;;  %573 = vadd.xlane.f32.xlu1 %v572_v61  ;;  %v581_v52 = vsel %vm280_vm0, %v124_v15, 0.0  ;;  %v578_v61 = vsel %vm280_vm0, %v123_v25, 0.0 }
 0x104   :  { %570 = vadd.xlane.f32.xlu0 %v569_v63  ;;  %v128_v63 = vld [vmem:[%s4880_s0 + $0x340] sm:$0xff] }
 0x105   :  { %v593_v25 = vsel %vm280_vm0, %v128_v63, 0.0 }
 0x106   :  { %v2912_v22 = vpop.xlane.xlu2 %450  ;;  %v2914_v24 = vpop.xlane.xlu1 %447 }
 0x107   :  { %4919 = vst [vmem:[#allocation33_spill] sm:$0xff] %v2912_v22  ;;  %v2919_v26 = vpop.xlane.xlu0 %444  ;;  %v139_v22 = vld [vmem:[%s4880_s0 + $0x398] sm:$0xff] }
 0x108   :  { %4920 = vst [vmem:[#allocation34_spill] sm:$0xff] %v2914_v24 }
 0x109   :  { %4921 = vst [vmem:[#allocation35_spill] sm:$0xff] %v2919_v26 }
 0x10b   :  { %585 = vadd.xlane.f32.xlu2 %v584_v50  ;;  %582 = vadd.xlane.f32.xlu1 %v581_v52  ;;  %v590_v50 = vsel %vm280_vm0, %v127_v6, 0.0  ;;  %v587_v52 = vsel %vm280_vm0, %v126_v7, 0.0  ;;  %v129_v6 = vld [vmem:[%s4880_s0 + $0x348] sm:$0xff] }
 0x10c   :  { %579 = vadd.xlane.f32.xlu0 %v578_v61  ;;  %v131_v61 = vld [vmem:[%s4880_s0 + $0x358] sm:$0xff] }
 0x10d   :  { %v602_v7 = vsel %vm280_vm0, %v131_v61, 0.0 }
 0x10e   :  { %v2930_v8 = vpop.xlane.xlu2 %459  ;;  %v2932_v57 = vpop.xlane.xlu1 %456 }
 0x10f   :  { %4922 = vst [vmem:[#allocation36_spill] sm:$0xff] %v2930_v8  ;;  %v2937_v15 = vpop.xlane.xlu0 %453  ;;  %v130_v8 = vld [vmem:[%s4880_s0 + $0x350] sm:$0xff] }
 0x110   :  { %4923 = vst [vmem:[#allocation37_spill] sm:$0xff] %v2932_v57 }
 0x111   :  { %4924 = vst [vmem:[#allocation38_spill] sm:$0xff] %v2937_v15  ;;  %v136_v15 = vld [vmem:[%s4880_s0 + $0x380] sm:$0xff] }
 0x113   :  { %594 = vadd.xlane.f32.xlu2 %v593_v25  ;;  %591 = vadd.xlane.f32.xlu1 %v590_v50  ;;  %v599_v25 = vsel %vm280_vm0, %v130_v8, 0.0  ;;  %v596_v50 = vsel %vm280_vm0, %v129_v6, 0.0  ;;  %v132_v8 = vld [vmem:[%s4880_s0 + $0x360] sm:$0xff] }
 0x114   :  { %588 = vadd.xlane.f32.xlu0 %v587_v52  ;;  %v134_v52 = vld [vmem:[%s4880_s0 + $0x370] sm:$0xff] }
 0x115   :  { %v611_v6 = vsel %vm280_vm0, %v134_v52, 0.0 }
 0x116   :  { %v2948_v57 = vpop.xlane.xlu2 %468  ;;  %v2950_v54 = vpop.xlane.xlu1 %465 }
 0x117   :  { %4925 = vst [vmem:[#allocation39_spill] sm:$0xff] %v2948_v57  ;;  %v2955_v63 = vpop.xlane.xlu0 %462  ;;  %v133_v57 = vld [vmem:[%s4880_s0 + $0x368] sm:$0xff] }
 0x118   :  { %4926 = vst [vmem:[#allocation40_spill] sm:$0xff] %v2950_v54 }
 0x119   :  { %4927 = vst [vmem:[#allocation41_spill] sm:$0xff] %v2955_v63 }
 0x11b   :  { %603 = vadd.xlane.f32.xlu2 %v602_v7  ;;  %600 = vadd.xlane.f32.xlu1 %v599_v25  ;;  %v608_v7 = vsel %vm280_vm0, %v133_v57, 0.0  ;;  %v605_v25 = vsel %vm280_vm0, %v132_v8, 0.0  ;;  %v135_v57 = vld [vmem:[%s4880_s0 + $0x378] sm:$0xff] }
 0x11c   :  { %597 = vadd.xlane.f32.xlu0 %v596_v50  ;;  %v137_v50 = vld [vmem:[%s4880_s0 + $0x388] sm:$0xff] }
 0x11d   :  { %v620_v8 = vsel %vm280_vm0, %v137_v50, 0.0 }
 0x11e   :  { %v2966_v54 = vpop.xlane.xlu2 %477  ;;  %v2968_v63 = vpop.xlane.xlu1 %474 }
 0x11f   :  { %v2973_v61 = vpop.xlane.xlu0 %471 }
 0x120   :  { %4928 = vst [vmem:[#allocation42_spill] sm:$0xff] %v2973_v61 }
 0x123   :  { %612 = vadd.xlane.f32.xlu2 %v611_v6  ;;  %609 = vadd.xlane.f32.xlu1 %v608_v7  ;;  %v617_v6 = vsel %vm280_vm0, %v136_v15, 0.0  ;;  %v614_v7 = vsel %vm280_vm0, %v135_v57, 0.0  ;;  %v138_v15 = vld [vmem:[%s4880_s0 + $0x390] sm:$0xff] }
 0x124   :  { %606 = vadd.xlane.f32.xlu0 %v605_v25  ;;  %v140_v25 = vld [vmem:[%s4880_s0 + $0x3a0] sm:$0xff] }
 0x125   :  { %v629_v57 = vsel %vm280_vm0, %v140_v25, 0.0 }
 0x126   :  { %v2984_v60 = vpop.xlane.xlu2 %486  ;;  %v2986_v61 = vpop.xlane.xlu1 %483 }
 0x127   :  { %4929 = vst [vmem:[#allocation43_spill] sm:$0xff] %v2984_v60  ;;  %v2991_v52 = vpop.xlane.xlu0 %480 }
 0x128   :  { %4930 = vst [vmem:[#allocation44_spill] sm:$0xff] %v2986_v61 }
 0x129   :  { %4931 = vst [vmem:[#allocation45_spill] sm:$0xff] %v2991_v52 }
 0x12b   :  { %621 = vadd.xlane.f32.xlu2 %v620_v8  ;;  %618 = vadd.xlane.f32.xlu1 %v617_v6  ;;  %v626_v8 = vsel %vm280_vm0, %v139_v22, 0.0  ;;  %v623_v6 = vsel %vm280_vm0, %v138_v15, 0.0  ;;  %v141_v22 = vld [vmem:[%s4880_s0 + $0x3a8] sm:$0xff] }
 0x12c   :  { %615 = vadd.xlane.f32.xlu0 %v614_v7  ;;  %v143_v7 = vld [vmem:[%s4880_s0 + $0x3b8] sm:$0xff] }
 0x12d   :  { %v638_v15 = vsel %vm280_vm0, %v143_v7, 0.0 }
 0x12e   :  { %v3002_v24 = vpop.xlane.xlu2 %495  ;;  %v3004_v26 = vpop.xlane.xlu1 %492 }
 0x12f   :  { %4932 = vst [vmem:[#allocation46_spill] sm:$0xff] %v3002_v24  ;;  %v3009_v50 = vpop.xlane.xlu0 %489 }
 0x130   :  { %4933 = vst [vmem:[#allocation47_spill] sm:$0xff] %v3004_v26 }
 0x131   :  { %4934 = vst [vmem:[#allocation48_spill] sm:$0xff] %v3009_v50 }
 0x133   :  { %630 = vadd.xlane.f32.xlu2 %v629_v57  ;;  %627 = vadd.xlane.f32.xlu1 %v626_v8  ;;  %v635_v57 = vsel %vm280_vm0, %v142_v44, 0.0  ;;  %v632_v8 = vsel %vm280_vm0, %v141_v22, 0.0  ;;  %v144_v44 = vld [vmem:[%s4880_s0 + $0x3c0] sm:$0xff] }
 0x134   :  { %624 = vadd.xlane.f32.xlu0 %v623_v6  ;;  %v146_v6 = vld [vmem:[%s4880_s0 + $0x3d0] sm:$0xff] }
 0x135   :  { %v647_v22 = vsel %vm280_vm0, %v146_v6, 0.0 }
 0x136   :  { %v3020_v32 = vpop.xlane.xlu2 %504  ;;  %v3022_v51 = vpop.xlane.xlu1 %501 }
 0x137   :  { %4935 = vst [vmem:[#allocation49_spill] sm:$0xff] %v3020_v32  ;;  %v3027_v25 = vpop.xlane.xlu0 %498 }
 0x138   :  { %4936 = vst [vmem:[#allocation50_spill] sm:$0xff] %v3022_v51 }
 0x139   :  { %4937 = vst [vmem:[#allocation51_spill] sm:$0xff] %v3027_v25 }
 0x13b   :  { %639 = vadd.xlane.f32.xlu2 %v638_v15  ;;  %636 = vadd.xlane.f32.xlu1 %v635_v57  ;;  %v644_v15 = vsel %vm280_vm0, %v145_v2, 0.0  ;;  %v641_v57 = vsel %vm280_vm0, %v144_v44, 0.0  ;;  %v147_v2 = vld [vmem:[%s4880_s0 + $0x3d8] sm:$0xff] }
 0x13c   :  { %633 = vadd.xlane.f32.xlu0 %v632_v8  ;;  %v149_v8 = vld [vmem:[%s4880_s0 + $0x3e8] sm:$0xff] }
 0x13d   :  { %v656_v44 = vsel %vm280_vm0, %v149_v8, 0.0 }
 0x13e   :  { %v3038_v11 = vpop.xlane.xlu2 %513  ;;  %v3040_v4 = vpop.xlane.xlu1 %510 }
 0x13f   :  { %4938 = vst [vmem:[#allocation52_spill] sm:$0xff] %v3038_v11  ;;  %v3045_v7 = vpop.xlane.xlu0 %507  ;;  %v148_v11 = vld [vmem:[%s4880_s0 + $0x3e0] sm:$0xff] }
 0x140   :  { %4939 = vst [vmem:[#allocation53_spill] sm:$0xff] %v3040_v4 }
 0x141   :  { %4940 = vst [vmem:[#allocation54_spill] sm:$0xff] %v3045_v7 }
 0x143   :  { %648 = vadd.xlane.f32.xlu2 %v647_v22  ;;  %645 = vadd.xlane.f32.xlu1 %v644_v15  ;;  %v653_v22 = vsel %vm280_vm0, %v148_v11, 0.0  ;;  %v650_v15 = vsel %vm280_vm0, %v147_v2, 0.0  ;;  %v150_v11 = vld [vmem:[%s4880_s0 + $0x3f0] sm:$0xff] }
 0x144   :  { %642 = vadd.xlane.f32.xlu0 %v641_v57  ;;  %v152_v57 = vld [vmem:[%s4880_s0 + $0x400] sm:$0xff] }
 0x145   :  { %v665_v2 = vsel %vm280_vm0, %v152_v57, 0.0 }
 0x146   :  { %v3056_v45 = vpop.xlane.xlu2 %522  ;;  %v3058_v4 = vpop.xlane.xlu1 %519 }
 0x147   :  { %4941 = vst [vmem:[#allocation55_spill] sm:$0xff] %v3056_v45  ;;  %v3063_v6 = vpop.xlane.xlu0 %516  ;;  %v151_v45 = vld [vmem:[%s4880_s0 + $0x3f8] sm:$0xff] }
 0x148   :  { %4942 = vst [vmem:[#allocation56_spill] sm:$0xff] %v3058_v4 }
 0x149   :  { %4943 = vst [vmem:[#allocation57_spill] sm:$0xff] %v3063_v6 }
 0x14b   :  { %657 = vadd.xlane.f32.xlu2 %v656_v44  ;;  %654 = vadd.xlane.f32.xlu1 %v653_v22  ;;  %v662_v44 = vsel %vm280_vm0, %v151_v45, 0.0  ;;  %v659_v22 = vsel %vm280_vm0, %v150_v11, 0.0  ;;  %v153_v45 = vld [vmem:[%s4880_s0 + $0x408] sm:$0xff] }
 0x14c   :  { %651 = vadd.xlane.f32.xlu0 %v650_v15  ;;  %v155_v15 = vld [vmem:[%s4880_s0 + $0x418] sm:$0xff] }
 0x14d   :  { %v674_v11 = vsel %vm280_vm0, %v155_v15, 0.0 }
 0x14e   :  { %v3074_v4 = vpop.xlane.xlu2 %531  ;;  %v3076_v6 = vpop.xlane.xlu1 %528 }
 0x14f   :  { %4944 = vst [vmem:[#allocation58_spill] sm:$0xff] %v3074_v4  ;;  %v3081_v8 = vpop.xlane.xlu0 %525  ;;  %v154_v4 = vld [vmem:[%s4880_s0 + $0x410] sm:$0xff] }
 0x150   :  { %4945 = vst [vmem:[#allocation59_spill] sm:$0xff] %v3076_v6 }
 0x151   :  { %4946 = vst [vmem:[#allocation60_spill] sm:$0xff] %v3081_v8 }
 0x153   :  { %666 = vadd.xlane.f32.xlu2 %v665_v2  ;;  %663 = vadd.xlane.f32.xlu1 %v662_v44  ;;  %v671_v2 = vsel %vm280_vm0, %v154_v4, 0.0  ;;  %v668_v44 = vsel %vm280_vm0, %v153_v45, 0.0  ;;  %v156_v4 = vld [vmem:[%s4880_s0 + $0x420] sm:$0xff] }
 0x154   :  { %660 = vadd.xlane.f32.xlu0 %v659_v22  ;;  %v158_v22 = vld [vmem:[%s4880_s0 + $0x430] sm:$0xff] }
 0x155   :  { %v683_v45 = vsel %vm280_vm0, %v158_v22, 0.0 }
 0x156   :  { %v3092_v6 = vpop.xlane.xlu2 %540  ;;  %v3094_v8 = vpop.xlane.xlu1 %537 }
 0x157   :  { %4947 = vst [vmem:[#allocation61_spill] sm:$0xff] %v3092_v6  ;;  %v3099_v57 = vpop.xlane.xlu0 %534  ;;  %v157_v6 = vld [vmem:[%s4880_s0 + $0x428] sm:$0xff] }
 0x158   :  { %4948 = vst [vmem:[#allocation62_spill] sm:$0xff] %v3094_v8 }
 0x159   :  { %4949 = vst [vmem:[#allocation63_spill] sm:$0xff] %v3099_v57 }
 0x15b   :  { %675 = vadd.xlane.f32.xlu2 %v674_v11  ;;  %672 = vadd.xlane.f32.xlu1 %v671_v2  ;;  %v680_v11 = vsel %vm280_vm0, %v157_v6, 0.0  ;;  %v2364_v2 = vmov 49.0   ;;  %v159_v6 = vld [vmem:[%s4880_s0 + $0x438] sm:$0xff] }
 0x15c   :  { %669 = vadd.xlane.f32.xlu0 %v668_v44  ;;  %2310 = vrcp.f32 %v2364_v2  ;;  %v677_v44 = vsel %vm280_vm0, %v156_v4, 0.0 }
 0x15e   :  { %v3110_v8 = vpop.xlane.xlu2 %549  ;;  %v3112_v57 = vpop.xlane.xlu1 %546 }
 0x15f   :  { %4950 = vst [vmem:[#allocation64_spill] sm:$0xff] %v3110_v8  ;;  %v3117_v15 = vpop.xlane.xlu0 %543  ;;  %v161_v8 = vld [vmem:[%s4880_s0 + $0x448] sm:$0xff] }
 0x160   :  { %4951 = vst [vmem:[#allocation65_spill] sm:$0xff] %v3112_v57  ;;  %v160_v57 = vld [vmem:[%s4880_s0 + $0x440] sm:$0xff] }
 0x161   :  { %4952 = vst [vmem:[#allocation66_spill] sm:$0xff] %v3117_v15  ;;  %v689_v2 = vsel %vm280_vm0, %v160_v57, 0.0  ;;  %v162_v57 = vld [vmem:[%s4880_s0 + $0x450] sm:$0xff] }
 0x162   :  { %v2311_v4 = vpop.eup %2310 }
 0x163   :  { %684 = vadd.xlane.f32.xlu2 %v683_v45  ;;  %681 = vadd.xlane.f32.xlu1 %v680_v11  ;;  %v692_v11 = vsel %vm280_vm0, %v161_v8, 0.0  ;;  %v1050_v43 = vmul.f32 49.0, %v2311_v4  ;;  %vm1054_vm1 = vweird.f32 %v2311_v4 }
 0x164   :  { %678 = vadd.xlane.f32.xlu0 %v677_v44  ;;  %v686_v44 = vsel %vm280_vm0, %v159_v6, 0.0 }
 0x165   :  { %v1051_v7 = vsub.f32 1.0, %v1050_v43  ;;  %v167_v43 = vld [vmem:[%s4880_s0 + $0x478] sm:$0xff] }
 0x166   :  { %v3128_v15 = vpop.xlane.xlu2 %558  ;;  %v3130_v22 = vpop.xlane.xlu1 %555 }
 0x167   :  { %4953 = vst [vmem:[#allocation67_spill] sm:$0xff] %v3128_v15  ;;  %v3135_v45 = vpop.xlane.xlu0 %552  ;;  %v164_v15 = vld [vmem:[%s4880_s0 + $0x460] sm:$0xff]  ;;  %v1052_v32 = vmul.f32 %v2311_v4, %v1051_v7  ;;  %v1604_v7 = vlaneseq }
 0x168   :  { %4954 = vst [vmem:[#allocation68_spill] sm:$0xff] %v3130_v22  ;;  %v163_v22 = vld [vmem:[%s4880_s0 + $0x458] sm:$0xff] }
 0x169   :  { %4955 = vst [vmem:[#allocation69_spill] sm:$0xff] %v3135_v45  ;;  %v3172_v34 = vand.u32 127, %v1604_v7 }
 0x16b   :  { %693 = vadd.xlane.f32.xlu2 %v692_v11  ;;  %690 = vadd.xlane.f32.xlu1 %v689_v2  ;;  %v701_v11 = vsel %vm280_vm0, %v164_v15, 0.0  ;;  %v698_v2 = vsel %vm280_vm0, %v163_v22, 0.0  ;;  %v165_v15 = vld [vmem:[%s4880_s0 + $0x468] sm:$0xff]  ;;  %v3177_v51 = vadd.s32 4294967288, %v3172_v34  ;;  %v3198_v25 = vadd.s32 4294967272, %v3172_v34 }
 0x16c   :  { %687 = vadd.xlane.f32.xlu0 %v686_v44  ;;  %v695_v44 = vsel %vm280_vm0, %v162_v57, 0.0  ;;  %v710_v57 = vsel %vm280_vm0, %v167_v43, 0.0  ;;  %v3272_v59 = vadd.s32 4294967216, %v3172_v34 }
 0x16e   :  { %v3146_v45 = vpop.xlane.xlu2 %567  ;;  %v3148_v8 = vpop.xlane.xlu1 %564 }
 0x16f   :  { %4956 = vst [vmem:[#allocation70_spill] sm:$0xff] %v3146_v45  ;;  %v3153_v6 = vpop.xlane.xlu0 %561  ;;  %v166_v45 = vld [vmem:[%s4880_s0 + $0x470] sm:$0xff] }
 0x170   :  { %4957 = vst [vmem:[#allocation71_spill] sm:$0xff] %v3148_v8  ;;  %v1053_v8 = vadd.f32 %v2311_v4, %v1052_v32 }
 0x171   :  { %4958 = vst [vmem:[#allocation72_spill] sm:$0xff] %v3153_v6 }
 0x173   :  { %702 = vadd.xlane.f32.xlu2 %v701_v11  ;;  %699 = vadd.xlane.f32.xlu1 %v698_v2  ;;  %v707_v11 = vsel %vm280_vm0, %v166_v45, 0.0  ;;  %v704_v2 = vsel %vm280_vm0, %v165_v15, 0.0  ;;  %v170_v45 = vld [vmem:[%s4880_s0 + $0x490] sm:$0xff]  ;;  %v168_v15 = vld [vmem:[%s4880_s0 + $0x480] sm:$0xff] }
 0x174   :  { %696 = vadd.xlane.f32.xlu0 %v695_v44  ;;  %v3170_v44 = vsel %vm1054_vm1, %v2311_v4, %v1053_v8  ;;  %v169_v4 = vld [vmem:[%s4880_s0 + $0x488] sm:$0xff]  ;;  %v719_v48 = vsel %vm280_vm0, %v170_v45, 0.0  ;;  %v713_v24 = vsel %vm280_vm0, %v168_v15, 0.0  ;;  %v3206_v45 = vadd.s32 4294967264, %v3172_v34 }
 0x175   :  { %v173_v15 = vld [vmem:[%s4880_s0 + $0x4a8] sm:$0xff]  ;;  %v1060_v30 = vmul.f32 %v3170_v44, %v2588_v28  ;;  %vm1665_vm1 = vcmask 1048512  }
 0x176   :  { %v577_v6 = vpop.xlane.xlu2 %576  ;;  %v574_v39 = vpop.xlane.xlu1 %573 }
 0x177   :  { %v571_v22 = vpop.xlane.xlu0 %570  ;;  %v1153_v32 = vmul.f32 %v3170_v44, %v574_v39  ;;  %v1154_v8 = vmul.f32 %v3170_v44, %v577_v6  ;;  %v716_v6 = vsel %vm280_vm0, %v169_v4, 0.0 }
 0x178   :  { %v1152_v42 = vmul.f32 %v3170_v44, %v571_v22 }
 0x179   :  { %v1823_v7 = vperm.slane %v1153_v32, %v3177_v51 }
 0x17a   :  { %v1822_v22 = vperm.slane %v1152_v42, %v3172_v34 }
 0x17b   :  { %711 = vadd.xlane.f32.xlu2 %v710_v57  ;;  %708 = vadd.xlane.f32.xlu1 %v707_v11  ;;  %v3192_v11 = vadd.s32 4294967280, %v3172_v34 }
 0x17c   :  { %705 = vadd.xlane.f32.xlu0 %v704_v2  ;;  %v1824_v13 = vsel %vm1609_vm2, %v1823_v7, %v1822_v22 }
 0x17d   :  { %v1825_v32 = vperm.slane %v1154_v8, %v3192_v11  ;;  %v172_v8 = vld [vmem:[%s4880_s0 + $0x4a0] sm:$0xff] }
 0x17e   :  { %v586_v43 = vpop.xlane.xlu2 %585  ;;  %v583_v39 = vpop.xlane.xlu1 %582 }
 0x17f   :  { %v580_v57 = vpop.xlane.xlu0 %579  ;;  %v1156_v42 = vmul.f32 %v3170_v44, %v583_v39  ;;  %v1157_v4 = vmul.f32 %v3170_v44, %v586_v43  ;;  %v3221_v43 = vadd.s32 4294967256, %v3172_v34 }
 0x180   :  { %v1155_v2 = vmul.f32 %v3170_v44, %v580_v57 }
 0x181   :  { %v1829_v39 = vperm.slane %v1156_v42, %v3206_v45  ;;  %v728_v42 = vsel %vm280_vm0, %v173_v15, 0.0 }
 0x182   :  { %v1827_v14 = vperm.slane %v1155_v2, %v3198_v25 }
 0x183   :  { %720 = vadd.xlane.f32.xlu2 %v719_v48  ;;  %717 = vadd.xlane.f32.xlu1 %v716_v6  ;;  %v1826_v48 = vsel %vm1613_vm3, %v1825_v32, %v1824_v13  ;;  %v3225_v6 = vadd.s32 4294967248, %v3172_v34  ;;  %v725_v13 = vsel %vm280_vm0, %v172_v8, 0.0  ;;  %v1831_v32 = vperm.slane %v1157_v4, %v3221_v43  ;;  %v176_v4 = vld [vmem:[%s4880_s0 + $0x4c0] sm:$0xff] }
 0x184   :  { %714 = vadd.xlane.f32.xlu0 %v713_v24  ;;  %v171_v24 = vld [vmem:[%s4880_s0 + $0x498] sm:$0xff]  ;;  %v1828_v57 = vsel %vm1617_vm4, %v1827_v14, %v1826_v48  ;;  %v3236_v48 = vadd.s32 4294967240, %v3172_v34 }
 0x185   :  { %v722_v50 = vsel %vm280_vm0, %v171_v24, 0.0  ;;  %v1830_v60 = vsel %vm4893_vm5, %v1829_v39, %v1828_v57  ;;  %v3250_v24 = vadd.s32 4294967232, %v3172_v34 }
 0x186   :  { %v595_v7 = vpop.xlane.xlu2 %594  ;;  %v592_v22 = vpop.xlane.xlu1 %591  ;;  %v1832_v39 = vsel %vm4892_vm6, %v1831_v32, %v1830_v60  ;;  %v1056_v60 = vmul.f32 %v3170_v44, %v2595_v31  ;;  %v1058_v31 = vmul.f32 %v3170_v44, %v2590_v29 }
 0x187   :  { %v589_v2 = vpop.xlane.xlu0 %588  ;;  %v1159_v16 = vmul.f32 %v3170_v44, %v592_v22  ;;  %v1160_v15 = vmul.f32 %v3170_v44, %v595_v7  ;;  %v1057_v22 = vmul.f32 %v3170_v44, %v2613_v40  ;;  %v737_v40 = vsel %vm280_vm0, %v176_v4, 0.0 }
 0x188   :  { %v1158_v26 = vmul.f32 %v3170_v44, %v589_v2  ;;  %v3259_v2 = vadd.s32 4294967224, %v3172_v34  ;;  %v1059_v4 = vmul.f32 %v3170_v44, %v2608_v38 }
 0x189   :  { %v1835_v8 = vperm.slane %v1159_v16, %v3236_v48  ;;  %v174_v16 = vld [vmem:[%s4880_s0 + $0x4b0] sm:$0xff]  ;;  %v1608_v61 = vperm.slane %v1057_v22, %v3177_v51 }
 0x18a   :  { %v1833_v14 = vperm.slane %v1158_v26, %v3225_v6  ;;  %v175_v26 = vld [vmem:[%s4880_s0 + $0x4b8] sm:$0xff]  ;;  %v731_v27 = vsel %vm280_vm0, %v174_v16, 0.0  ;;  %v178_v16 = vld [vmem:[%s4880_s0 + $0x4d0] sm:$0xff] }
 0x18b   :  { %729 = vadd.xlane.f32.xlu2 %v728_v42  ;;  %726 = vadd.xlane.f32.xlu1 %v725_v13  ;;  %v1837_v13 = vperm.slane %v1160_v15, %v3250_v24  ;;  %v743_v62 = vsel %vm280_vm0, %v178_v16, 0.0  ;;  %v1062_v16 = vmul.f32 %v3170_v44, %v2631_v49  ;;  %v3337_v49 = vadd.s32 4294967176, %v3172_v34 }
 0x18c   :  { %723 = vadd.xlane.f32.xlu0 %v722_v50  ;;  %v1834_v50 = vsel %vm4890_vm7, %v1833_v14, %v1832_v39  ;;  %v734_v39 = vsel %vm280_vm0, %v175_v26, 0.0 }
 0x18d   :  { %v1836_v53 = vsel %vm4887_vm8, %v1835_v8, %v1834_v50  ;;  %v1606_v8 = vperm.slane %v1056_v60, %v3172_v34  ;;  %v3282_v50 = vadd.s32 4294967208, %v3172_v34  ;;  %v3297_v60 = vadd.s32 4294967192, %v3172_v34 }
 0x18e   :  { %v604_v7 = vpop.xlane.xlu2 %603  ;;  %v601_v57 = vpop.xlane.xlu1 %600  ;;  %v1838_v22 = vsel %vm1637_vm9, %v1837_v13, %v1836_v53  ;;  %v1612_v53 = vperm.slane %v1058_v31, %v3192_v11 }
 0x18f   :  { %v598_v42 = vpop.xlane.xlu0 %597  ;;  %v1162_v32 = vmul.f32 %v3170_v44, %v601_v57  ;;  %v1163_v26 = vmul.f32 %v3170_v44, %v604_v7  ;;  %v3285_v57 = vadd.s32 4294967184, %v3172_v34  ;;  %v179_v7 = vld [vmem:[%s4880_s0 + $0x4d8] sm:$0xff] }
 0x190   :  { %v1161_v14 = vmul.f32 %v3170_v44, %v598_v42  ;;  %v3300_v42 = vadd.s32 4294967200, %v3172_v34  ;;  %v746_v52 = vsel %vm280_vm0, %v179_v7, 0.0 }
 0x191   :  { %v1841_v29 = vperm.slane %v1162_v32, %v3272_v59  ;;  %v177_v32 = vld [vmem:[%s4880_s0 + $0x4c8] sm:$0xff] }
 0x192   :  { %v1839_v15 = vperm.slane %v1161_v14, %v3259_v2  ;;  %v1616_v14 = vperm.slane %v1059_v4, %v3198_v25 }
 0x193   :  { %738 = vadd.xlane.f32.xlu2 %v737_v40  ;;  %735 = vadd.xlane.f32.xlu1 %v734_v39  ;;  %v1843_v39 = vperm.slane %v1163_v26, %v3282_v50 }
 0x194   :  { %732 = vadd.xlane.f32.xlu0 %v731_v27  ;;  %v1840_v38 = vsel %vm1641_vm10, %v1839_v15, %v1838_v22  ;;  %v1610_v27 = vsel %vm1609_vm2, %v1608_v61, %v1606_v8 }
 0x195   :  { %v1842_v8 = vsel %vm1645_vm11, %v1841_v29, %v1840_v38  ;;  %v1614_v4 = vsel %vm1613_vm3, %v1612_v53, %v1610_v27 }
 0x196   :  { %v613_v40 = vpop.xlane.xlu2 %612  ;;  %v610_v13 = vpop.xlane.xlu1 %609  ;;  %v1844_v7 = vsel %vm4889_vm12, %v1843_v39, %v1842_v8  ;;  %v1618_v28 = vsel %vm1617_vm4, %v1616_v14, %v1614_v4 }
 0x197   :  { %v1166_v31 = vmul.f32 %v3170_v44, %v613_v40  ;;  %v1165_v61 = vmul.f32 %v3170_v44, %v610_v13  ;;  %v607_v15 = vpop.xlane.xlu0 %606  ;;  %v740_v40 = vsel %vm280_vm0, %v177_v32, 0.0  ;;  %v1061_v13 = vmul.f32 %v3170_v44, %v2606_v37  ;;  %v182_v32 = vld [vmem:[%s4880_s0 + $0x4f0] sm:$0xff] }
 0x198   :  { %v1164_v22 = vmul.f32 %v3170_v44, %v607_v15  ;;  %v1620_v37 = vperm.slane %v1060_v30, %v3206_v45 }
 0x199   :  { %v1847_v26 = vperm.slane %v1165_v61, %v3297_v60  ;;  %v1849_v29 = vperm.slane %v1166_v31, %v3285_v57  ;;  %v180_v31 = vld [vmem:[%s4880_s0 + $0x4e0] sm:$0xff]  ;;  %v1063_v61 = vmul.f32 %v3170_v44, %v2626_v47 }
 0x19a   :  { %v1845_v38 = vperm.slane %v1164_v22, %v3300_v42  ;;  %v1622_v15 = vsel %vm4893_vm5, %v1620_v37, %v1618_v28  ;;  %v749_v47 = vsel %vm280_vm0, %v180_v31, 0.0  ;;  %v1064_v28 = vmul.f32 %v3170_v44, %v2624_v46  ;;  %v185_v46 = vld [vmem:[%s4880_s0 + $0x508] sm:$0xff] }
 0x19b   :  { %747 = vadd.xlane.f32.xlu2 %v746_v52  ;;  %744 = vadd.xlane.f32.xlu1 %v743_v62  ;;  %v181_v62 = vld [vmem:[%s4880_s0 + $0x4e8] sm:$0xff]  ;;  %v1624_v52 = vperm.slane %v1061_v13, %v3221_v43  ;;  %v755_v13 = vsel %vm280_vm0, %v182_v32, 0.0 }
 0x19c   :  { %v1846_v53 = vsel %vm4888_vm13, %v1845_v38, %v1844_v7  ;;  %741 = vadd.xlane.f32.xlu0 %v740_v40 }
 0x19d   :  { %v1848_v27 = vsel %vm1657_vm14, %v1847_v26, %v1846_v53  ;;  %v1628_v26 = vperm.slane %v1062_v16, %v3225_v6  ;;  %v1626_v53 = vsel %vm4892_vm6, %v1624_v52, %v1622_v15  ;;  %v1632_v16 = vperm.slane %v1063_v61, %v3236_v48  ;;  %v184_v52 = vld [vmem:[%s4880_s0 + $0x500] sm:$0xff] }
 0x19e   :  { %v622_v14 = vpop.xlane.xlu2 %621  ;;  %v619_v39 = vpop.xlane.xlu1 %618  ;;  %v1850_v30 = vsel %vm1661_vm15, %v1849_v29, %v1848_v27  ;;  %v752_v29 = vsel %vm280_vm0, %v181_v62, 0.0  ;;  %v1065_v27 = vmul.f32 %v3170_v44, %v2649_v58  ;;  %v1636_v58 = vperm.slane %v1064_v28, %v3250_v24 }
 0x19f   :  { %v1169_v8 = vmul.f32 %v3170_v44, %v622_v14  ;;  %v1168_v22 = vmul.f32 %v3170_v44, %v619_v39  ;;  %v616_v4 = vpop.xlane.xlu0 %615  ;;  %v1630_v62 = vsel %vm4890_vm7, %v1628_v26, %v1626_v53  ;;  %v1066_v39 = vmul.f32 %v3170_v44, %v2644_v56 }
 0x1a0   :  { %v1167_v40 = vmul.f32 %v3170_v44, %v616_v4  ;;  %v1634_v15 = vsel %vm4887_vm8, %v1632_v16, %v1630_v62  ;;  %v761_v56 = vsel %vm280_vm0, %v184_v52, 0.0  ;;  %v188_v52 = vld [vmem:[%s4880_s0 + $0x520] sm:$0xff] }
 0x1a1   :  { %v1854_v38 = vperm.slane %v1169_v8, %v3177_v51  ;;  %v1853_v7 = vperm.slane %v1168_v22, %v3172_v34  ;;  %v1640_v8 = vperm.slane %v1065_v27, %v3259_v2  ;;  %v1638_v28 = vsel %vm1637_vm9, %v1636_v58, %v1634_v15  ;;  %v187_v58 = vld [vmem:[%s4880_s0 + $0x518] sm:$0xff] }
 0x1a2   :  { %v1851_v37 = vperm.slane %v1167_v40, %v3337_v49  ;;  %v1068_v27 = vmul.f32 %v3170_v44, %v2667_v3  ;;  %v1069_v3 = vmul.f32 %v3170_v44, %v2662_v1  ;;  %v770_v1 = vsel %vm280_vm0, %v187_v58, 0.0 }
 0x1a3   :  { %v1855_v32 = vsel %vm1609_vm2, %v1854_v38, %v1853_v7  ;;  %756 = vadd.xlane.f32.xlu2 %v755_v13  ;;  %753 = vadd.xlane.f32.xlu1 %v752_v29  ;;  %v764_v13 = vsel %vm280_vm0, %v185_v46, 0.0  ;;  %v1067_v29 = vmul.f32 %v3170_v44, %v2642_v55  ;;  %v1642_v16 = vsel %vm1641_vm10, %v1640_v8, %v1638_v28 }
 0x1a4   :  { %v3365_v14 = vsel %vm1665_vm1, %v1851_v37, %v1850_v30  ;;  %750 = vadd.xlane.f32.xlu0 %v749_v47  ;;  %v183_v30 = vld [vmem:[%s4880_s0 + $0x4f8] sm:$0xff]  ;;  %v1644_v47 = vperm.slane %v1066_v39, %v3272_v59  ;;  %v1652_v15 = vperm.slane %v1068_v27, %v3300_v42  ;;  %v1072_v27 = vmul.f32 %v3170_v44, %v2680_v10  ;;  %v189_v10 = vld [vmem:[%s4880_s0 + $0x528] sm:$0xff] }
 0x1a5   :  { %v758_v7 = vsel %vm280_vm0, %v183_v30, 0.0  ;;  %v1648_v62 = vperm.slane %v1067_v29, %v3282_v50  ;;  %v186_v30 = vld [vmem:[%s4880_s0 + $0x510] sm:$0xff] }
 0x1a6   :  { %v631_v31 = vpop.xlane.xlu2 %630  ;;  %v628_v61 = vpop.xlane.xlu1 %627  ;;  %v1646_v39 = vsel %vm1645_vm11, %v1644_v47, %v1642_v16  ;;  %v767_v29 = vsel %vm280_vm0, %v186_v30, 0.0  ;;  %v1073_v16 = vmul.f32 %v3170_v44, %v2678_v9 }
 0x1a7   :  { %v1172_v22 = vmul.f32 %v3170_v44, %v631_v31  ;;  %v1171_v4 = vmul.f32 %v3170_v44, %v628_v61  ;;  %v625_v26 = vpop.xlane.xlu0 %624 }
 0x1a8   :  { %v1170_v40 = vmul.f32 %v3170_v44, %v625_v26 }
 0x1a9   :  { %v1858_v38 = vperm.slane %v1171_v4, %v3198_v25  ;;  %v1860_v53 = vperm.slane %v1172_v22, %v3206_v45 }
 0x1aa   :  { %v1856_v37 = vperm.slane %v1170_v40, %v3192_v11  ;;  %v773_v40 = vsel %vm280_vm0, %v188_v52, 0.0 }
 0x1ab   :  { %765 = vadd.xlane.f32.xlu2 %v764_v13  ;;  %762 = vadd.xlane.f32.xlu1 %v761_v56  ;;  %v1650_v13 = vsel %vm4889_vm12, %v1648_v62, %v1646_v39  ;;  %v190_v62 = vld [vmem:[%s4880_s0 + $0x530] sm:$0xff] }
 0x1ac   :  { %v1857_v55 = vsel %vm1613_vm3, %v1856_v37, %v1855_v32  ;;  %759 = vadd.xlane.f32.xlu0 %v758_v7  ;;  %v1656_v7 = vperm.slane %v1069_v3, %v3297_v60  ;;  %v1088_v3 = vmul.f32 %v3170_v44, %v2768_v5  ;;  %v1667_v5 = vperm.slane %v1072_v27, %v3172_v34  ;;  %v193_v27 = vld [vmem:[%s4880_s0 + $0x548] sm:$0xff] }
 0x1ad   :  { %v1859_v46 = vsel %vm1617_vm4, %v1858_v38, %v1857_v55  ;;  %v1070_v38 = vmul.f32 %v3170_v44, %v2660_v0  ;;  %v191_v55 = vld [vmem:[%s4880_s0 + $0x538] sm:$0xff] }
 0x1ae   :  { %v640_v31 = vpop.xlane.xlu2 %639  ;;  %v637_v32 = vpop.xlane.xlu1 %636  ;;  %v1861_v61 = vsel %vm4893_vm5, %v1860_v53, %v1859_v46  ;;  %v1654_v53 = vsel %vm4888_vm13, %v1652_v15, %v1650_v13  ;;  %v1074_v15 = vmul.f32 %v3170_v44, %v2703_v21 }
 0x1af   :  { %v1175_v8 = vmul.f32 %v3170_v44, %v640_v31  ;;  %v1174_v22 = vmul.f32 %v3170_v44, %v637_v32  ;;  %v634_v4 = vpop.xlane.xlu0 %633  ;;  %v1660_v46 = vperm.slane %v1070_v38, %v3285_v57  ;;  %v1658_v52 = vsel %vm1657_vm14, %v1656_v7, %v1654_v53 }
 0x1b0   :  { %v1173_v26 = vmul.f32 %v3170_v44, %v634_v4  ;;  %v1089_v31 = vmul.f32 %v3170_v44, %v2793_v23  ;;  %v779_v4 = vsel %vm280_vm0, %v190_v62, 0.0  ;;  %v3477_v53 = vmul.f32 %v3170_v44, %v2685_v12 }
 0x1b1   :  { %v1864_v56 = vperm.slane %v1174_v22, %v3225_v6  ;;  %v1866_v47 = vperm.slane %v1175_v8, %v3236_v48  ;;  %v782_v22 = vsel %vm280_vm0, %v191_v55, 0.0  ;;  %v3470_v7 = vsel %vm1661_vm15, %v1660_v46, %v1658_v52  ;;  %v192_v52 = vld [vmem:[%s4880_s0 + $0x540] sm:$0xff] }
 0x1b2   :  { %v1862_v28 = vperm.slane %v1173_v26, %v3221_v43  ;;  %v1668_v26 = vperm.slane %v1073_v16, %v3177_v51  ;;  %v1699_v38 = vperm.slane %v1089_v31, %v3177_v51  ;;  %v194_v16 = vld [vmem:[%s4880_s0 + $0x550] sm:$0xff]  ;;  %v1092_v55 = vmul.f32 %v3170_v44, %v2811_v41 }
 0x1b3   :  { %774 = vadd.xlane.f32.xlu2 %v773_v40  ;;  %771 = vadd.xlane.f32.xlu1 %v770_v1  ;;  %v776_v40 = vsel %vm280_vm0, %v189_v10, 0.0  ;;  %v1090_v1 = vmul.f32 %v3170_v44, %v2788_v20  ;;  %v791_v31 = vsel %vm280_vm0, %v194_v16, 0.0 }
 0x1b4   :  { %v1863_v37 = vsel %vm4892_vm6, %v1862_v28, %v1861_v61  ;;  %768 = vadd.xlane.f32.xlu0 %v767_v29  ;;  %v1698_v29 = vperm.slane %v1088_v3, %v3172_v34  ;;  %v1669_v28 = vsel %vm1609_vm2, %v1668_v26, %v1667_v5 }
 0x1b5   :  { %v1865_v0 = vsel %vm4890_vm7, %v1864_v56, %v1863_v37  ;;  %v1075_v56 = vmul.f32 %v3170_v44, %v2698_v19  ;;  %v1091_v19 = vmul.f32 %v3170_v44, %v2786_v17  ;;  %v1701_v12 = vperm.slane %v1090_v1, %v3192_v11 }
 0x1b6   :  { %v649_v58 = vpop.xlane.xlu2 %648  ;;  %v646_v39 = vpop.xlane.xlu1 %645  ;;  %v1867_v9 = vsel %vm4887_vm8, %v1866_v47, %v1865_v0  ;;  %v1670_v47 = vperm.slane %v1074_v15, %v3192_v11  ;;  %v3490_v0 = vmul.f32 %v3170_v44, %v2696_v18 }
 0x1b7   :  { %v1178_v32 = vmul.f32 %v3170_v44, %v649_v58  ;;  %v1177_v61 = vmul.f32 %v3170_v44, %v646_v39  ;;  %v643_v30 = vpop.xlane.xlu0 %642  ;;  %v1672_v58 = vperm.slane %v1075_v56, %v3198_v25  ;;  %v1700_v39 = vsel %vm1609_vm2, %v1699_v38, %v1698_v29 }
 0x1b8   :  { %v1176_v8 = vmul.f32 %v3170_v44, %v643_v30  ;;  %v1671_v3 = vsel %vm1613_vm3, %v1670_v47, %v1669_v28  ;;  %v1093_v30 = vmul.f32 %v3170_v44, %v2806_v36  ;;  %v1121_v36 = vmul.f32 %v3170_v44, %v2966_v54  ;;  %v197_v47 = vld [vmem:[%s4880_s0 + $0x568] sm:$0xff] }
 0x1b9   :  { %v1870_v23 = vperm.slane %v1177_v61, %v3259_v2  ;;  %v1872_v13 = vperm.slane %v1178_v32, %v3272_v59  ;;  %v788_v32 = vsel %vm280_vm0, %v193_v27, 0.0  ;;  %v1703_v61 = vperm.slane %v1091_v19, %v3198_v25  ;;  %v4960_v19 = vld [vmem:[#allocation20_spill] sm:$0xff] }
 0x1ba   :  { %v1868_v21 = vperm.slane %v1176_v8, %v3250_v24  ;;  %v785_v8 = vsel %vm280_vm0, %v192_v52, 0.0  ;;  %v1674_v1 = vperm.slane %v3490_v0, %v3206_v45  ;;  %v1094_v29 = vmul.f32 %v3170_v44, %v2804_v35 }
 0x1bb   :  { %783 = vadd.xlane.f32.xlu2 %v782_v22  ;;  %780 = vadd.xlane.f32.xlu1 %v779_v4  ;;  %v1702_v22 = vsel %vm1613_vm3, %v1701_v12, %v1700_v39  ;;  %v1705_v4 = vperm.slane %v1092_v55, %v3206_v45  ;;  %v195_v12 = vld [vmem:[%s4880_s0 + $0x558] sm:$0xff] }
 0x1bc   :  { %v1869_v20 = vsel %vm1637_vm9, %v1868_v21, %v1867_v9  ;;  %777 = vadd.xlane.f32.xlu0 %v776_v40  ;;  %v1077_v40 = vmul.f32 %v3170_v44, %v2721_v33  ;;  %v1120_v21 = vmul.f32 %v3170_v44, %v2968_v63  ;;  %v1707_v33 = vperm.slane %v1093_v30, %v3221_v43  ;;  %v196_v63 = vld [vmem:[%s4880_s0 + $0x560] sm:$0xff] }
 0x1bd   :  { %v1871_v37 = vsel %vm1641_vm10, %v1870_v23, %v1869_v20  ;;  %v1664_v23 = vperm.slane %v3477_v53, %v3337_v49  ;;  %v1704_v54 = vsel %vm1617_vm4, %v1703_v61, %v1702_v22  ;;  %v4959_v20 = vld [vmem:[#allocation9_spill] sm:$0xff]  ;;  %v4962_v61 = vld [vmem:[#allocation19_spill] sm:$0xff]  ;;  %v4970_v53 = vld [vmem:[#allocation22_spill] sm:$0xff] }
 0x1be   :  { %v658_v17 = vpop.xlane.xlu2 %657  ;;  %v655_v62 = vpop.xlane.xlu1 %654  ;;  %v1873_v46 = vsel %vm1645_vm11, %v1872_v13, %v1871_v37  ;;  %v1673_v13 = vsel %vm1617_vm4, %v1672_v58, %v1671_v3  ;;  %v3541_v28 = vmul.f32 %v3170_v44, %v4959_v20  ;;  %v1706_v35 = vsel %vm4893_vm5, %v1705_v4, %v1704_v54  ;;  %v199_v20 = vld [vmem:[%s4880_s0 + $0x578] sm:$0xff] }
 0x1bf   :  { %v1181_v18 = vmul.f32 %v3170_v44, %v658_v17  ;;  %v1180_v9 = vmul.f32 %v3170_v44, %v655_v62  ;;  %v652_v10 = vpop.xlane.xlu0 %651  ;;  %v1095_v37 = vmul.f32 %v3170_v44, %v4960_v19  ;;  %v1676_v55 = vperm.slane %v1077_v40, %v3221_v43  ;;  %v4961_v62 = vld [vmem:[#allocation45_spill] sm:$0xff]  ;;  %v4966_v19 = vld [vmem:[#allocation43_spill] sm:$0xff] }
 0x1c0   :  { %v1179_v41 = vmul.f32 %v3170_v44, %v652_v10  ;;  %v1761_v17 = vperm.slane %v1121_v36, %v3177_v51  ;;  %v1760_v39 = vperm.slane %v1120_v21, %v3172_v34  ;;  %v797_v10 = vsel %vm280_vm0, %v196_v63, 0.0  ;;  %v200_v63 = vld [vmem:[%s4880_s0 + $0x580] sm:$0xff] }
 0x1c1   :  { %v1876_v15 = vperm.slane %v1180_v9, %v3300_v42  ;;  %v1878_v26 = vperm.slane %v1181_v18, %v3297_v60  ;;  %v800_v9 = vsel %vm280_vm0, %v197_v47, 0.0  ;;  %v1709_v3 = vperm.slane %v1094_v29, %v3225_v6 }
 0x1c2   :  { %v1874_v5 = vperm.slane %v1179_v41, %v3282_v50  ;;  %v1708_v41 = vsel %vm4892_vm6, %v1707_v33, %v1706_v35  ;;  %v1096_v30 = vmul.f32 %v3170_v44, %v4962_v61  ;;  %v1675_v40 = vsel %vm4893_vm5, %v1674_v1, %v1673_v13 }
 0x1c3   :  { %792 = vadd.xlane.f32.xlu2 %v791_v31  ;;  %789 = vadd.xlane.f32.xlu1 %v788_v32  ;;  %v794_v32 = vsel %vm280_vm0, %v195_v12, 0.0  ;;  %v1678_v21 = vperm.slane %v3541_v28, %v3225_v6  ;;  %v1677_v54 = vsel %vm4892_vm6, %v1676_v55, %v1675_v40  ;;  %v1710_v1 = vsel %vm4890_vm7, %v1709_v3, %v1708_v41  ;;  %v198_v12 = vld [vmem:[%s4880_s0 + $0x570] sm:$0xff]  ;;  %v4968_v41 = vld [vmem:[#allocation23_spill] sm:$0xff] }
 0x1c4   :  { %v1875_v56 = vsel %vm4889_vm12, %v1874_v5, %v1873_v46  ;;  %786 = vadd.xlane.f32.xlu0 %v785_v8  ;;  %v1122_v46 = vmul.f32 %v3170_v44, %v4961_v62  ;;  %v4963_v8 = vld [vmem:[#allocation44_spill] sm:$0xff]  ;;  %v1713_v28 = vperm.slane %v1096_v30, %v3250_v24  ;;  %v803_v61 = vsel %vm280_vm0, %v198_v12, 0.0  ;;  %v4969_v40 = vld [vmem:[#allocation47_spill] sm:$0xff] }
 0x1c5   :  { %v1877_v38 = vsel %vm4888_vm13, %v1876_v15, %v1875_v56  ;;  %v1711_v15 = vperm.slane %v1095_v37, %v3236_v48  ;;  %v1123_v22 = vmul.f32 %v3170_v44, %v4963_v8  ;;  %v1762_v56 = vsel %vm1609_vm2, %v1761_v17, %v1760_v39  ;;  %v4967_v17 = vld [vmem:[#allocation48_spill] sm:$0xff]  ;;  %v4973_v12 = vld [vmem:[#allocation51_spill] sm:$0xff] }
 0x1c6   :  { %v667_v16 = vpop.xlane.xlu2 %666  ;;  %v664_v27 = vpop.xlane.xlu1 %663  ;;  %v1879_v0 = vsel %vm1657_vm14, %v1878_v26, %v1877_v38  ;;  %v4964_v26 = vld [vmem:[#allocation8_spill] sm:$0xff]  ;;  %v1763_v36 = vperm.slane %v1122_v46, %v3192_v11  ;;  %v4965_v38 = vld [vmem:[#allocation18_spill] sm:$0xff]  ;;  %v1124_v37 = vmul.f32 %v3170_v44, %v4966_v19  ;;  %v1125_v62 = vmul.f32 %v3170_v44, %v4967_v17 }
 0x1c7   :  { %v1183_v52 = vmul.f32 %v3170_v44, %v664_v27  ;;  %v661_v58 = vpop.xlane.xlu0 %660  ;;  %v3571_v5 = vmul.f32 %v3170_v44, %v4964_v26  ;;  %v1184_v29 = vmul.f32 %v3170_v44, %v667_v16  ;;  %v1097_v47 = vmul.f32 %v3170_v44, %v4965_v38 }
 0x1c8   :  { %v1182_v18 = vmul.f32 %v3170_v44, %v661_v58  ;;  %v1712_v35 = vsel %vm4887_vm8, %v1711_v15, %v1710_v1  ;;  %v1765_v16 = vperm.slane %v1123_v22, %v3198_v25  ;;  %v1764_v55 = vsel %vm1613_vm3, %v1763_v36, %v1762_v56 }
 0x1c9   :  { %v1882_v31 = vperm.slane %v1183_v52, %v3337_v49  ;;  %v1884_v39 = vperm.slane %v1184_v29, %v3172_v34  ;;  %v1715_v3 = vperm.slane %v1097_v47, %v3259_v2  ;;  %v1714_v30 = vsel %vm1637_vm9, %v1713_v28, %v1712_v35 }
 0x1ca   :  { %v1880_v4 = vperm.slane %v1182_v18, %v3285_v57  ;;  %v1767_v15 = vperm.slane %v1124_v37, %v3206_v45  ;;  %v1766_v26 = vsel %vm1617_vm4, %v1765_v16, %v1764_v55  ;;  %v1126_v36 = vmul.f32 %v3170_v44, %v4969_v40 }
 0x1cb   :  { %801 = vadd.xlane.f32.xlu2 %v800_v9  ;;  %798 = vadd.xlane.f32.xlu1 %v797_v10  ;;  %v809_v9 = vsel %vm280_vm0, %v200_v63, 0.0  ;;  %v806_v10 = vsel %vm280_vm0, %v199_v20, 0.0  ;;  %v1680_v56 = vperm.slane %v3571_v5, %v3236_v48  ;;  %v1679_v29 = vsel %vm4890_vm7, %v1678_v21, %v1677_v54  ;;  %v203_v5 = vld [vmem:[%s4880_s0 + $0x598] sm:$0xff]  ;;  %v202_v21 = vld [vmem:[%s4880_s0 + $0x590] sm:$0xff]  ;;  %v4972_v20 = vld [vmem:[#allocation46_spill] sm:$0xff] }
 0x1cc   :  { %v1881_v33 = vsel %vm1661_vm15, %v1880_v4, %v1879_v0  ;;  %795 = vadd.xlane.f32.xlu0 %v794_v32  ;;  %v3624_v4 = vsel %vm1665_vm1, %v1664_v23, %v3470_v7  ;;  %v1099_v7 = vmul.f32 %v3170_v44, %v4970_v53  ;;  %v1716_v23 = vsel %vm1641_vm10, %v1715_v3, %v1714_v30  ;;  %v4971_v54 = vld [vmem:[#allocation21_spill] sm:$0xff] }
 0x1cd   :  { %v3585_v13 = vsel %vm1665_vm1, %v1882_v31, %v1881_v33  ;;  %v1098_v31 = vmul.f32 %v3170_v44, %v4968_v41  ;;  %v1769_v33 = vperm.slane %v1125_v62, %v3221_v43  ;;  %v1100_v63 = vmul.f32 %v3170_v44, %v4971_v54 }
 0x1ce   :  { %v676_v27 = vpop.xlane.xlu2 %675  ;;  %v673_v0 = vpop.xlane.xlu1 %672  ;;  %v1127_v28 = vmul.f32 %v3170_v44, %v4972_v20  ;;  %v1768_v35 = vsel %vm4893_vm5, %v1767_v15, %v1766_v26  ;;  %v1128_v55 = vmul.f32 %v3170_v44, %v4973_v12  ;;  %v4979_v20 = vld [vmem:[#allocation49_spill] sm:$0xff] }
 0x1cf   :  { %v1187_v46 = vmul.f32 %v3170_v44, %v676_v27  ;;  %v1186_v52 = vmul.f32 %v3170_v44, %v673_v0  ;;  %v670_v58 = vpop.xlane.xlu0 %669  ;;  %v1717_v47 = vperm.slane %v1098_v31, %v3272_v59  ;;  %v201_v27 = vld [vmem:[%s4880_s0 + $0x588] sm:$0xff]  ;;  %v1771_v0 = vperm.slane %v1126_v36, %v3225_v6  ;;  %v4974_v31 = vld [vmem:[#allocation26_spill] sm:$0xff] }
 0x1d0   :  { %v1185_v18 = vmul.f32 %v3170_v44, %v670_v58  ;;  %v812_v41 = vsel %vm280_vm0, %v201_v27, 0.0  ;;  %v1775_v40 = vperm.slane %v1128_v55, %v3250_v24  ;;  %v4976_v36 = vld [vmem:[#allocation10_spill] sm:$0xff]  ;;  %v1721_v53 = vperm.slane %v1100_v63, %v3300_v42 }
 0x1d1   :  { %v1887_v32 = vperm.slane %v1186_v52, %v3192_v11  ;;  %v1889_v8 = vperm.slane %v1187_v46, %v3198_v25  ;;  %v1770_v52 = vsel %vm4892_vm6, %v1769_v33, %v1768_v35  ;;  %v3678_v33 = vmul.f32 %v3170_v44, %v4976_v36  ;;  %v204_v27 = vld [vmem:[%s4880_s0 + $0x5a0] sm:$0xff]  ;;  %v4983_v36 = vld [vmem:[#allocation12_spill] sm:$0xff] }
 0x1d2   :  { %v1885_v22 = vperm.slane %v1185_v18, %v3177_v51  ;;  %v815_v18 = vsel %vm280_vm0, %v202_v21, 0.0 }
 0x1d3   :  { %810 = vadd.xlane.f32.xlu2 %v809_v9  ;;  %807 = vadd.xlane.f32.xlu1 %v806_v10  ;;  %v1719_v9 = vperm.slane %v1099_v7, %v3282_v50  ;;  %v1718_v10 = vsel %vm1645_vm11, %v1717_v47, %v1716_v23  ;;  %v4977_v47 = vld [vmem:[#allocation24_spill] sm:$0xff] }
 0x1d4   :  { %v1886_v38 = vsel %vm1609_vm2, %v1885_v22, %v1884_v39  ;;  %804 = vadd.xlane.f32.xlu0 %v803_v61  ;;  %v818_v39 = vsel %vm280_vm0, %v203_v5, 0.0  ;;  %v1773_v61 = vperm.slane %v1127_v28, %v3236_v48  ;;  %v4975_v22 = vld [vmem:[#allocation50_spill] sm:$0xff]  ;;  %v4978_v5 = vld [vmem:[#allocation25_spill] sm:$0xff]  ;;  %v1130_v28 = vmul.f32 %v3170_v44, %v4979_v20  ;;  %v209_v20 = vld [vmem:[%s4880_s0 + $0x5c8] sm:$0xff] }
 0x1d5   :  { %v1888_v1 = vsel %vm1613_vm3, %v1887_v32, %v1886_v38  ;;  %v1101_v32 = vmul.f32 %v3170_v44, %v4974_v31  ;;  %v1129_v26 = vmul.f32 %v3170_v44, %v4975_v22  ;;  %v3681_v38 = vsel %vm4887_vm8, %v1680_v56, %v1679_v29  ;;  %v206_v56 = vld [vmem:[%s4880_s0 + $0x5b0] sm:$0xff]  ;;  %v205_v29 = vld [vmem:[%s4880_s0 + $0x5a8] sm:$0xff] }
 0x1d6   :  { %v685_v19 = vpop.xlane.xlu2 %684  ;;  %v682_v37 = vpop.xlane.xlu1 %681  ;;  %v1890_v16 = vsel %vm1617_vm4, %v1889_v8, %v1888_v1  ;;  %v1772_v8 = vsel %vm4890_vm7, %v1771_v0, %v1770_v52  ;;  %v1720_v23 = vsel %vm4889_vm12, %v1719_v9, %v1718_v10  ;;  %v3688_v1 = vmul.f32 %v3170_v44, %v4977_v47 }
 0x1d7   :  { %v1190_v17 = vmul.f32 %v3170_v44, %v685_v19  ;;  %v1189_v62 = vmul.f32 %v3170_v44, %v682_v37  ;;  %v679_v46 = vpop.xlane.xlu0 %678  ;;  %v1102_v21 = vmul.f32 %v3170_v44, %v4978_v5  ;;  %v1723_v63 = vperm.slane %v1101_v32, %v3297_v60 }
 0x1d8   :  { %v1188_v58 = vmul.f32 %v3170_v44, %v679_v46  ;;  %v1774_v35 = vsel %vm4887_vm8, %v1773_v61, %v1772_v8  ;;  %v1777_v0 = vperm.slane %v1129_v26, %v3259_v2  ;;  %v4980_v46 = vld [vmem:[#allocation54_spill] sm:$0xff]  ;;  %v1722_v10 = vsel %vm4888_vm13, %v1721_v53, %v1720_v23  ;;  %v4982_v26 = vld [vmem:[#allocation53_spill] sm:$0xff] }
 0x1d9   :  { %v1893_v3 = vperm.slane %v1189_v62, %v3221_v43  ;;  %v1895_v30 = vperm.slane %v1190_v17, %v3225_v6  ;;  %v1776_v12 = vsel %vm1637_vm9, %v1775_v40, %v1774_v35  ;;  %v1131_v52 = vmul.f32 %v3170_v44, %v4980_v46 }
 0x1da   :  { %v1891_v15 = vperm.slane %v1188_v58, %v3206_v45  ;;  %v1725_v9 = vperm.slane %v1102_v21, %v3285_v57  ;;  %v1724_v31 = vsel %vm1657_vm14, %v1723_v63, %v1722_v10  ;;  %v1779_v32 = vperm.slane %v1130_v28, %v3272_v59  ;;  %v4984_v21 = vld [vmem:[#allocation28_spill] sm:$0xff]  ;;  %v4986_v28 = vld [vmem:[#allocation27_spill] sm:$0xff] }
 0x1db   :  { %819 = vadd.xlane.f32.xlu2 %v818_v39  ;;  %816 = vadd.xlane.f32.xlu1 %v815_v18  ;;  %v827_v39 = vsel %vm280_vm0, %v206_v56, 0.0  ;;  %v824_v18 = vsel %vm280_vm0, %v205_v29, 0.0  ;;  %v1778_v22 = vsel %vm1641_vm10, %v1777_v0, %v1776_v12  ;;  %v1132_v40 = vmul.f32 %v3170_v44, %v4982_v26  ;;  %v4985_v56 = vld [vmem:[#allocation29_spill] sm:$0xff] }
 0x1dc   :  { %v1892_v7 = vsel %vm4893_vm5, %v1891_v15, %v1890_v16  ;;  %813 = vadd.xlane.f32.xlu0 %v812_v41  ;;  %v821_v41 = vsel %vm280_vm0, %v204_v27, 0.0  ;;  %v4981_v15 = vld [vmem:[#allocation11_spill] sm:$0xff]  ;;  %v3733_v53 = vmul.f32 %v3170_v44, %v4983_v36  ;;  %v1781_v23 = vperm.slane %v1131_v52, %v3282_v50 }
 0x1dd   :  { %v1894_v54 = vsel %vm4892_vm6, %v1893_v3, %v1892_v7  ;;  %v3726_v8 = vmul.f32 %v3170_v44, %v4981_v15  ;;  %v1727_v7 = vperm.slane %v3688_v1, %v3337_v49  ;;  %v1726_v5 = vsel %vm1661_vm15, %v1725_v9, %v1724_v31  ;;  %v208_v1 = vld [vmem:[%s4880_s0 + $0x5c0] sm:$0xff]  ;;  %v4989_v15 = vld [vmem:[#allocation56_spill] sm:$0xff] }
 0x1de   :  { %v694_v19 = vpop.xlane.xlu2 %693  ;;  %v691_v37 = vpop.xlane.xlu1 %690  ;;  %v1896_v16 = vsel %vm4890_vm7, %v1895_v30, %v1894_v54  ;;  %v1105_v54 = vmul.f32 %v3170_v44, %v4984_v21  ;;  %v1104_v29 = vmul.f32 %v3170_v44, %v4985_v56  ;;  %v3753_v35 = vmul.f32 %v3170_v44, %v4986_v28 }
 0x1df   :  { %v1193_v55 = vmul.f32 %v3170_v44, %v694_v19  ;;  %v1192_v17 = vmul.f32 %v3170_v44, %v691_v37  ;;  %v688_v62 = vpop.xlane.xlu0 %687  ;;  %v4987_v19 = vld [vmem:[#allocation52_spill] sm:$0xff]  ;;  %v836_v10 = vsel %vm280_vm0, %v209_v20, 0.0  ;;  %v1686_v36 = vperm.slane %v3678_v33, %v3272_v59  ;;  %v5003_v33 = vld [vmem:[#allocation62_spill] sm:$0xff] }
 0x1e0   :  { %v1191_v58 = vmul.f32 %v3170_v44, %v688_v62  ;;  %v1133_v37 = vmul.f32 %v3170_v44, %v4987_v19  ;;  %v4988_v62 = vld [vmem:[#allocation57_spill] sm:$0xff]  ;;  %v1729_v31 = vperm.slane %v1104_v29, %v3172_v34  ;;  %v1684_v21 = vperm.slane %v3726_v8, %v3259_v2  ;;  %v4990_v20 = vld [vmem:[#allocation32_spill] sm:$0xff]  ;;  %v212_v19 = vld [vmem:[%s4880_s0 + $0x5e0] sm:$0xff] }
 0x1e1   :  { %v1899_v3 = vperm.slane %v1192_v17, %v3250_v24  ;;  %v1901_v61 = vperm.slane %v1193_v55, %v3259_v2  ;;  %v207_v55 = vld [vmem:[%s4880_s0 + $0x5b8] sm:$0xff]  ;;  %v1783_v17 = vperm.slane %v1132_v40, %v3300_v42  ;;  %v1134_v46 = vmul.f32 %v3170_v44, %v4988_v62 }
 0x1e2   :  { %v1897_v30 = vperm.slane %v1191_v58, %v3236_v48  ;;  %v1728_v29 = vsel %vm1665_vm1, %v1727_v7, %v1726_v5  ;;  %vm4891_vm7 = vcmask 1044484  }
 0x1e3   :  { %828 = vadd.xlane.f32.xlu2 %v827_v39  ;;  %825 = vadd.xlane.f32.xlu1 %v824_v18 }
 0x1e4   :  { %v1898_v47 = vsel %vm4887_vm8, %v1897_v30, %v1896_v16  ;;  %822 = vadd.xlane.f32.xlu0 %v821_v41  ;;  %v1780_v16 = vsel %vm1645_vm11, %v1779_v32, %v1778_v22  ;;  %v1730_v41 = vperm.slane %v1105_v54, %v3177_v51  ;;  %v1785_v30 = vperm.slane %v1133_v37, %v3297_v60 }
 0x1e5   :  { %v1900_v63 = vsel %vm1637_vm9, %v1899_v3, %v1898_v47  ;;  %v1782_v18 = vsel %vm4889_vm12, %v1781_v23, %v1780_v16  ;;  %v833_v3 = vsel %vm280_vm0, %v208_v1, 0.0  ;;  %v1135_v22 = vmul.f32 %v3170_v44, %v4989_v15 }
 0x1e6   :  { %v703_v27 = vpop.xlane.xlu2 %702  ;;  %v700_v0 = vpop.xlane.xlu1 %699  ;;  %v1902_v12 = vsel %vm1641_vm10, %v1901_v61, %v1900_v63  ;;  %v830_v61 = vsel %vm280_vm0, %v207_v55, 0.0  ;;  %v1784_v23 = vsel %vm4888_vm13, %v1783_v17, %v1782_v18  ;;  %v1787_v47 = vperm.slane %v1134_v46, %v3285_v57 }
 0x1e7   :  { %v1196_v52 = vmul.f32 %v3170_v44, %v703_v27  ;;  %v1195_v58 = vmul.f32 %v3170_v44, %v700_v0  ;;  %v697_v39 = vpop.xlane.xlu0 %696  ;;  %v1682_v54 = vperm.slane %v3733_v53, %v3250_v24  ;;  %vm2132_vm8 = vcmask 1041409   ;;  %v211_v53 = vld [vmem:[%s4880_s0 + $0x5d8] sm:$0xff]  ;;  %v210_v0 = vld [vmem:[%s4880_s0 + $0x5d0] sm:$0xff] }
 0x1e8   :  { %v1194_v9 = vmul.f32 %v3170_v44, %v697_v39  ;;  %v1732_v63 = vperm.slane %v3753_v35, %v3192_v11  ;;  %v1107_v1 = vmul.f32 %v3170_v44, %v4990_v20  ;;  %v1731_v37 = vsel %vm1609_vm2, %v1730_v41, %v1729_v31 }
 0x1e9   :  { %v1905_v32 = vperm.slane %v1195_v58, %v3282_v50  ;;  %v1907_v26 = vperm.slane %v1196_v52, %v3300_v42  ;;  %v1789_v7 = vperm.slane %v1135_v22, %v3337_v49  ;;  %v1786_v5 = vsel %vm1657_vm14, %v1785_v30, %v1784_v23  ;;  %v4992_v58 = vld [vmem:[#allocation31_spill] sm:$0xff] }
 0x1ea   :  { %v1903_v40 = vperm.slane %v1194_v9, %v3272_v59  ;;  %v1788_v17 = vsel %vm1661_vm15, %v1787_v47, %v1786_v5  ;;  %v1108_v39 = vmul.f32 %v3170_v44, %v4992_v58  ;;  %v845_v9 = vsel %vm280_vm0, %v212_v19, 0.0  ;;  %v4995_v19 = vld [vmem:[#allocation35_spill] sm:$0xff] }
 0x1eb   :  { %837 = vadd.xlane.f32.xlu2 %v836_v10  ;;  %834 = vadd.xlane.f32.xlu1 %v833_v3  ;;  %v842_v10 = vsel %vm280_vm0, %v211_v53, 0.0  ;;  %v1734_v3 = vperm.slane %v1107_v1, %v3198_v25  ;;  %v839_v31 = vsel %vm280_vm0, %v210_v0, 0.0  ;;  %v1790_v30 = vsel %vm1665_vm1, %v1789_v7, %v1788_v17  ;;  %v4996_v0 = vld [vmem:[#allocation59_spill] sm:$0xff] }
 0x1ec   :  { %v1904_v56 = vsel %vm1645_vm11, %v1903_v40, %v1902_v12  ;;  %831 = vadd.xlane.f32.xlu0 %v830_v61  ;;  %v4991_v12 = vld [vmem:[#allocation30_spill] sm:$0xff]  ;;  %v1733_v40 = vsel %vm1613_vm3, %v1732_v63, %v1731_v37  ;;  %v2133_v23 = vsel %vm2132_vm8, %v1728_v29, %v3624_v4  ;;  %v217_v29 = vld [vmem:[%s4880_s0 + $0x608] sm:$0xff]  ;;  %v1110_v53 = vmul.f32 %v3170_v44, %v4995_v19 }
 0x1ed   :  { %v1906_v28 = vsel %vm4889_vm12, %v1905_v32, %v1904_v56  ;;  %v3810_v55 = vmul.f32 %v3170_v44, %v4991_v12  ;;  %v4993_v32 = vld [vmem:[#allocation55_spill] sm:$0xff]  ;;  %vm2136_vm12 = vcmask 1043459   ;;  %v4994_v56 = vld [vmem:[#allocation60_spill] sm:$0xff]  ;;  %v1138_v12 = vmul.f32 %v3170_v44, %v4996_v0 }
 0x1ee   :  { %v712_v35 = vpop.xlane.xlu2 %711  ;;  %v709_v16 = vpop.xlane.xlu1 %708  ;;  %v1908_v27 = vsel %vm4888_vm13, %v1907_v26, %v1906_v28  ;;  %vm2134_vm13 = vcmask 1042434   ;;  %v1136_v61 = vmul.f32 %v3170_v44, %v4993_v32  ;;  %v1683_v26 = vsel %vm1637_vm9, %v1682_v54, %v3681_v38  ;;  %v216_v28 = vld [vmem:[%s4880_s0 + $0x600] sm:$0xff] }
 0x1ef   :  { %v1199_v62 = vmul.f32 %v3170_v44, %v712_v35  ;;  %v1198_v46 = vmul.f32 %v3170_v44, %v709_v16  ;;  %v706_v52 = vpop.xlane.xlu0 %705  ;;  %v1738_v47 = vperm.slane %v3810_v55, %v3221_v43  ;;  %v1137_v20 = vmul.f32 %v3170_v44, %v4994_v56  ;;  %v213_v16 = vld [vmem:[%s4880_s0 + $0x5e8] sm:$0xff] }
 0x1f0   :  { %v1197_v18 = vmul.f32 %v3170_v44, %v706_v52  ;;  %v1736_v38 = vperm.slane %v1108_v39, %v3206_v45  ;;  %v1735_v54 = vsel %vm1617_vm4, %v1734_v3, %v1733_v40  ;;  %v2135_v63 = vsel %vm2134_vm13, %v1790_v30, %v2133_v23  ;;  %v4999_v56 = vld [vmem:[#allocation63_spill] sm:$0xff] }
 0x1f1   :  { %v1911_v41 = vperm.slane %v1198_v46, %v3285_v57  ;;  %v1913_v15 = vperm.slane %v1199_v62, %v3337_v49  ;;  %v1791_v37 = vperm.slane %v1136_v61, %v3172_v34  ;;  %v2137_v7 = vsel %vm2136_vm12, %v3365_v14, %v2135_v63  ;;  %v4998_v61 = vld [vmem:[#allocation58_spill] sm:$0xff] }
 0x1f2   :  { %v1909_v22 = vperm.slane %v1197_v18, %v3297_v60  ;;  %v1792_v14 = vperm.slane %v1137_v20, %v3177_v51  ;;  %v860_v58 = vsel %vm280_vm0, %v217_v29, 0.0  ;;  %v857_v39 = vsel %vm280_vm0, %v216_v28, 0.0  ;;  %v4997_v18 = vld [vmem:[#allocation34_spill] sm:$0xff]  ;;  %v5001_v28 = vld [vmem:[#allocation15_spill] sm:$0xff] }
 0x1f3   :  { %846 = vadd.xlane.f32.xlu2 %v845_v9  ;;  %843 = vadd.xlane.f32.xlu1 %v842_v10  ;;  %v1111_v9 = vmul.f32 %v3170_v44, %v4997_v18  ;;  %v1740_v32 = vperm.slane %v1110_v53, %v3225_v6  ;;  %v1139_v30 = vmul.f32 %v3170_v44, %v4998_v61  ;;  %v5005_v18 = vld [vmem:[#allocation38_spill] sm:$0xff] }
 0x1f4   :  { %v1910_v1 = vsel %vm1657_vm14, %v1909_v22, %v1908_v27  ;;  %840 = vadd.xlane.f32.xlu0 %v839_v31  ;;  %v1737_v31 = vsel %vm4893_vm5, %v1736_v38, %v1735_v54  ;;  %v1685_v22 = vsel %vm1641_vm10, %v1684_v21, %v1683_v26  ;;  %v1794_v40 = vperm.slane %v1138_v12, %v3192_v11  ;;  %v5000_v38 = vld [vmem:[#allocation33_spill] sm:$0xff]  ;;  %v249_v26 = vld [vmem:[%s4880_s0 + $0x708] sm:$0xff] }
 0x1f5   :  { %v1912_v4 = vsel %vm1661_vm15, %v1911_v41, %v1910_v1  ;;  %v848_v41 = vsel %vm280_vm0, %v213_v16, 0.0  ;;  %v1793_v23 = vsel %vm1609_vm2, %v1792_v14, %v1791_v37  ;;  %v1140_v20 = vmul.f32 %v3170_v44, %v4999_v56 }
 0x1f6   :  { %v721_v5 = vpop.xlane.xlu2 %720  ;;  %v718_v35 = vpop.xlane.xlu1 %717  ;;  %v1914_v27 = vsel %vm1665_vm1, %v1913_v15, %v1912_v4  ;;  %v1112_v54 = vmul.f32 %v3170_v44, %v5000_v38  ;;  %v1742_v63 = vperm.slane %v1111_v9, %v3236_v48  ;;  %v1739_v8 = vsel %vm4892_vm6, %v1738_v47, %v1737_v31  ;;  %v248_v4 = vld [vmem:[%s4880_s0 + $0x700] sm:$0xff] }
 0x1f7   :  { %v1202_v55 = vmul.f32 %v3170_v44, %v721_v5  ;;  %v1201_v17 = vmul.f32 %v3170_v44, %v718_v35  ;;  %v715_v62 = vpop.xlane.xlu0 %714  ;;  %v3862_v46 = vsel %vm4891_vm7, %v1914_v27, %v2137_v7  ;;  %v3902_v29 = vsel %vm1645_vm11, %v1686_v36, %v1685_v22  ;;  %v218_v5 = vld [vmem:[%s4880_s0 + $0x610] sm:$0xff]  ;;  %v5008_v22 = vld [vmem:[#allocation13_spill] sm:$0xff] }
 0x1f8   :  { %v1200_v52 = vmul.f32 %v3170_v44, %v715_v62  ;;  %v3906_v19 = vmul.f32 %v3170_v44, %v5001_v28  ;;  %vm5002_vm7 = vcmask 458112   ;;  %v1796_v53 = vperm.slane %v1139_v30, %v3198_v25  ;;  %v5007_v30 = vld [vmem:[#allocation66_spill] sm:$0xff] }
 0x1f9   :  { %v1918_v10 = vperm.slane %v1202_v55, %v3192_v11  ;;  %v1916_v3 = vperm.slane %v1201_v17, %v3177_v51  ;;  %v1741_v47 = vsel %vm5002_vm7, %v1740_v32, %v1739_v8  ;;  %v1795_v35 = vsel %vm1613_vm3, %v1794_v40, %v1793_v23  ;;  %v5009_v23 = vld [vmem:[#allocation14_spill] sm:$0xff] }
 0x1fa   :  { %v1915_v15 = vperm.slane %v1200_v52, %v3172_v34  ;;  %v1141_v36 = vmul.f32 %v3170_v44, %v5003_v33  ;;  %v1798_v12 = vperm.slane %v1140_v20, %v3206_v45  ;;  %v956_v17 = vsel %vm280_vm0, %v249_v26, 0.0  ;;  %v232_v28 = vld [vmem:[%s4880_s0 + $0x680] sm:$0xff] }
 0x1fb   :  { %861 = vadd.xlane.f32.xlu2 %v860_v58  ;;  %858 = vadd.xlane.f32.xlu1 %v857_v39  ;;  %v953_v62 = vsel %vm280_vm0, %v248_v4, 0.0  ;;  %v1744_v14 = vperm.slane %v1112_v54, %v3250_v24  ;;  %vm5004_vm7 = vcmask 523712   ;;  %v863_v39 = vsel %vm280_vm0, %v218_v5, 0.0  ;;  %v5010_v54 = vld [vmem:[#allocation37_spill] sm:$0xff]  ;;  %v233_v4 = vld [vmem:[%s4880_s0 + $0x688] sm:$0xff] }
 0x1fc   :  { %v1917_v1 = vsel %vm1609_vm2, %v1916_v3, %v1915_v15  ;;  %849 = vadd.xlane.f32.xlu0 %v848_v41  ;;  %v1743_v52 = vsel %vm5004_vm7, %v1742_v63, %v1741_v47  ;;  %v1113_v9 = vmul.f32 %v3170_v44, %v5005_v18  ;;  %v1800_v32 = vperm.slane %v1141_v36, %v3221_v43 }
 0x1fd   :  { %v1919_v21 = vsel %vm1613_vm3, %v1918_v10, %v1917_v1  ;;  %v5006_v10 = vld [vmem:[#allocation61_spill] sm:$0xff]  ;;  %v1797_v61 = vsel %vm1617_vm4, %v1796_v53, %v1795_v35  ;;  %v1143_v15 = vmul.f32 %v3170_v44, %v5007_v30  ;;  %v3938_v40 = vmul.f32 %v3170_v44, %v5008_v22 }
 0x1fe   :  { %v730_v37 = vpop.xlane.xlu2 %729  ;;  %v727_v7 = vpop.xlane.xlu1 %726  ;;  %v1142_v3 = vmul.f32 %v3170_v44, %v5006_v10  ;;  %v3942_v56 = vmul.f32 %v3170_v44, %v5009_v23  ;;  %v1799_v20 = vsel %vm4893_vm5, %v1798_v12, %v1797_v61  ;;  %v1688_v38 = vperm.slane %v3906_v19, %v3282_v50  ;;  %v5011_v19 = vld [vmem:[#allocation65_spill] sm:$0xff]  ;;  %v5012_v12 = vld [vmem:[#allocation36_spill] sm:$0xff] }
 0x1ff   :  { %v1205_v16 = vmul.f32 %v3170_v44, %v730_v37  ;;  %v1204_v27 = vmul.f32 %v3170_v44, %v727_v7  ;;  %v724_v0 = vpop.xlane.xlu0 %723  ;;  %v1114_v63 = vmul.f32 %v3170_v44, %v5010_v54  ;;  %v1745_v8 = vsel %vm1637_vm9, %v1744_v14, %v1743_v52  ;;  %v219_v35 = vld [vmem:[%s4880_s0 + $0x618] sm:$0xff] }
 0x200   :  { %v1203_v55 = vmul.f32 %v3170_v44, %v724_v0  ;;  %v1802_v47 = vperm.slane %v1142_v3, %v3225_v6  ;;  %v1144_v53 = vmul.f32 %v3170_v44, %v5011_v19  ;;  %v1801_v33 = vsel %vm4892_vm6, %v1800_v32, %v1799_v20  ;;  %v5016_v30 = vld [vmem:[#allocation69_spill] sm:$0xff] }
 0x201   :  { %v1922_v58 = vperm.slane %v1204_v27, %v3206_v45  ;;  %v1924_v41 = vperm.slane %v1205_v16, %v3221_v43  ;;  %v1804_v36 = vperm.slane %v1143_v15, %v3236_v48  ;;  %v905_v14 = vsel %vm280_vm0, %v232_v28, 0.0  ;;  %v5019_v54 = vld [vmem:[#allocation17_spill] sm:$0xff] }
 0x202   :  { %v1920_v31 = vperm.slane %v1203_v55, %v3198_v25  ;;  %v1115_v55 = vmul.f32 %v3170_v44, %v5012_v12  ;;  %v1748_v52 = vperm.slane %v1114_v63, %v3272_v59  ;;  %v1806_v10 = vperm.slane %v1144_v53, %v3250_v24 }
 0x203   :  { %957 = vadd.xlane.f32.xlu2 %v956_v17  ;;  %954 = vadd.xlane.f32.xlu1 %v953_v62  ;;  %v908_v62 = vsel %vm280_vm0, %v233_v4, 0.0  ;;  %vm5014_vm7 = vcmask 458112   ;;  %v1146_v15 = vmul.f32 %v3170_v44, %v5016_v30  ;;  %v1692_v22 = vperm.slane %v3938_v40, %v3297_v60 }
 0x204   :  { %v1921_v1 = vsel %vm1617_vm4, %v1920_v31, %v1919_v21  ;;  %864 = vadd.xlane.f32.xlu0 %v863_v39  ;;  %v1746_v21 = vperm.slane %v1113_v9, %v3259_v2  ;;  %v866_v9 = vsel %vm280_vm0, %v219_v35, 0.0  ;;  %v1803_v3 = vsel %vm5014_vm7, %v1802_v47, %v1801_v33 }
 0x205   :  { %v1923_v26 = vsel %vm4893_vm5, %v1922_v58, %v1921_v1  ;;  %v5013_v58 = vld [vmem:[#allocation64_spill] sm:$0xff]  ;;  %v1690_v23 = vperm.slane %v3942_v56, %v3300_v42  ;;  %vm5017_vm7 = vcmask 786112   ;;  %vm5018_vm5 = vcmask 458112  }
 0x206   :  { %v739_v37 = vpop.xlane.xlu2 %738  ;;  %v736_v7 = vpop.xlane.xlu1 %735  ;;  %v1925_v5 = vsel %vm4892_vm6, %v1924_v41, %v1923_v26  ;;  %v1145_v39 = vmul.f32 %v3170_v44, %v5013_v58  ;;  %v1747_v32 = vsel %vm1641_vm10, %v1746_v21, %v1745_v8  ;;  %vm5015_vm6 = vcmask 523712   ;;  %v234_v56 = vld [vmem:[%s4880_s0 + $0x690] sm:$0xff] }
 0x207   :  { %v1208_v16 = vmul.f32 %v3170_v44, %v739_v37  ;;  %v1207_v27 = vmul.f32 %v3170_v44, %v736_v7  ;;  %v733_v0 = vpop.xlane.xlu0 %732  ;;  %v1805_v61 = vsel %vm5015_vm6, %v1804_v36, %v1803_v3  ;;  %v1689_v20 = vsel %vm5017_vm7, %v1688_v38, %v3902_v29  ;;  %v220_v29 = vld [vmem:[%s4880_s0 + $0x620] sm:$0xff]  ;;  %v5020_v21 = vld [vmem:[#allocation68_spill] sm:$0xff] }
 0x208   :  { %v1206_v17 = vmul.f32 %v3170_v44, %v733_v0  ;;  %v3997_v63 = vmul.f32 %v3170_v44, %v5019_v54  ;;  %v1750_v8 = vperm.slane %v1115_v55, %v3282_v50  ;;  %v1808_v26 = vperm.slane %v1145_v39, %v3259_v2  ;;  %v250_v7 = vld [vmem:[%s4880_s0 + $0x710] sm:$0xff] }
 0x209   :  { %v1928_v18 = vperm.slane %v1207_v27, %v3236_v48  ;;  %v1930_v41 = vperm.slane %v1208_v16, %v3250_v24  ;;  %v1749_v38 = vsel %vm1645_vm11, %v1748_v52, %v1747_v32  ;;  %v1807_v28 = vsel %vm1637_vm9, %v1806_v10, %v1805_v61  ;;  %v5022_v0 = vld [vmem:[#allocation40_spill] sm:$0xff] }
 0x20a   :  { %v1926_v31 = vperm.slane %v1206_v17, %v3225_v6  ;;  %v1147_v47 = vmul.f32 %v3170_v44, %v5020_v21  ;;  %v1810_v33 = vperm.slane %v1146_v15, %v3272_v59  ;;  %v1117_v12 = vmul.f32 %v3170_v44, %v5022_v0  ;;  %v5024_v10 = vld [vmem:[#allocation72_spill] sm:$0xff] }
 0x20b   :  { %909 = vadd.xlane.f32.xlu2 %v908_v62  ;;  %906 = vadd.xlane.f32.xlu1 %v905_v14  ;;  %v911_v17 = vsel %vm280_vm0, %v234_v56, 0.0  ;;  %v869_v62 = vsel %vm280_vm0, %v220_v29, 0.0  ;;  %v5023_v14 = vld [vmem:[#allocation67_spill] sm:$0xff]  ;;  %v1809_v58 = vsel %vm1641_vm10, %v1808_v26, %v1807_v28  ;;  %v1149_v3 = vmul.f32 %v3170_v44, %v5024_v10  ;;  %v5026_v15 = vld [vmem:[#allocation16_spill] sm:$0xff] }
 0x20c   :  { %v1927_v1 = vsel %vm5018_vm5, %v1926_v31, %v1925_v5  ;;  %867 = vadd.xlane.f32.xlu0 %v866_v9  ;;  %v5021_v5 = vld [vmem:[#allocation41_spill] sm:$0xff]  ;;  %v1148_v52 = vmul.f32 %v3170_v44, %v5023_v14  ;;  %v1812_v9 = vperm.slane %v1147_v47, %v3282_v50  ;;  %vm5025_vm5 = vcmask 851712   ;;  %v5027_v56 = vld [vmem:[#allocation39_spill] sm:$0xff] }
 0x20d   :  { %v1929_v4 = vsel %vm5015_vm6, %v1928_v18, %v1927_v1  ;;  %v1116_v35 = vmul.f32 %v3170_v44, %v5021_v5  ;;  %v959_v18 = vsel %vm280_vm0, %v250_v7, 0.0  ;;  %v1691_v32 = vsel %vm5025_vm5, %v1690_v23, %v1689_v20  ;;  %v5028_v29 = vld [vmem:[#allocation71_spill] sm:$0xff]  ;;  %vm5029_vm6 = vmmov %vm5017_vm7  ;;  %v251_v5 = vld [vmem:[%s4880_s0 + $0x718] sm:$0xff] }
 0x20e   :  { %v748_v19 = vpop.xlane.xlu2 %747  ;;  %v745_v53 = vpop.xlane.xlu1 %744  ;;  %v1931_v37 = vsel %vm1637_vm9, %v1930_v41, %v1929_v4  ;;  %v1811_v30 = vsel %vm1645_vm11, %v1810_v33, %v1809_v58  ;;  %v4041_v1 = vmul.f32 %v3170_v44, %v5026_v15  ;;  %v1694_v54 = vperm.slane %v3997_v63, %v3285_v57  ;;  %v265_v47 = vld [vmem:[%s4880_s0 + $0x788] sm:$0xff]  ;;  %v264_v63 = vld [vmem:[%s4880_s0 + $0x780] sm:$0xff]  ;;  %vm5030_vm5 = vmmov %vm5029_vm6 }
 0x20f   :  { %v1211_v36 = vmul.f32 %v3170_v44, %v748_v19  ;;  %v1210_v16 = vmul.f32 %v3170_v44, %v745_v53  ;;  %v742_v27 = vpop.xlane.xlu0 %741  ;;  %v1752_v61 = vperm.slane %v1116_v35, %v3300_v42  ;;  %v1751_v26 = vsel %vm5017_vm7, %v1750_v8, %v1749_v38  ;;  %v5032_v33 = vld [vmem:[#allocation42_spill] sm:$0xff] }
 0x210   :  { %v1209_v55 = vmul.f32 %v3170_v44, %v742_v27  ;;  %v1118_v23 = vmul.f32 %v3170_v44, %v5027_v56  ;;  %v1814_v20 = vperm.slane %v1148_v52, %v3300_v42  ;;  %v1150_v28 = vmul.f32 %v3170_v44, %v5028_v29  ;;  %v235_v29 = vld [vmem:[%s4880_s0 + $0x698] sm:$0xff] }
 0x211   :  { %v1934_v39 = vperm.slane %v1210_v16, %v3272_v59  ;;  %v1936_v41 = vperm.slane %v1211_v36, %v3282_v50  ;;  %v1754_v8 = vperm.slane %v1117_v12, %v3297_v60  ;;  %v1813_v38 = vsel %vm5029_vm6, %v1812_v9, %v1811_v30  ;;  %v5033_v12 = vld [vmem:[#allocation70_spill] sm:$0xff] }
 0x212   :  { %v1932_v31 = vperm.slane %v1209_v55, %v3259_v2  ;;  %v1816_v19 = vperm.slane %v1149_v3, %v3297_v60  ;;  %vm5031_vm7 = vcmask 851712   ;;  %v1119_v36 = vmul.f32 %v3170_v44, %v5032_v33 }
 0x213   :  { %912 = vadd.xlane.f32.xlu2 %v911_v17  ;;  %870 = vadd.xlane.f32.xlu1 %v869_v62  ;;  %v1753_v35 = vsel %vm5031_vm7, %v1752_v61, %v1751_v26  ;;  %v1151_v55 = vmul.f32 %v3170_v44, %v5033_v12  ;;  %v1004_v62 = vsel %vm280_vm0, %v265_v47, 0.0  ;;  %v1001_v14 = vsel %vm280_vm0, %v264_v63, 0.0  ;;  %vm5034_vm6 = vmmov %vm5031_vm7 }
 0x214   :  { %v1933_v4 = vsel %vm1641_vm10, %v1932_v31, %v1931_v37  ;;  %960 = vadd.xlane.f32.xlu0 %v959_v18  ;;  %v1818_v52 = vperm.slane %v1150_v28, %v3285_v57  ;;  %v1815_v58 = vsel %vm5034_vm6, %v1814_v20, %v1813_v38  ;;  %v962_v18 = vsel %vm280_vm0, %v251_v5, 0.0  ;;  %v252_v20 = vld [vmem:[%s4880_s0 + $0x720] sm:$0xff] }
 0x215   :  { %v1935_v21 = vsel %vm1645_vm11, %v1934_v39, %v1933_v4  ;;  %v1756_v9 = vperm.slane %v1118_v23, %v3285_v57  ;;  %v1817_v10 = vsel %vm1657_vm14, %v1816_v19, %v1815_v58  ;;  %v1755_v31 = vsel %vm1657_vm14, %v1754_v8, %v1753_v35 }
 0x216   :  { %v757_v53 = vpop.xlane.xlu2 %756  ;;  %v754_v37 = vpop.xlane.xlu1 %753  ;;  %v1937_v7 = vsel %vm5030_vm5, %v1936_v41, %v1935_v21  ;;  %v1758_v61 = vperm.slane %v1119_v36, %v3337_v49  ;;  %v1820_v30 = vperm.slane %v1151_v55, %v3337_v49  ;;  %vm5035_vm5 = vmmov %vm5034_vm6  ;;  %v1696_v26 = vperm.slane %v4041_v1, %v3337_v49 }
 0x217   :  { %v1214_v16 = vmul.f32 %v3170_v44, %v757_v53  ;;  %v1213_v27 = vmul.f32 %v3170_v44, %v754_v37  ;;  %v751_v0 = vpop.xlane.xlu0 %750  ;;  %v1693_v4 = vsel %vm1657_vm14, %v1692_v22, %v1691_v32  ;;  %v1819_v56 = vsel %vm1661_vm15, %v1818_v52, %v1817_v10  ;;  %v221_v32 = vld [vmem:[%s4880_s0 + $0x628] sm:$0xff] }
 0x218   :  { %v1212_v17 = vmul.f32 %v3170_v44, %v751_v0  ;;  %v1695_v28 = vsel %vm1661_vm15, %v1694_v54, %v1693_v4  ;;  %v1757_v1 = vsel %vm1661_vm15, %v1756_v9, %v1755_v31  ;;  %v1821_v19 = vsel %vm1665_vm1, %v1820_v30, %v1819_v56  ;;  %v223_v56 = vld [vmem:[%s4880_s0 + $0x638] sm:$0xff] }
 0x219   :  { %v1940_v39 = vperm.slane %v1213_v27, %v3297_v60  ;;  %v1942_v3 = vperm.slane %v1214_v16, %v3285_v57  ;;  %v1759_v47 = vsel %vm1665_vm1, %v1758_v61, %v1757_v1  ;;  %v965_v53 = vsel %vm280_vm0, %v252_v20, 0.0  ;;  %v253_v1 = vld [vmem:[%s4880_s0 + $0x728] sm:$0xff] }
 0x21a   :  { %v1938_v41 = vperm.slane %v1212_v17, %v3300_v42  ;;  %v914_v37 = vsel %vm280_vm0, %v235_v29, 0.0  ;;  %v872_v33 = vsel %vm280_vm0, %v221_v32, 0.0  ;;  %v236_v17 = vld [vmem:[%s4880_s0 + $0x6a0] sm:$0xff]  ;;  %vm5039_vm7 = vcmask 458112  }
 0x21b   :  { %1005 = vadd.xlane.f32.xlu2 %v1004_v62  ;;  %1002 = vadd.xlane.f32.xlu1 %v1001_v14  ;;  %v222_v62 = vld [vmem:[%s4880_s0 + $0x630] sm:$0xff]  ;;  %vm5040_vm6 = vcmask 523712  }
 0x21c   :  { %v1939_v15 = vsel %vm5035_vm5, %v1938_v41, %v1937_v7  ;;  %963 = vadd.xlane.f32.xlu0 %v962_v18  ;;  %v1697_v7 = vsel %vm1665_vm1, %v1696_v26, %v1695_v28  ;;  %v875_v41 = vsel %vm280_vm0, %v222_v62, 0.0  ;;  %vm5041_vm5 = vcmask 786112  }
 0x21d   :  { %v1941_v23 = vsel %vm1657_vm14, %v1940_v39, %v1939_v15  ;;  %v2146_v36 = vsel %vm2132_vm8, %v1759_v47, %v1697_v7  ;;  %vm5036_vm8 = vcmask 1044484   ;;  %v266_v39 = vld [vmem:[%s4880_s0 + $0x790] sm:$0xff]  ;;  %v878_v47 = vsel %vm280_vm0, %v223_v56, 0.0  ;;  %v268_v7 = vld [vmem:[%s4880_s0 + $0x7a0] sm:$0xff] }
 0x21e   :  { %v766_v21 = vpop.xlane.xlu2 %765  ;;  %v763_v40 = vpop.xlane.xlu1 %762  ;;  %v1943_v22 = vsel %vm1661_vm15, %v1942_v3, %v1941_v23  ;;  %v2147_v0 = vsel %vm2134_vm13, %v1821_v19, %v2146_v36  ;;  %v917_v3 = vsel %vm280_vm0, %v236_v17, 0.0  ;;  %v1007_v61 = vsel %vm280_vm0, %v266_v39, 0.0  ;;  %v267_v23 = vld [vmem:[%s4880_s0 + $0x798] sm:$0xff] }
 0x21f   :  { %v1217_v63 = vmul.f32 %v3170_v44, %v766_v21  ;;  %v1216_v8 = vmul.f32 %v3170_v44, %v763_v40  ;;  %v760_v38 = vpop.xlane.xlu0 %759  ;;  %v2148_v55 = vsel %vm2136_vm12, %v3585_v13, %v2147_v0  ;;  %vm5037_vm12 = vcmask 326912  }
 0x220   :  { %v1215_v54 = vmul.f32 %v3170_v44, %v760_v38  ;;  %v968_v38 = vsel %vm280_vm0, %v253_v1, 0.0  ;;  %vm5038_vm13 = vcmask 392512   ;;  %v1013_v17 = vsel %vm280_vm0, %v268_v7, 0.0 }
 0x221   :  { %v1947_v5 = vperm.slane %v1217_v63, %v3177_v51  ;;  %v1946_v35 = vperm.slane %v1216_v8, %v3172_v34  ;;  %v1010_v63 = vsel %vm280_vm0, %v267_v23, 0.0 }
 0x222   :  { %v1944_v16 = vperm.slane %v1215_v54, %v3337_v49 }
 0x223   :  { %v1948_v27 = vsel %vm1609_vm2, %v1947_v5, %v1946_v35  ;;  %966 = vadd.xlane.f32.xlu2 %v965_v53  ;;  %915 = vadd.xlane.f32.xlu1 %v914_v37  ;;  %v254_v5 = vld [vmem:[%s4880_s0 + $0x730] sm:$0xff] }
 0x224   :  { %v1945_v12 = vsel %vm1665_vm1, %v1944_v16, %v1943_v22  ;;  %873 = vadd.xlane.f32.xlu0 %v872_v33  ;;  %v237_v16 = vld [vmem:[%s4880_s0 + $0x6a8] sm:$0xff]  ;;  %v971_v62 = vsel %vm280_vm0, %v254_v5, 0.0 }
 0x225   :  { %v4133_v14 = vsel %vm5036_vm8, %v1945_v12, %v2148_v55  ;;  %vm5042_vm8 = vcmask 851712  }
 0x226   :  { %v775_v52 = vpop.xlane.xlu2 %774  ;;  %v772_v58 = vpop.xlane.xlu1 %771 }
 0x227   :  { %v1220_v18 = vmul.f32 %v3170_v44, %v775_v52  ;;  %v1219_v13 = vmul.f32 %v3170_v44, %v772_v58  ;;  %v769_v9 = vpop.xlane.xlu0 %768  ;;  %v920_v58 = vsel %vm280_vm0, %v237_v16, 0.0 }
 0x228   :  { %v1218_v10 = vmul.f32 %v3170_v44, %v769_v9 }
 0x229   :  { %v1951_v31 = vperm.slane %v1219_v13, %v3198_v25  ;;  %v1953_v30 = vperm.slane %v1220_v18, %v3206_v45 }
 0x22a   :  { %v1949_v15 = vperm.slane %v1218_v10, %v3192_v11  ;;  %v255_v10 = vld [vmem:[%s4880_s0 + $0x738] sm:$0xff] }
 0x22b   :  { %918 = vadd.xlane.f32.xlu2 %v917_v3  ;;  %876 = vadd.xlane.f32.xlu1 %v875_v41  ;;  %v238_v3 = vld [vmem:[%s4880_s0 + $0x6b0] sm:$0xff]  ;;  %v974_v23 = vsel %vm280_vm0, %v255_v10, 0.0 }
 0x22c   :  { %v1950_v26 = vsel %vm1613_vm3, %v1949_v15, %v1948_v27  ;;  %1008 = vadd.xlane.f32.xlu0 %v1007_v61 }
 0x22d   :  { %v1952_v4 = vsel %vm1617_vm4, %v1951_v31, %v1950_v26 }
 0x22e   :  { %v784_v20 = vpop.xlane.xlu2 %783  ;;  %v781_v29 = vpop.xlane.xlu1 %780  ;;  %v1954_v28 = vsel %vm5037_vm12, %v1953_v30, %v1952_v4  ;;  %v224_v30 = vld [vmem:[%s4880_s0 + $0x640] sm:$0xff]  ;;  %vm2140_vm12 = vcmask 1045509  }
 0x22f   :  { %v1223_v21 = vmul.f32 %v3170_v44, %v784_v20  ;;  %v1222_v40 = vmul.f32 %v3170_v44, %v781_v29  ;;  %v778_v22 = vpop.xlane.xlu0 %777  ;;  %v923_v20 = vsel %vm280_vm0, %v238_v3, 0.0 }
 0x230   :  { %v1221_v32 = vmul.f32 %v3170_v44, %v778_v22 }
 0x231   :  { %v1957_v8 = vperm.slane %v1222_v40, %v3225_v6  ;;  %v1959_v19 = vperm.slane %v1223_v21, %v3236_v48 }
 0x232   :  { %v1955_v54 = vperm.slane %v1221_v32, %v3221_v43  ;;  %v239_v32 = vld [vmem:[%s4880_s0 + $0x6b8] sm:$0xff] }
 0x233   :  { %879 = vadd.xlane.f32.xlu2 %v878_v47  ;;  %1011 = vadd.xlane.f32.xlu1 %v1010_v63  ;;  %v225_v47 = vld [vmem:[%s4880_s0 + $0x648] sm:$0xff]  ;;  %v926_v7 = vsel %vm280_vm0, %v239_v32, 0.0 }
 0x234   :  { %v1956_v53 = vsel %vm5038_vm13, %v1955_v54, %v1954_v28  ;;  %969 = vadd.xlane.f32.xlu0 %v968_v38  ;;  %v881_v28 = vsel %vm280_vm0, %v224_v30, 0.0  ;;  %v884_v5 = vsel %vm280_vm0, %v225_v47, 0.0  ;;  %vm5043_vm13 = vcmask 326912  }
 0x235   :  { %v1958_v37 = vsel %vm5039_vm7, %v1957_v8, %v1956_v53  ;;  %vm5044_vm7 = vcmask 392512  }
 0x236   :  { %v793_v35 = vpop.xlane.xlu2 %792  ;;  %v790_v33 = vpop.xlane.xlu1 %789  ;;  %v1960_v36 = vsel %vm5040_vm6, %v1959_v19, %v1958_v37  ;;  %v269_v19 = vld [vmem:[%s4880_s0 + $0x7a8] sm:$0xff]  ;;  %vm5045_vm6 = vcmask 458112  }
 0x237   :  { %v1226_v27 = vmul.f32 %v3170_v44, %v793_v35  ;;  %v1225_v0 = vmul.f32 %v3170_v44, %v790_v33  ;;  %v787_v12 = vpop.xlane.xlu0 %786  ;;  %v1016_v33 = vsel %vm280_vm0, %v269_v19, 0.0 }
 0x238   :  { %v1224_v55 = vmul.f32 %v3170_v44, %v787_v12  ;;  %v270_v12 = vld [vmem:[%s4880_s0 + $0x7b0] sm:$0xff] }
 0x239   :  { %v1963_v52 = vperm.slane %v1225_v0, %v3259_v2  ;;  %v1965_v39 = vperm.slane %v1226_v27, %v3272_v59  ;;  %v226_v0 = vld [vmem:[%s4880_s0 + $0x650] sm:$0xff] }
 0x23a   :  { %v1961_v18 = vperm.slane %v1224_v55, %v3250_v24  ;;  %v887_v3 = vsel %vm280_vm0, %v226_v0, 0.0 }
 0x23b   :  { %1014 = vadd.xlane.f32.xlu2 %v1013_v17  ;;  %972 = vadd.xlane.f32.xlu1 %v971_v62 }
 0x23c   :  { %v1962_v13 = vsel %vm1637_vm9, %v1961_v18, %v1960_v36  ;;  %921 = vadd.xlane.f32.xlu0 %v920_v58 }
 0x23d   :  { %v1964_v9 = vsel %vm1641_vm10, %v1963_v52, %v1962_v13  ;;  %v256_v52 = vld [vmem:[%s4880_s0 + $0x740] sm:$0xff] }
 0x23e   :  { %v802_v41 = vpop.xlane.xlu2 %801  ;;  %v799_v31 = vpop.xlane.xlu1 %798  ;;  %v1966_v61 = vsel %vm1645_vm11, %v1965_v39, %v1964_v9 }
 0x23f   :  { %v1229_v15 = vmul.f32 %v3170_v44, %v802_v41  ;;  %v1228_v26 = vmul.f32 %v3170_v44, %v799_v31  ;;  %v796_v4 = vpop.xlane.xlu0 %795  ;;  %v1019_v41 = vsel %vm280_vm0, %v270_v12, 0.0 }
 0x240   :  { %v1227_v56 = vmul.f32 %v3170_v44, %v796_v4  ;;  %v271_v4 = vld [vmem:[%s4880_s0 + $0x7b8] sm:$0xff] }
 0x241   :  { %v1969_v29 = vperm.slane %v1228_v26, %v3300_v42  ;;  %v1971_v1 = vperm.slane %v1229_v15, %v3297_v60  ;;  %v1022_v32 = vsel %vm280_vm0, %v271_v4, 0.0 }
 0x242   :  { %v1967_v21 = vperm.slane %v1227_v56, %v3282_v50  ;;  %v257_v56 = vld [vmem:[%s4880_s0 + $0x748] sm:$0xff] }
 0x243   :  { %975 = vadd.xlane.f32.xlu2 %v974_v23  ;;  %924 = vadd.xlane.f32.xlu1 %v923_v20  ;;  %v980_v47 = vsel %vm280_vm0, %v257_v56, 0.0 }
 0x244   :  { %v1968_v40 = vsel %vm5041_vm5, %v1967_v21, %v1966_v61  ;;  %882 = vadd.xlane.f32.xlu0 %v881_v28  ;;  %v977_v61 = vsel %vm280_vm0, %v256_v52, 0.0  ;;  %v240_v28 = vld [vmem:[%s4880_s0 + $0x6c0] sm:$0xff]  ;;  %vm5046_vm5 = vcmask 523712  }
 0x245   :  { %v1970_v22 = vsel %vm5042_vm8, %v1969_v29, %v1968_v40  ;;  %vm5047_vm8 = vcmask 786112  }
 0x246   :  { %v811_v63 = vpop.xlane.xlu2 %810  ;;  %v808_v8 = vpop.xlane.xlu1 %807  ;;  %v1972_v38 = vsel %vm1657_vm14, %v1971_v1, %v1970_v22 }
 0x247   :  { %v1231_v54 = vmul.f32 %v3170_v44, %v808_v8  ;;  %v805_v53 = vpop.xlane.xlu0 %804  ;;  %v1232_v16 = vmul.f32 %v3170_v44, %v811_v63  ;;  %v929_v8 = vsel %vm280_vm0, %v240_v28, 0.0 }
 0x248   :  { %v1230_v37 = vmul.f32 %v3170_v44, %v805_v53 }
 0x249   :  { %v1975_v35 = vperm.slane %v1231_v54, %v3337_v49  ;;  %v1977_v9 = vperm.slane %v1232_v16, %v3172_v34 }
 0x24a   :  { %v1973_v36 = vperm.slane %v1230_v37, %v3285_v57  ;;  %v258_v37 = vld [vmem:[%s4880_s0 + $0x750] sm:$0xff] }
 0x24b   :  { %927 = vadd.xlane.f32.xlu2 %v926_v7  ;;  %885 = vadd.xlane.f32.xlu1 %v884_v5  ;;  %v241_v7 = vld [vmem:[%s4880_s0 + $0x6c8] sm:$0xff] }
 0x24c   :  { %v1974_v27 = vsel %vm1661_vm15, %v1973_v36, %v1972_v38  ;;  %1017 = vadd.xlane.f32.xlu0 %v1016_v33  ;;  %v227_v36 = vld [vmem:[%s4880_s0 + $0x658] sm:$0xff] }
 0x24d   :  { %v1976_v55 = vsel %vm1665_vm1, %v1975_v35, %v1974_v27  ;;  %v890_v52 = vsel %vm280_vm0, %v227_v36, 0.0 }
 0x24e   :  { %v820_v17 = vpop.xlane.xlu2 %819  ;;  %v817_v62 = vpop.xlane.xlu1 %816  ;;  %v4243_v58 = vsel %vm2140_vm12, %v1976_v55, %v3862_v46  ;;  %v983_v55 = vsel %vm280_vm0, %v258_v37, 0.0 }
 0x24f   :  { %v1235_v39 = vmul.f32 %v3170_v44, %v820_v17  ;;  %v1234_v18 = vmul.f32 %v3170_v44, %v817_v62  ;;  %v814_v13 = vpop.xlane.xlu0 %813  ;;  %v932_v17 = vsel %vm280_vm0, %v241_v7, 0.0 }
 0x250   :  { %v1233_v10 = vmul.f32 %v3170_v44, %v814_v13 }
 0x251   :  { %v1980_v31 = vperm.slane %v1234_v18, %v3192_v11  ;;  %v1982_v46 = vperm.slane %v1235_v39, %v3198_v25 }
 0x252   :  { %v1978_v30 = vperm.slane %v1233_v10, %v3177_v51  ;;  %v242_v10 = vld [vmem:[%s4880_s0 + $0x6d0] sm:$0xff] }
 0x253   :  { %888 = vadd.xlane.f32.xlu2 %v887_v3  ;;  %1020 = vadd.xlane.f32.xlu1 %v1019_v41  ;;  %v228_v3 = vld [vmem:[%s4880_s0 + $0x660] sm:$0xff]  ;;  %v935_v56 = vsel %vm280_vm0, %v242_v10, 0.0 }
 0x254   :  { %v1979_v15 = vsel %vm1609_vm2, %v1978_v30, %v1977_v9  ;;  %978 = vadd.xlane.f32.xlu0 %v977_v61 }
 0x255   :  { %v1981_v26 = vsel %vm1613_vm3, %v1980_v31, %v1979_v15 }
 0x256   :  { %v829_v23 = vpop.xlane.xlu2 %828  ;;  %v826_v20 = vpop.xlane.xlu1 %825  ;;  %v1983_v29 = vsel %vm1617_vm4, %v1982_v46, %v1981_v26  ;;  %v272_v46 = vld [vmem:[%s4880_s0 + $0x7c0] sm:$0xff] }
 0x257   :  { %v1238_v1 = vmul.f32 %v3170_v44, %v829_v23  ;;  %v1237_v21 = vmul.f32 %v3170_v44, %v826_v20  ;;  %v823_v40 = vpop.xlane.xlu0 %822  ;;  %v893_v23 = vsel %vm280_vm0, %v228_v3, 0.0 }
 0x258   :  { %v1236_v22 = vmul.f32 %v3170_v44, %v823_v40 }
 0x259   :  { %v1986_v63 = vperm.slane %v1237_v21, %v3221_v43  ;;  %v1988_v38 = vperm.slane %v1238_v1, %v3225_v6 }
 0x25a   :  { %v1984_v19 = vperm.slane %v1236_v22, %v3206_v45  ;;  %v229_v22 = vld [vmem:[%s4880_s0 + $0x668] sm:$0xff] }
 0x25b   :  { %1023 = vadd.xlane.f32.xlu2 %v1022_v32  ;;  %981 = vadd.xlane.f32.xlu1 %v980_v47  ;;  %v273_v32 = vld [vmem:[%s4880_s0 + $0x7c8] sm:$0xff]  ;;  %v896_v7 = vsel %vm280_vm0, %v229_v22, 0.0 }
 0x25c   :  { %v1985_v54 = vsel %vm5043_vm13, %v1984_v19, %v1983_v29  ;;  %930 = vadd.xlane.f32.xlu0 %v929_v8  ;;  %v1025_v29 = vsel %vm280_vm0, %v272_v46, 0.0  ;;  %vm5048_vm13 = vcmask 851712  }
 0x25d   :  { %v1987_v53 = vsel %vm5044_vm7, %v1986_v63, %v1985_v54  ;;  %vm5049_vm7 = vcmask 326912  }
 0x25e   :  { %v838_v5 = vpop.xlane.xlu2 %837  ;;  %v835_v35 = vpop.xlane.xlu1 %834  ;;  %v1989_v33 = vsel %vm5045_vm6, %v1988_v38, %v1987_v53  ;;  %v259_v38 = vld [vmem:[%s4880_s0 + $0x758] sm:$0xff]  ;;  %vm5051_vm6 = vcmask 392512  }
 0x25f   :  { %v1241_v16 = vmul.f32 %v3170_v44, %v838_v5  ;;  %v1240_v27 = vmul.f32 %v3170_v44, %v835_v35  ;;  %v832_v0 = vpop.xlane.xlu0 %831  ;;  %v1028_v5 = vsel %vm280_vm0, %v273_v32, 0.0  ;;  %v986_v36 = vsel %vm280_vm0, %v259_v38, 0.0 }
 0x260   :  { %v1239_v12 = vmul.f32 %v3170_v44, %v832_v0 }
 0x261   :  { %v1992_v62 = vperm.slane %v1240_v27, %v3250_v24  ;;  %v1994_v39 = vperm.slane %v1241_v16, %v3259_v2 }
 0x262   :  { %v1990_v18 = vperm.slane %v1239_v12, %v3236_v48  ;;  %v274_v12 = vld [vmem:[%s4880_s0 + $0x7d0] sm:$0xff] }
 0x263   :  { %984 = vadd.xlane.f32.xlu2 %v983_v55  ;;  %933 = vadd.xlane.f32.xlu1 %v932_v17  ;;  %v260_v55 = vld [vmem:[%s4880_s0 + $0x760] sm:$0xff]  ;;  %v1031_v10 = vsel %vm280_vm0, %v274_v12, 0.0 }
 0x264   :  { %v1991_v13 = vsel %vm5046_vm5, %v1990_v18, %v1989_v33  ;;  %891 = vadd.xlane.f32.xlu0 %v890_v52  ;;  %v243_v52 = vld [vmem:[%s4880_s0 + $0x6d8] sm:$0xff]  ;;  %v989_v3 = vsel %vm280_vm0, %v260_v55, 0.0 }
 0x265   :  { %v1993_v9 = vsel %vm1637_vm9, %v1992_v62, %v1991_v13 }
 0x266   :  { %v847_v41 = vpop.xlane.xlu2 %846  ;;  %v844_v31 = vpop.xlane.xlu1 %843  ;;  %v1995_v61 = vsel %vm1641_vm10, %v1994_v39, %v1993_v9 }
 0x267   :  { %v1244_v30 = vmul.f32 %v3170_v44, %v847_v41  ;;  %v1243_v15 = vmul.f32 %v3170_v44, %v844_v31  ;;  %v841_v26 = vpop.xlane.xlu0 %840 }
 0x268   :  { %v1242_v4 = vmul.f32 %v3170_v44, %v841_v26  ;;  %v261_v26 = vld [vmem:[%s4880_s0 + $0x768] sm:$0xff] }
 0x269   :  { %v1998_v20 = vperm.slane %v1243_v15, %v3282_v50  ;;  %v2000_v28 = vperm.slane %v1244_v30, %v3300_v42 }
 0x26a   :  { %v1996_v1 = vperm.slane %v1242_v4, %v3272_v59  ;;  %v244_v4 = vld [vmem:[%s4880_s0 + $0x6e0] sm:$0xff] }
 0x26b   :  { %936 = vadd.xlane.f32.xlu2 %v935_v56  ;;  %894 = vadd.xlane.f32.xlu1 %v893_v23  ;;  %v941_v22 = vsel %vm280_vm0, %v244_v4, 0.0 }
 0x26c   :  { %v1997_v21 = vsel %vm1645_vm11, %v1996_v1, %v1995_v61  ;;  %1026 = vadd.xlane.f32.xlu0 %v1025_v29  ;;  %v938_v61 = vsel %vm280_vm0, %v243_v52, 0.0 }
 0x26d   :  { %v1999_v40 = vsel %vm5047_vm8, %v1998_v20, %v1997_v21  ;;  %v230_v20 = vld [vmem:[%s4880_s0 + $0x670] sm:$0xff]  ;;  %vm5053_vm8 = vcmask 458112  }
 0x26e   :  { %v862_v47 = vpop.xlane.xlu2 %861  ;;  %v859_v63 = vpop.xlane.xlu1 %858  ;;  %v2001_v8 = vsel %vm5048_vm13, %v2000_v28, %v1999_v40  ;;  %v992_v40 = vsel %vm280_vm0, %v261_v26, 0.0  ;;  %vm5055_vm13 = vmmov %vm5051_vm6 }
 0x26f   :  { %v1249_v19 = vmul.f32 %v3170_v44, %v862_v47  ;;  %v1248_v54 = vmul.f32 %v3170_v44, %v859_v63  ;;  %v850_v53 = vpop.xlane.xlu0 %849  ;;  %v899_v63 = vsel %vm280_vm0, %v230_v20, 0.0 }
 0x270   :  { %v1245_v37 = vmul.f32 %v3170_v44, %v850_v53  ;;  %v214_v53 = vld [vmem:[%s4880_s0 + $0x5f0] sm:$0xff] }
 0x271   :  { %v2009_v35 = vperm.slane %v1249_v19, %v3177_v51  ;;  %v2008_v33 = vperm.slane %v1248_v54, %v3172_v34  ;;  %v231_v54 = vld [vmem:[%s4880_s0 + $0x678] sm:$0xff]  ;;  %v851_v12 = vsel %vm280_vm0, %v214_v53, 0.0 }
 0x272   :  { %v2002_v16 = vperm.slane %v1245_v37, %v3297_v60 }
 0x273   :  { %v2010_v27 = vsel %vm1609_vm2, %v2009_v35, %v2008_v33  ;;  %897 = vadd.xlane.f32.xlu2 %v896_v7  ;;  %1029 = vadd.xlane.f32.xlu1 %v1028_v5  ;;  %v275_v5 = vld [vmem:[%s4880_s0 + $0x7d8] sm:$0xff] }
 0x274   :  { %v4341_v0 = vsel %vm1657_vm14, %v2002_v16, %v2001_v8  ;;  %987 = vadd.xlane.f32.xlu0 %v986_v36 }
 0x276   :  { %v958_v17 = vpop.xlane.xlu2 %957  ;;  %v955_v62 = vpop.xlane.xlu1 %954 }
 0x277   :  { %v1281_v39 = vmul.f32 %v3170_v44, %v958_v17  ;;  %v1280_v18 = vmul.f32 %v3170_v44, %v955_v62  ;;  %v865_v13 = vpop.xlane.xlu0 %864  ;;  %v1034_v62 = vsel %vm280_vm0, %v275_v5, 0.0 }
 0x278   :  { %v1250_v9 = vmul.f32 %v3170_v44, %v865_v13 }
 0x279   :  { %v2071_v41 = vperm.slane %v1281_v39, %v3177_v51  ;;  %v2070_v31 = vperm.slane %v1280_v18, %v3172_v34 }
 0x27a   :  { %v2011_v46 = vperm.slane %v1250_v9, %v3192_v11  ;;  %v276_v9 = vld [vmem:[%s4880_s0 + $0x7e0] sm:$0xff] }
 0x27b   :  { %v2072_v30 = vsel %vm1609_vm2, %v2071_v41, %v2070_v31  ;;  %1032 = vadd.xlane.f32.xlu2 %v1031_v10  ;;  %990 = vadd.xlane.f32.xlu1 %v989_v3  ;;  %v262_v10 = vld [vmem:[%s4880_s0 + $0x770] sm:$0xff]  ;;  %v245_v31 = vld [vmem:[%s4880_s0 + $0x6e8] sm:$0xff]  ;;  %v1037_v26 = vsel %vm280_vm0, %v276_v9, 0.0 }
 0x27c   :  { %v2012_v15 = vsel %vm1613_vm3, %v2011_v46, %v2010_v27  ;;  %939 = vadd.xlane.f32.xlu0 %v938_v61  ;;  %v902_v27 = vsel %vm280_vm0, %v231_v54, 0.0  ;;  %v995_v4 = vsel %vm280_vm0, %v262_v10, 0.0  ;;  %v944_v20 = vsel %vm280_vm0, %v245_v31, 0.0 }
 0x27e   :  { %v910_v56 = vpop.xlane.xlu2 %909  ;;  %v907_v23 = vpop.xlane.xlu1 %906 }
 0x27f   :  { %v1265_v29 = vmul.f32 %v3170_v44, %v910_v56  ;;  %v1264_v28 = vmul.f32 %v3170_v44, %v907_v23  ;;  %v868_v1 = vpop.xlane.xlu0 %867 }
 0x280   :  { %v1251_v21 = vmul.f32 %v3170_v44, %v868_v1 }
 0x281   :  { %v2040_v32 = vperm.slane %v1265_v29, %v3177_v51  ;;  %v2039_v47 = vperm.slane %v1264_v28, %v3172_v34 }
 0x282   :  { %v2013_v8 = vperm.slane %v1251_v21, %v3198_v25  ;;  %v263_v21 = vld [vmem:[%s4880_s0 + $0x778] sm:$0xff] }
 0x283   :  { %v2041_v38 = vsel %vm1609_vm2, %v2040_v32, %v2039_v47  ;;  %993 = vadd.xlane.f32.xlu2 %v992_v40  ;;  %942 = vadd.xlane.f32.xlu1 %v941_v22  ;;  %v215_v22 = vld [vmem:[%s4880_s0 + $0x5f8] sm:$0xff] }
 0x284   :  { %v2014_v19 = vsel %vm1617_vm4, %v2013_v8, %v2012_v15  ;;  %900 = vadd.xlane.f32.xlu0 %v899_v63 }
 0x286   :  { %v913_v37 = vpop.xlane.xlu2 %912  ;;  %v871_v7 = vpop.xlane.xlu1 %870 }
 0x287   :  { %v1266_v35 = vmul.f32 %v3170_v44, %v913_v37  ;;  %v1252_v33 = vmul.f32 %v3170_v44, %v871_v7  ;;  %v961_v36 = vpop.xlane.xlu0 %960  ;;  %v854_v37 = vsel %vm280_vm0, %v215_v22, 0.0 }
 0x288   :  { %v1282_v16 = vmul.f32 %v3170_v44, %v961_v36  ;;  %v247_v36 = vld [vmem:[%s4880_s0 + $0x6f8] sm:$0xff] }
 0x289   :  { %v2042_v55 = vperm.slane %v1266_v35, %v3192_v11  ;;  %v2015_v17 = vperm.slane %v1252_v33, %v3206_v45 }
 0x28a   :  { %v2073_v52 = vperm.slane %v1282_v16, %v3192_v11  ;;  %v278_v16 = vld [vmem:[%s4880_s0 + $0x7f0] sm:$0xff] }
 0x28b   :  { %v2043_v39 = vsel %vm1613_vm3, %v2042_v55, %v2041_v38  ;;  %v2016_v18 = vsel %vm5049_vm7, %v2015_v17, %v2014_v19  ;;  %903 = vadd.xlane.f32.xlu2 %v902_v27  ;;  %852 = vadd.xlane.f32.xlu1 %v851_v12  ;;  %v998_v38 = vsel %vm280_vm0, %v263_v21, 0.0  ;;  %v277_v55 = vld [vmem:[%s4880_s0 + $0x7e8] sm:$0xff] }
 0x28c   :  { %v2074_v13 = vsel %vm1613_vm3, %v2073_v52, %v2072_v30  ;;  %1035 = vadd.xlane.f32.xlu0 %v1034_v62 }
 0x28e   :  { %v1006_v3 = vpop.xlane.xlu2 %1005  ;;  %v1003_v41 = vpop.xlane.xlu1 %1002 }
 0x28f   :  { %v1297_v61 = vmul.f32 %v3170_v44, %v1006_v3  ;;  %v1296_v46 = vmul.f32 %v3170_v44, %v1003_v41  ;;  %v964_v30 = vpop.xlane.xlu0 %963  ;;  %v1040_v3 = vsel %vm280_vm0, %v277_v55, 0.0 }
 0x290   :  { %v1283_v15 = vmul.f32 %v3170_v44, %v964_v30 }
 0x291   :  { %v2102_v56 = vperm.slane %v1297_v61, %v3177_v51  ;;  %v2101_v23 = vperm.slane %v1296_v46, %v3172_v34  ;;  %v246_v51 = vld [vmem:[%s4880_s0 + $0x6f0] sm:$0xff] }
 0x292   :  { %v2075_v29 = vperm.slane %v1283_v15, %v3198_v25  ;;  %v947_v19 = vsel %vm280_vm0, %v246_v51, 0.0 }
 0x293   :  { %v2103_v28 = vsel %vm1609_vm2, %v2102_v56, %v2101_v23  ;;  %1038 = vadd.xlane.f32.xlu2 %v1037_v26  ;;  %996 = vadd.xlane.f32.xlu1 %v995_v4  ;;  %vm5050_vm2 = vmmov %vm5049_vm7  ;;  %v279_v26 = vld [vmem:[%s4880_s0 + $0x7f8] sm:$0xff] }
 0x294   :  { %v2076_v1 = vsel %vm1617_vm4, %v2075_v29, %v2074_v13  ;;  %945 = vadd.xlane.f32.xlu0 %v944_v20  ;;  %v1043_v13 = vsel %vm280_vm0, %v278_v16, 0.0  ;;  %vm5052_vm5 = vmmov %vm5050_vm2 }
 0x295   :  { %vm5058_vm7 = vmmov %vm5051_vm6 }
 0x296   :  { %v967_v34 = vpop.xlane.xlu2 %966  ;;  %v916_v40 = vpop.xlane.xlu1 %915 }
 0x297   :  { %v1284_v32 = vmul.f32 %v3170_v44, %v967_v34  ;;  %v1267_v47 = vmul.f32 %v3170_v44, %v916_v40  ;;  %v874_v63 = vpop.xlane.xlu0 %873 }
 0x298   :  { %v1253_v8 = vmul.f32 %v3170_v44, %v874_v63 }
 0x299   :  { %v2077_v54 = vperm.slane %v1284_v32, %v3206_v45  ;;  %v2044_v53 = vperm.slane %v1267_v47, %v3198_v25 }
 0x29a   :  { %v2017_v7 = vperm.slane %v1253_v8, %v3221_v43 }
 0x29b   :  { %v2078_v5 = vsel %vm5050_vm2, %v2077_v54, %v2076_v1  ;;  %v2045_v35 = vsel %vm1617_vm4, %v2044_v53, %v2043_v39  ;;  %999 = vadd.xlane.f32.xlu2 %v998_v38  ;;  %948 = vadd.xlane.f32.xlu1 %v947_v19 }
 0x29c   :  { %v2018_v33 = vsel %vm5051_vm6, %v2017_v7, %v2016_v18  ;;  %855 = vadd.xlane.f32.xlu0 %v854_v37  ;;  %v950_v18 = vsel %vm280_vm0, %v247_v36, 0.0 }
 0x29e   :  { %v919_v27 = vpop.xlane.xlu2 %918  ;;  %v877_v12 = vpop.xlane.xlu1 %876 }
 0x29f   :  { %v1268_v17 = vmul.f32 %v3170_v44, %v919_v27  ;;  %v1254_v62 = vmul.f32 %v3170_v44, %v877_v12  ;;  %v1009_v52 = vpop.xlane.xlu0 %1008 }
 0x2a0   :  { %v1298_v39 = vmul.f32 %v3170_v44, %v1009_v52 }
 0x2a1   :  { %v2046_v9 = vperm.slane %v1268_v17, %v3206_v45  ;;  %v2019_v10 = vperm.slane %v1254_v62, %v3225_v6 }
 0x2a2   :  { %v2104_v41 = vperm.slane %v1298_v39, %v3192_v11 }
 0x2a3   :  { %v2047_v31 = vsel %vm5052_vm5, %v2046_v9, %v2045_v35  ;;  %v2020_v61 = vsel %vm5053_vm8, %v2019_v10, %v2018_v33  ;;  %951 = vadd.xlane.f32.xlu1 %v950_v18  ;;  %1044 = vadd.xlane.f32.xlu2 %v1043_v13 }
 0x2a4   :  { %v2105_v46 = vsel %vm1613_vm3, %v2104_v41, %v2103_v28  ;;  %1041 = vadd.xlane.f32.xlu0 %v1040_v3  ;;  %v1046_v28 = vsel %vm280_vm0, %v279_v26, 0.0  ;;  %vm5054_vm3 = vcmask 523712   ;;  %vm5056_vm0 = vmmov %vm5050_vm2 }
 0x2a5   :  { %vm5059_vm2 = vmmov %vm5054_vm3 }
 0x2a6   :  { %v880_v30 = vpop.xlane.xlu2 %879  ;;  %v1012_v15 = vpop.xlane.xlu1 %1011  ;;  %vm5061_vm5 = vmmov %vm5059_vm2 }
 0x2a7   :  { %v1255_v4 = vmul.f32 %v3170_v44, %v880_v30  ;;  %v1299_v56 = vmul.f32 %v3170_v44, %v1012_v15  ;;  %v970_v11 = vpop.xlane.xlu0 %969 }
 0x2a8   :  { %v1285_v23 = vmul.f32 %v3170_v44, %v970_v11 }
 0x2a9   :  { %v2021_v20 = vperm.slane %v1255_v4, %v3236_v48  ;;  %v2106_v29 = vperm.slane %v1299_v56, %v3198_v25 }
 0x2aa   :  { %v2079_v1 = vperm.slane %v1285_v23, %v3221_v43 }
 0x2ab   :  { %v2022_v21 = vsel %vm5054_vm3, %v2021_v20, %v2020_v61  ;;  %v2107_v51 = vsel %vm1617_vm4, %v2106_v29, %v2105_v46  ;;  %vm5057_vm4 = vmmov %vm5053_vm8 }
 0x2ac   :  { %v2080_v34 = vsel %vm5055_vm13, %v2079_v1, %v2078_v5  ;;  %1047 = vadd.xlane.f32.xlu0 %v1046_v28  ;;  %vm5060_vm6 = vmmov %vm5057_vm4 }
 0x2ad   :  { %vm5062_vm8 = vmmov %vm5058_vm7 }
 0x2ae   :  { %v1015_v40 = vpop.xlane.xlu2 %1014  ;;  %v973_v22 = vpop.xlane.xlu1 %972  ;;  %vm5063_vm3 = vmmov %vm5057_vm4 }
 0x2af   :  { %v1300_v32 = vmul.f32 %v3170_v44, %v1015_v40  ;;  %v1286_v47 = vmul.f32 %v3170_v44, %v973_v22  ;;  %v922_v63 = vpop.xlane.xlu0 %921  ;;  %vm5064_vm13 = vmmov %vm5059_vm2 }
 0x2b0   :  { %v1269_v25 = vmul.f32 %v3170_v44, %v922_v63 }
 0x2b1   :  { %v2108_v8 = vperm.slane %v1300_v32, %v3206_v45  ;;  %v2081_v38 = vperm.slane %v1286_v47, %v3225_v6 }
 0x2b2   :  { %v2048_v19 = vperm.slane %v1269_v25, %v3221_v43 }
 0x2b3   :  { %v2109_v54 = vsel %vm5056_vm0, %v2108_v8, %v2107_v51  ;;  %v2082_v53 = vsel %vm5057_vm4, %v2081_v38, %v2080_v34  ;;  %v1327_v8 = vld [vmem:[%s4881_s1 + $0x78] sm:$0xff]  ;;  %vm5065_vm0 = vcmask 786112   ;;  %vm5066_vm4 = vcmask 851712  }
 0x2b4   :  { %v2049_v37 = vsel %vm5058_vm7, %v2048_v19, %v2047_v31  ;;  %v2211_v38 = vld [vmem:[%s4883_s3 + $0x78] sm:$0xff]  ;;  %2155 = vmatpush.msra.mxu0 %v1327_v8  ;;  %vm2142_vm7 = vcmask 1046534  }
 0x2b5   :  { %2232 = vmatpush.msra.mxu2 %v2211_v38  ;;  %v1314_v38 = vld [vmem:[%s4881_s1 + $0x10] sm:$0xff] }
 0x2b6   :  { %v976_v7 = vpop.xlane.xlu2 %975  ;;  %v925_v5 = vpop.xlane.xlu1 %924 }
 0x2b7   :  { %v1287_v35 = vmul.f32 %v3170_v44, %v976_v7  ;;  %v1270_v33 = vmul.f32 %v3170_v44, %v925_v5  ;;  %v883_v36 = vpop.xlane.xlu0 %882  ;;  %v1325_v7 = vld [vmem:[%s4881_s1 + $0x68] sm:$0xff] }
 0x2b8   :  { %v1256_v16 = vmul.f32 %v3170_v44, %v883_v36  ;;  %v2209_v5 = vld [vmem:[%s4883_s3 + $0x68] sm:$0xff]  ;;  %v1323_v36 = vld [vmem:[%s4881_s1 + $0x58] sm:$0xff] }
 0x2b9   :  { %v2083_v45 = vperm.slane %v1287_v35, %v3236_v48  ;;  %v2050_v27 = vperm.slane %v1270_v33, %v3225_v6  ;;  %v1324_v35 = vld [vmem:[%s4881_s1 + $0x60] sm:$0xff] }
 0x2ba   :  { %v2023_v12 = vperm.slane %v1256_v16, %v3250_v24  ;;  %v2208_v33 = vld [vmem:[%s4883_s3 + $0x60] sm:$0xff]  ;;  %v2207_v16 = vld [vmem:[%s4883_s3 + $0x58] sm:$0xff] }
 0x2bb   :  { %v2084_v55 = vsel %vm5059_vm2, %v2083_v45, %v2082_v53  ;;  %v2051_v17 = vsel %vm5060_vm6, %v2050_v27, %v2049_v37  ;;  %v1326_v53 = vld [vmem:[%s4881_s1 + $0x70] sm:$0xff]  ;;  %vm5067_vm2 = vmmov %vm5065_vm0 }
 0x2bc   :  { %v2024_v62 = vsel %vm1637_vm9, %v2023_v12, %v2022_v21  ;;  %v2210_v37 = vld [vmem:[%s4883_s3 + $0x70] sm:$0xff]  ;;  %2156 = vmatpush.msra.mxu0 %v1326_v53  ;;  %vm5068_vm6 = vmmov %vm5066_vm4 }
 0x2bd   :  { %2233 = vmatpush.msra.mxu2 %v2210_v37  ;;  %v1338_v53 = vld [vmem:[%s4881_s1 + $0xd0] sm:$0xff] }
 0x2be   :  { %v928_v52 = vpop.xlane.xlu2 %927  ;;  %v886_v39 = vpop.xlane.xlu1 %885  ;;  %2157 = vmatpush.msra.mxu0 %v1325_v7  ;;  %v2198_v37 = vld [vmem:[%s4883_s3 + $0x10] sm:$0xff] }
 0x2bf   :  { %v1271_v18 = vmul.f32 %v3170_v44, %v928_v52  ;;  %v1257_v13 = vmul.f32 %v3170_v44, %v886_v39  ;;  %v1018_v9 = vpop.xlane.xlu0 %1017  ;;  %2234 = vmatpush.msra.mxu2 %v2209_v5  ;;  %v2205_v52 = vld [vmem:[%s4883_s3 + $0x48] sm:$0xff]  ;;  %v1320_v39 = vld [vmem:[%s4881_s1 + $0x40] sm:$0xff]  ;;  %v2222_v7 = vld [vmem:[%s4883_s3 + $0xd0] sm:$0xff] }
 0x2c0   :  { %v1301_v10 = vmul.f32 %v3170_v44, %v1018_v9  ;;  %2158 = vmatpush.msra.mxu0 %v1324_v35  ;;  %v1343_v9 = vld [vmem:[%s4881_s1 + $0xf8] sm:$0xff]  ;;  %v1313_v5 = vld [vmem:[%s4881_s1 + $0x8] sm:$0xff] }
 0x2c1   :  { %v2052_v3 = vperm.slane %v1271_v18, %v3236_v48  ;;  %v2025_v41 = vperm.slane %v1257_v13, %v3259_v2  ;;  %2235 = vmatpush.msra.mxu2 %v2208_v33  ;;  %v2204_v18 = vld [vmem:[%s4883_s3 + $0x40] sm:$0xff]  ;;  %v1319_v13 = vld [vmem:[%s4881_s1 + $0x38] sm:$0xff]  ;;  %2175 = vmatpush.msra.mxu1 %v1343_v9  ;;  %v1337_v35 = vld [vmem:[%s4881_s1 + $0xc8] sm:$0xff] }
 0x2c2   :  { %v2110_v31 = vperm.slane %v1301_v10, %v3221_v43  ;;  %2159 = vmatpush.msra.mxu0 %v1323_v36  ;;  %v2203_v10 = vld [vmem:[%s4883_s3 + $0x38] sm:$0xff]  ;;  %v2197_v33 = vld [vmem:[%s4883_s3 + $0x8] sm:$0xff] }
 0x2c3   :  { %v2053_v61 = vsel %vm5061_vm5, %v2052_v3, %v2051_v17  ;;  %v2026_v46 = vsel %vm1641_vm10, %v2025_v41, %v2024_v62  ;;  %2236 = vmatpush.msra.mxu2 %v2207_v16  ;;  %v2206_v17 = vld [vmem:[%s4883_s3 + $0x50] sm:$0xff]  ;;  %v1321_v62 = vld [vmem:[%s4881_s1 + $0x48] sm:$0xff]  ;;  %v2227_v3 = vld [vmem:[%s4883_s3 + $0xf8] sm:$0xff]  ;;  %vm2144_vm5 = vcmask 1047559  }
 0x2c4   :  { %v2111_v30 = vsel %vm5062_vm8, %v2110_v31, %v2109_v54  ;;  %2252 = vmatpush.msra.mxu3 %v2227_v3  ;;  %v2221_v36 = vld [vmem:[%s4883_s3 + $0xc8] sm:$0xff]  ;;  %v1312_v16 = vld [vmem:[%s4881_s1] sm:$0xff]  ;;  %vm5069_vm8 = vmmov %vm5065_vm0 }
 0x2c5   :  { %2237 = vmatpush.msra.mxu2 %v2206_v17  ;;  %v2196_v17 = vld [vmem:[%s4883_s3] sm:$0xff] }
 0x2c6   :  { %v889_v15 = vpop.xlane.xlu2 %888  ;;  %v1021_v26 = vpop.xlane.xlu1 %1020 }
 0x2c7   :  { %v1258_v4 = vmul.f32 %v3170_v44, %v889_v15  ;;  %v1302_v56 = vmul.f32 %v3170_v44, %v1021_v26  ;;  %v979_v11 = vpop.xlane.xlu0 %978  ;;  %2238 = vmatpush.msra.mxu2 %v2205_v52  ;;  %v2202_v15 = vld [vmem:[%s4883_s3 + $0x30] sm:$0xff]  ;;  %v1335_v52 = vld [vmem:[%s4881_s1 + $0xb8] sm:$0xff] }
 0x2c8   :  { %v1288_v23 = vmul.f32 %v3170_v44, %v979_v11  ;;  %v2226_v26 = vld [vmem:[%s4883_s3 + $0xf0] sm:$0xff]  ;;  %v2201_v11 = vld [vmem:[%s4883_s3 + $0x28] sm:$0xff] }
 0x2c9   :  { %v2027_v20 = vperm.slane %v1258_v4, %v3272_v59  ;;  %v2112_v29 = vperm.slane %v1302_v56, %v3225_v6  ;;  %2239 = vmatpush.msra.mxu2 %v2204_v18  ;;  %2253 = vmatpush.msra.mxu3 %v2226_v26  ;;  %v1317_v4 = vld [vmem:[%s4881_s1 + $0x28] sm:$0xff] }
 0x2ca   :  { %v2085_v43 = vperm.slane %v1288_v23, %v3250_v24  ;;  %v1341_v56 = vld [vmem:[%s4881_s1 + $0xe8] sm:$0xff] }
 0x2cb   :  { %v4513_v28 = vsel %vm1645_vm11, %v2027_v20, %v2026_v46  ;;  %v2113_v1 = vsel %vm5063_vm3, %v2112_v29, %v2111_v30  ;;  %2240 = vmatpush.msra.mxu2 %v2203_v10  ;;  %v1318_v46 = vld [vmem:[%s4881_s1 + $0x30] sm:$0xff]  ;;  %v2225_v23 = vld [vmem:[%s4883_s3 + $0xe8] sm:$0xff]  ;;  %v1316_v20 = vld [vmem:[%s4881_s1 + $0x20] sm:$0xff] }
 0x2cc   :  { %v4517_v21 = vsel %vm1637_vm9, %v2085_v43, %v2084_v55  ;;  %v1322_v55 = vld [vmem:[%s4881_s1 + $0x50] sm:$0xff]  ;;  %2254 = vmatpush.msra.mxu3 %v2225_v23  ;;  %v1340_v29 = vld [vmem:[%s4881_s1 + $0xe0] sm:$0xff]  ;;  %v2217_v26 = vld [vmem:[%s4883_s3 + $0xa8] sm:$0xff] }
 0x2cd   :  { %2160 = vmatpush.msra.mxu0 %v1322_v55  ;;  %v1342_v30 = vld [vmem:[%s4881_s1 + $0xf0] sm:$0xff]  ;;  %2241 = vmatpush.msra.mxu2 %v2202_v15  ;;  %v2200_v43 = vld [vmem:[%s4883_s3 + $0x20] sm:$0xff]  ;;  %v1331_v23 = vld [vmem:[%s4881_s1 + $0x98] sm:$0xff] }
 0x2ce   :  { %v1024_v51 = vpop.xlane.xlu2 %1023  ;;  %v4519_v34 = vpop.xlane.xlu1 %981  ;;  %2176 = vmatpush.msra.mxu1 %v1342_v30  ;;  %v1336_v55 = vld [vmem:[%s4881_s1 + $0xc0] sm:$0xff]  ;;  %v2218_v30 = vld [vmem:[%s4883_s3 + $0xb0] sm:$0xff]  ;;  %vm5071_vm3 = vmmov %vm5065_vm0 }
 0x2cf   :  { %v1303_v40 = vmul.f32 %v3170_v44, %v1024_v51  ;;  %v931_v22 = vpop.xlane.xlu0 %930  ;;  %2161 = vmatpush.msra.mxu0 %v1321_v62  ;;  %2242 = vmatpush.msra.mxu2 %v2201_v11  ;;  %v1315_v51 = vld [vmem:[%s4881_s1 + $0x18] sm:$0xff]  ;;  %v2220_v62 = vld [vmem:[%s4883_s3 + $0xc0] sm:$0xff] }
 0x2d0   :  { %v1272_v32 = vmul.f32 %v3170_v44, %v931_v22  ;;  %2177 = vmatpush.msra.mxu1 %v1341_v56  ;;  %v2216_v11 = vld [vmem:[%s4883_s3 + $0xa0] sm:$0xff] }
 0x2d1   :  { %v2114_v6 = vperm.slane %v1303_v40, %v3236_v48  ;;  %2162 = vmatpush.msra.mxu0 %v1320_v39  ;;  %v1339_v40 = vld [vmem:[%s4881_s1 + $0xd8] sm:$0xff]  ;;  %2243 = vmatpush.msra.mxu2 %v2200_v43 }
 0x2d2   :  { %v2054_v47 = vperm.slane %v1272_v32, %v3250_v24  ;;  %2178 = vmatpush.msra.mxu1 %v1340_v29  ;;  %v2219_v39 = vld [vmem:[%s4883_s3 + $0xb8] sm:$0xff] }
 0x2d3   :  { %v4526_v63 = vsel %vm5064_vm13, %v2114_v6, %v2113_v1  ;;  %2163 = vmatpush.msra.mxu0 %v1319_v13  ;;  %v2224_v1 = vld [vmem:[%s4883_s3 + $0xe0] sm:$0xff]  ;;  %v2199_v6 = vld [vmem:[%s4883_s3 + $0x18] sm:$0xff]  ;;  %vm5072_vm13 = vmmov %vm5066_vm4 }
 0x2d4   :  { %v4529_v25 = vsel %vm1637_vm9, %v2054_v47, %v2053_v61  ;;  %2255 = vmatpush.msra.mxu3 %v2224_v1  ;;  %v2223_v47 = vld [vmem:[%s4883_s3 + $0xd8] sm:$0xff]  ;;  %2179 = vmatpush.msra.mxu1 %v1339_v40 }
 0x2d5   :  { %2164 = vmatpush.msra.mxu0 %v1318_v46  ;;  %2244 = vmatpush.msra.mxu2 %v2199_v6  ;;  %v1334_v46 = vld [vmem:[%s4881_s1 + $0xb0] sm:$0xff]  ;;  %v2215_v29 = vld [vmem:[%s4883_s3 + $0x98] sm:$0xff] }
 0x2d6   :  { %v4537_v19 = vpop.xlane.xlu2 %984  ;;  %v4539_v48 = vpop.xlane.xlu1 %933  ;;  %2256 = vmatpush.msra.mxu3 %v2223_v47  ;;  %2180 = vmatpush.msra.mxu1 %v1338_v53  ;;  %v1330_v53 = vld [vmem:[%s4881_s1 + $0x90] sm:$0xff] }
 0x2d7   :  { %v4541_v54 = vpop.xlane.xlu0 %891  ;;  %2165 = vmatpush.msra.mxu0 %v1317_v4  ;;  %2245 = vmatpush.msra.mxu2 %v2198_v37  ;;  %v2214_v37 = vld [vmem:[%s4883_s3 + $0x90] sm:$0xff] }
 0x2d8   :  { %2257 = vmatpush.msra.mxu3 %v2222_v7  ;;  %2181 = vmatpush.msra.mxu1 %v1337_v35  ;;  %v1259_v9 = vmul.f32 %v3170_v44, %v4541_v54  ;;  %v1329_v35 = vld [vmem:[%s4881_s1 + $0x88] sm:$0xff] }
 0x2d9   :  { %2166 = vmatpush.msra.mxu0 %v1316_v20  ;;  %2246 = vmatpush.msra.mxu2 %v2197_v33  ;;  %v2213_v33 = vld [vmem:[%s4883_s3 + $0x88] sm:$0xff] }
 0x2da   :  { %2258 = vmatpush.msra.mxu3 %v2221_v36  ;;  %2182 = vmatpush.msra.mxu1 %v1336_v55  ;;  %v2029_v4 = vperm.slane %v1259_v9, %v3282_v50  ;;  %v1328_v36 = vld [vmem:[%s4881_s1 + $0x80] sm:$0xff] }
 0x2db   :  { %2167 = vmatpush.msra.mxu0 %v1315_v51  ;;  %2247 = vmatpush.msra.mxu2 %v2196_v17  ;;  %v2212_v55 = vld [vmem:[%s4883_s3 + $0x80] sm:$0xff] }
 0x2dc   :  { %2259 = vmatpush.msra.mxu3 %v2220_v62  ;;  %2183 = vmatpush.msra.mxu1 %v1335_v52  ;;  %v2030_v40 = vsel %vm5065_vm0, %v2029_v4, %v4513_v28  ;;  %v1289_v62 = vmul.f32 %v3170_v44, %v4519_v34  ;;  %v1290_v52 = vmul.f32 %v3170_v44, %v4537_v19 }
 0x2dd   :  { %2168 = vmatpush.msra.mxu0 %v1314_v38 }
 0x2de   :  { %v4567_v45 = vpop.xlane.xlu2 %936  ;;  %v4569_v27 = vpop.xlane.xlu1 %894  ;;  %2260 = vmatpush.msra.mxu3 %v2219_v39  ;;  %2184 = vmatpush.msra.mxu1 %v1334_v46  ;;  %v1273_v46 = vmul.f32 %v3170_v44, %v4539_v48  ;;  %v2089_v19 = vperm.slane %v1290_v52, %v3272_v59 }
 0x2df   :  { %v4571_v12 = vpop.xlane.xlu0 %1026  ;;  %2169 = vmatpush.msra.mxu0 %v1313_v5  ;;  %v1260_v3 = vmul.f32 %v3170_v44, %v4569_v27  ;;  %v1333_v27 = vld [vmem:[%s4881_s1 + $0xa8] sm:$0xff] }
 0x2e0   :  { %2261 = vmatpush.msra.mxu3 %v2218_v30  ;;  %2185 = vmatpush.msra.mxu1 %v1333_v27  ;;  %v2087_v30 = vperm.slane %v1289_v62, %v3259_v2  ;;  %v2056_v27 = vperm.slane %v1273_v46, %v3259_v2 }
 0x2e1   :  { %2170 = vmatpush.msra.mxu0 %v1312_v16  ;;  %v2031_v56 = vperm.slane %v1260_v3, %v3300_v42 }
 0x2e2   :  { %2262 = vmatpush.msra.mxu3 %v2217_v26 }
 0x2e3   :  { %v2032_v38 = vsel %vm5066_vm4, %v2031_v56, %v2030_v40 }
 0x2e4   :  { %2263 = vmatpush.msra.mxu3 %v2216_v11 }
 0x2e6   :  { %v4603_v41 = vpop.xlane.xlu2 %897  ;;  %v4605_v31 = vpop.xlane.xlu1 %1029  ;;  %2264 = vmatpush.msra.mxu3 %v2215_v29 }
 0x2e7   :  { %v4607_v61 = vpop.xlane.xlu0 %987  ;;  %v1261_v15 = vmul.f32 %v3170_v44, %v4603_v41  ;;  %v1332_v41 = vld [vmem:[%s4881_s1 + $0xa0] sm:$0xff] }
 0x2e8   :  { %2186 = vmatpush.msra.mxu1 %v1332_v41  ;;  %2265 = vmatpush.msra.mxu3 %v2214_v37 }
 0x2e9   :  { %v2033_v20 = vperm.slane %v1261_v15, %v3297_v60 }
 0x2ea   :  { %2187 = vmatpush.msra.mxu1 %v1331_v23  ;;  %2266 = vmatpush.msra.mxu3 %v2213_v33  ;;  %v1305_v33 = vmul.f32 %v3170_v44, %v4605_v31 }
 0x2eb   :  { %v2034_v7 = vsel %vm1657_vm14, %v2033_v20, %v2032_v38 }
 0x2ec   :  { %2188 = vmatpush.msra.mxu1 %v1330_v53  ;;  %2267 = vmatpush.msra.mxu3 %v2212_v55 }
 0x2ee   :  { %v4651_v22 = vpop.xlane.xlu2 %1032  ;;  %v4653_v32 = vpop.xlane.xlu1 %990  ;;  %2189 = vmatpush.msra.mxu1 %v1329_v35 }
 0x2ef   :  { %v4661_v8 = vpop.xlane.xlu0 %939  ;;  %v1306_v62 = vmul.f32 %v3170_v44, %v4651_v22 }
 0x2f0   :  { %2190 = vmatpush.msra.mxu1 %v1328_v36  ;;  %v1275_v20 = vmul.f32 %v3170_v44, %v4661_v8 }
 0x2f6   :  { %v4705_v18 = vpop.xlane.xlu2 %993  ;;  %v4707_v13 = vpop.xlane.xlu1 %942 }
 0x2f7   :  { %v901_v10 = vpop.xlane.xlu0 %900  ;;  %v1293_v34 = vmul.f32 %v3170_v44, %v4705_v18  ;;  %v1274_v18 = vmul.f32 %v3170_v44, %v4567_v45  ;;  %v1276_v45 = vmul.f32 %v3170_v44, %v4707_v13  ;;  %v1304_v13 = vmul.f32 %v3170_v44, %v4571_v12 }
 0x2f8   :  { %v1262_v54 = vmul.f32 %v3170_v44, %v901_v10  ;;  %v1291_v10 = vmul.f32 %v3170_v44, %v4607_v61 }
 0x2f9   :  { %v2095_v26 = vperm.slane %v1293_v34, %v3297_v60  ;;  %v2058_v53 = vperm.slane %v1274_v18, %v3272_v59  ;;  %v2062_v36 = vperm.slane %v1276_v45, %v3300_v42 }
 0x2fa   :  { %v2035_v43 = vperm.slane %v1262_v54, %v3285_v57  ;;  %v2091_v54 = vperm.slane %v1291_v10, %v3282_v50 }
 0x2fc   :  { %v2036_v5 = vsel %vm1661_vm15, %v2035_v43, %v2034_v7 }
 0x2fe   :  { %v904_v1 = vpop.xlane.xlu2 %903  ;;  %v853_v51 = vpop.xlane.xlu1 %852 }
 0x2ff   :  { %v1263_v6 = vmul.f32 %v3170_v44, %v904_v1  ;;  %v4747_v47 = vpop.xlane.xlu0 %1035  ;;  %v1246_v61 = vmul.f32 %v3170_v44, %v853_v51  ;;  %v2057_v1 = vsel %vm1641_vm10, %v2056_v27, %v4529_v25 }
 0x300   :  { %v2059_v52 = vsel %vm1645_vm11, %v2058_v53, %v2057_v1  ;;  %v1307_v31 = vmul.f32 %v3170_v44, %v4747_v47  ;;  %v2120_v47 = vperm.slane %v1306_v62, %v3272_v59 }
 0x301   :  { %v2037_v28 = vperm.slane %v1263_v6, %v3337_v49  ;;  %v2004_v29 = vperm.slane %v1246_v61, %v3285_v57 }
 0x303   :  { %v2038_v16 = vsel %vm1665_vm1, %v2037_v28, %v2036_v5  ;;  %v2060_v28 = vperm.slane %v1275_v20, %v3282_v50  ;;  %v2005_v5 = vsel %vm1661_vm15, %v2004_v29, %v4341_v0  ;;  %v2308_v29 = vld [vmem:[%s4882_s2] ss:$0 sm:$0xff]  ;;  %s2289_s2 = sshll.u32 %s2366_s14, 4  ;;  %s2290_s2 = int_to_ptr.vmem [resolvable:$true] %s2289_s2 }
 0x304   :  { %v2143_v17 = vsel %vm2142_vm7, %v2038_v16, %v4243_v58  ;;  %v1292_v58 = vmul.f32 %v3170_v44, %v4653_v32  ;;  %v2088_v32 = vsel %vm1641_vm10, %v2087_v30, %v4517_v21  ;;  %v2118_v30 = vperm.slane %v1305_v33, %v3259_v2 }
 0x305   :  { %v2090_v4 = vsel %vm1645_vm11, %v2089_v19, %v2088_v32 }
 0x306   :  { %v1039_v39 = vpop.xlane.xlu2 %1038  ;;  %v997_v9 = vpop.xlane.xlu1 %996  ;;  %v2093_v48 = vperm.slane %v1292_v58, %v3300_v42  ;;  %v2092_v23 = vsel %vm5067_vm2, %v2091_v54, %v2090_v4  ;;  %v2122_v54 = vperm.slane %v1307_v31, %v3282_v50 }
 0x307   :  { %v946_v3 = vpop.xlane.xlu0 %945  ;;  %v1294_v15 = vmul.f32 %v3170_v44, %v997_v9  ;;  %v1308_v22 = vmul.f32 %v3170_v44, %v1039_v39 }
 0x308   :  { %v2094_v51 = vsel %vm5068_vm6, %v2093_v48, %v2092_v23  ;;  %v1277_v38 = vmul.f32 %v3170_v44, %v946_v3  ;;  %v2061_v3 = vsel %vm5069_vm8, %v2060_v28, %v2059_v52 }
 0x309   :  { %v2097_v56 = vperm.slane %v1294_v15, %v3285_v57  ;;  %v2096_v6 = vsel %vm1657_vm14, %v2095_v26, %v2094_v51  ;;  %v2124_v2 = vperm.slane %v1308_v22, %v3300_v42 }
 0x30a   :  { %v2064_v12 = vperm.slane %v1277_v38, %v3297_v60 }
 0x30b   :  { %v2098_v7 = vsel %vm1661_vm15, %v2097_v56, %v2096_v6 }
 0x30e   :  { %v1000_v41 = vpop.xlane.xlu2 %999  ;;  %v949_v11 = vpop.xlane.xlu1 %948 }
 0x30f   :  { %v1295_v21 = vmul.f32 %v3170_v44, %v1000_v41  ;;  %v856_v43 = vpop.xlane.xlu0 %855  ;;  %v1278_v37 = vmul.f32 %v3170_v44, %v949_v11 }
 0x310   :  { %v1247_v40 = vmul.f32 %v3170_v44, %v856_v43 }
 0x311   :  { %v2099_v8 = vperm.slane %v1295_v21, %v3337_v49  ;;  %v2066_v9 = vperm.slane %v1278_v37, %v3285_v57  ;;  %v2309_v21 = vld [vmem:[%s4884_s4] ss:$0 sm:$0xff] }
 0x312   :  { %v2006_v25 = vperm.slane %v1247_v40, %v3337_v49 }
 0x313   :  { %v2100_v35 = vsel %vm1665_vm1, %v2099_v8, %v2098_v7 }
 0x314   :  { %v2007_v16 = vsel %vm1665_vm1, %v2006_v25, %v2005_v5  ;;  %v2145_v55 = vsel %vm2144_vm5, %v2100_v35, %v2143_v17  ;;  %v2116_v17 = vperm.slane %v1304_v13, %v3250_v24 }
 0x315   :  { %2171 = vmatmul.f32.vlgmr.msra.gmra.mxu0 %v2145_v55  ;;  %2248 = vmatmul.f32.vlgmr.msra.gmra.mxu2 %v2145_v55  ;;  %v2150_v0 = vsel %vm2140_vm12, %v2007_v16, %v4133_v14  ;;  %vm5070_vm12 = vmmov %vm5066_vm4 }
 0x316   :  { %v952_v10 = vpop.xlane.xlu1 %951  ;;  %v2063_v14 = vsel %vm5070_vm12, %v2062_v36, %v2061_v3  ;;  %v1045_v19 = vpop.xlane.xlu2 %1044  ;;  %v2117_v61 = vsel %vm1637_vm9, %v2116_v17, %v4526_v63 }
 0x317   :  { %v1279_v46 = vmul.f32 %v3170_v44, %v952_v10  ;;  %v1042_v58 = vpop.xlane.xlu0 %1041  ;;  %v2065_v15 = vsel %vm1657_vm14, %v2064_v12, %v2063_v14  ;;  %v1310_v27 = vmul.f32 %v3170_v44, %v1045_v19  ;;  %v2119_v32 = vsel %vm1641_vm10, %v2118_v30, %v2117_v61 }
 0x318   :  { %v1309_v34 = vmul.f32 %v3170_v44, %v1042_v58  ;;  %v2067_v39 = vsel %vm1661_vm15, %v2066_v9, %v2065_v15  ;;  %v2121_v4 = vsel %vm1645_vm11, %v2120_v47, %v2119_v32 }
 0x319   :  { %v2068_v24 = vperm.slane %v1279_v46, %v3337_v49  ;;  %v2123_v50 = vsel %vm5071_vm3, %v2122_v54, %v2121_v4  ;;  %v2128_v63 = vperm.slane %v1310_v27, %v3285_v57 }
 0x31a   :  { %v2126_v59 = vperm.slane %v1309_v34, %v3297_v60  ;;  %v2125_v18 = vsel %vm5072_vm13, %v2124_v2, %v2123_v50 }
 0x31b   :  { %v2069_v48 = vsel %vm1665_vm1, %v2068_v24, %v2067_v39 }
 0x31c   :  { %v2151_v26 = vsel %vm2142_vm7, %v2069_v48, %v2150_v0  ;;  %v2127_v42 = vsel %vm1657_vm14, %v2126_v59, %v2125_v18 }
 0x31d   :  { %v2129_v23 = vsel %vm1661_vm15, %v2128_v63, %v2127_v42 }
 0x31f   :  { %v1048_v56 = vpop.xlane.xlu0 %1047 }
 0x320   :  { %v1311_v41 = vmul.f32 %v3170_v44, %v1048_v56 }
 0x322   :  { %v2130_v11 = vperm.slane %v1311_v41, %v3337_v49 }
 0x324   :  { %v2131_v60 = vsel %vm1665_vm1, %v2130_v11, %v2129_v23 }
 0x325   :  { %v2152_v20 = vsel %vm2144_vm5, %v2131_v60, %v2151_v26 }
 0x326   :  { %2191 = vmatmul.f32.vlgmr.msra.gmra.mxu1 %v2152_v20  ;;  %2268 = vmatmul.f32.vlgmr.msra.gmra.mxu3 %v2152_v20 }
 0x392   :  { %v2172_v57 = vpop.f32.mrf.mxu0 }
 0x393   :  { %v2173_v44 = vadd.f32 %v2308_v29, %v2172_v57 }
 0x398   :  { %v2249_v1 = vpop.f32.mrf.mxu2 }
 0x399   :  { %v2250_v51 = vadd.f32 %v2309_v21, %v2249_v1 }
 0x3a3   :  { %v2192_v49 = vpop.f32.mrf.mxu1 }
 0x3a4   :  { %v2193_v43 = vadd.f32 %v2192_v49, %v2173_v44 }
 0x3a6   :  { %2195 = vst [vmem:[#allocation2] sm:$0xff] %v2193_v43 }
 0x3a7   :  { %2283 = dma.vmem_to_hbm [thread:$0]  %s2279_s8, 128, %s2281_s11, [#allocation3]  }
 0x3a9   :  { %v2269_v45 = vpop.f32.mrf.mxu3 }
 0x3aa   :  { %v2270_v40 = vadd.f32 %v2269_v45, %v2250_v51 }
 0x3ac   :  { %2272 = vst [vmem:[#allocation4] sm:$0xff] %v2270_v40 }
 0x3ad   :  { %2294 = dma.vmem_to_hbm [thread:$0]  %s2290_s2, 128, %s2292_s17, [#allocation5]  }
 0x3ae   :  { %2360 = dma.done.wait [#allocation3], 128  }
 0x3af   :  { %2361 = vsyncadd [#allocation3], 4294967168 }
 0x3b0   :  { %2362 = dma.done.wait [#allocation5], 128  }
 0x3b1   :  { %2363 = vsyncadd [#allocation5], 4294967168 }
 0x3b2   :  { %2303 = vsyncpa [#allocation3], 1 }
 0x3b3   :  { %2304 = vsyncpa [#allocation5], 1 }

</bundles_post_ra>
